<compile_context>
chip_gen: v5e
topology: v5e:2x2
jax: 0.10.0
libtpu: 0.0.40
codegen_flags: <defaults>
</compile_context>

<pallas_src>
import functools

import jax
import jax.numpy as jnp
from jax.experimental import pallas as pl
from jax.experimental.pallas import tpu as pltpu

IN_FEATURES = 199608
OUT_FEATURES = 10


def _linear_kernel(x_ref, w_ref, o_ref, acc_ref, *, k_total, block_k,
                   kb_per_half):
    """Accumulate one K-slice of  y = x @ W^T  (bias is added in the wrapper)."""
    c = pl.program_id(0)           # which K half (maps to a TensorCore on v7x)
    k = pl.program_id(1)           # K-block index within the half

    @pl.when(k == 0)
    def _():
        acc_ref[...] = jnp.zeros_like(acc_ref)

    # Global K-block index and column mask for the ragged last tile.
    kb = c * kb_per_half + k
    col = jax.lax.broadcasted_iota(jnp.int32, (1, block_k), 1) + kb * block_k
    valid = col < k_total
    x = jnp.where(valid, x_ref[...], 0.0)      # (B, block_k)
    w = jnp.where(valid, w_ref[...], 0.0)      # (N, block_k) -- native layout

    # Contract the last dims: (B, bk) x (N, bk) -> (B, N)  ==  x @ W^T.
    acc_ref[...] += jax.lax.dot_general(
        x, w, (((1,), (1,)), ((), ())), preferred_element_type=jnp.float32)

    @pl.when(k == pl.num_programs(1) - 1)
    def _():
        o_ref[...] = acc_ref[...].astype(o_ref.dtype)


@functools.partial(jax.jit, static_argnames=("block_k",))
def linear_pallas(x, weight, bias, *, block_k=25600):
    """y = x @ weight.T + bias   (PyTorch nn.Linear semantics).

    x:      (B, K) float32
    weight: (N, K) float32  -- native nn.Linear layout, consumed as-is
    bias:   (N,)   float32
    """
    B, K = x.shape
    N, K2 = weight.shape
    assert K == K2 and bias.shape == (N,)
    assert block_k % 128 == 0

    n_kblocks = pl.cdiv(K, block_k)          # total K tiles (last one ragged)
    kb_per_half = pl.cdiv(n_kblocks, 2)      # K tiles handled by each half

    # Clamp so the DMA block index never goes past the array even if the
    # number of K blocks is odd; the in-kernel mask zeroes any such tile.
    def k_map(c, k):
        return (0, jnp.minimum(c * kb_per_half + k, n_kblocks - 1))

    kernel = functools.partial(
        _linear_kernel, k_total=K, block_k=block_k, kb_per_half=kb_per_half)

    partials = pl.pallas_call(
        kernel,
        out_shape=jax.ShapeDtypeStruct((2, B, N), jnp.float32),
        grid_spec=pltpu.PrefetchScalarGridSpec(
            num_scalar_prefetch=0,
            grid=(2, kb_per_half),
            in_specs=[
                pl.BlockSpec((B, block_k), k_map),     # x K-slice (lane-dense K)
                pl.BlockSpec((N, block_k), k_map),     # weight K-slice (native (N,K))
            ],
            out_specs=pl.BlockSpec((None, B, N), lambda c, k: (c, 0, 0)),
            scratch_shapes=[pltpu.VMEM((B, N), jnp.float32)],
        ),
        compiler_params=pltpu.CompilerParams(
            dimension_semantics=("parallel", "arbitrary"),
            vmem_limit_bytes=32 * 1024 * 1024,
        ),
    )(x, weight)

    # Tiny epilogue: combine the two K-halves and fold in the bias.
    y = partials[0] + partials[1] + bias[None, :]
    return y.astype(x.dtype)


def init_params(key):
    """Deterministic init matching nn.Linear's default U(-1/sqrt(K), 1/sqrt(K))."""
    kw, kb = jax.random.split(key)
    bound = 1.0 / jnp.sqrt(jnp.float32(IN_FEATURES))
    weight = jax.random.uniform(
        kw, (OUT_FEATURES, IN_FEATURES), jnp.float32, -bound, bound
    )
    bias = jax.random.uniform(kb, (OUT_FEATURES,), jnp.float32, -bound, bound)
    return weight, bias


if __name__ == "__main__":
    key = jax.random.PRNGKey(0)
    k_x, k_params = jax.random.split(key)

    batch = 2
    x = jax.random.normal(k_x, (batch, IN_FEATURES), jnp.float32)
    weight, bias = init_params(k_params)

    y = linear_pallas(x, weight, bias)
    y = jax.block_until_ready(y)

    # Reference check against plain JAX (same math as torch's nn.Linear).
    y_ref = x @ weight.T + bias
    assert y.shape == (batch, OUT_FEATURES)
    assert jnp.allclose(y, y_ref, atol=1e-3, rtol=1e-3)

    print("KERNEL_OK")
</pallas_src>

<mosaic_0001>
module attributes {stable_mosaic.version = 11 : i64} {
  func.func @_linear_kernel(%arg0: i32, %arg1: i32, %arg2: memref<2x25600xf32, #tpu.memory_space<vmem>>, %arg3: memref<10x25600xf32, #tpu.memory_space<vmem>>, %arg4: memref<1x2x10xf32, #tpu.memory_space<vmem>>, %arg5: memref<2x10xf32, #tpu.memory_space<vmem>>) attributes {dimension_semantics = [#tpu.dimension_semantics<parallel>, #tpu.dimension_semantics<arbitrary>], iteration_bounds = array<i64: 2, 4>, scalar_prefetch = 0 : i64, scratch_operands = 1 : i64, tpu.core_type = #tpu.core_type<tc>, window_params = [{transform_indices = @transform_0, window_bounds = array<i64: 2, 25600>}, {transform_indices = @transform_1, window_bounds = array<i64: 10, 25600>}, {transform_indices = @transform_2, window_bounds = array<i64: 1, 2, 10>}]} {
    %c0_i32 = arith.constant 0 : i32
    %0 = arith.cmpi eq, %arg1, %c0_i32 : i32
    %1 = arith.extui %0 : i1 to i32
    %c0_i32_0 = arith.constant 0 : i32
    %2 = arith.cmpi ne, %1, %c0_i32_0 : i32
    scf.if %2 {
      %cst_11 = arith.constant 0.000000e+00 : f32
      %28 = vector.broadcast %cst_11 : f32 to vector<2x10xf32>
      %c0_12 = arith.constant 0 : index
      %c0_13 = arith.constant 0 : index
      %29 = vector.load %arg5[%c0_12, %c0_13] : memref<2x10xf32, #tpu.memory_space<vmem>>, vector<2x10xf32>
      tpu.vector_store %arg5[%c0_12, %c0_13], %28 {strides = array<i32>} : memref<2x10xf32, #tpu.memory_space<vmem>>, vector<2x10xf32>,
    } else {
    }
    %c4_i32 = arith.constant 4 : i32
    %3 = arith.muli %arg0, %c4_i32 : i32
    %4 = arith.addi %3, %arg1 : i32
    %5 = tpu.iota {dimensions = array<i32: 1>} : vector<1x25600xi32>
    %c25600_i32 = arith.constant 25600 : i32
    %6 = arith.muli %4, %c25600_i32 : i32
    %7 = vector.broadcast %6 : i32 to vector<1x25600xi32>
    %8 = arith.addi %5, %7 : vector<1x25600xi32>
    %c199608_i32 = arith.constant 199608 : i32
    %9 = vector.broadcast %c199608_i32 : i32 to vector<1x25600xi32>
    %10 = arith.cmpi slt, %8, %9 : vector<1x25600xi32>
    %c0 = arith.constant 0 : index
    %c0_1 = arith.constant 0 : index
    %11 = vector.load %arg2[%c0, %c0_1] : memref<2x25600xf32, #tpu.memory_space<vmem>>, vector<2x25600xf32>
    %cst = arith.constant 0.000000e+00 : f32
    %12 = vector.shape_cast %10 : vector<1x25600xi1> to vector<1x25600xi1>
    %13 = vector.broadcast %12 : vector<1x25600xi1> to vector<2x25600xi1>
    %14 = vector.broadcast %cst : f32 to vector<2x25600xf32>
    %15 = arith.select %13, %11, %14 : vector<2x25600xi1>, vector<2x25600xf32>
    %c0_2 = arith.constant 0 : index
    %c0_3 = arith.constant 0 : index
    %16 = vector.load %arg3[%c0_2, %c0_3] : memref<10x25600xf32, #tpu.memory_space<vmem>>, vector<10x25600xf32>
    %cst_4 = arith.constant 0.000000e+00 : f32
    %17 = vector.shape_cast %10 : vector<1x25600xi1> to vector<1x25600xi1>
    %18 = vector.broadcast %17 : vector<1x25600xi1> to vector<10x25600xi1>
    %19 = vector.broadcast %cst_4 : f32 to vector<10x25600xf32>
    %20 = arith.select %18, %16, %19 : vector<10x25600xi1>, vector<10x25600xf32>
    %c0_5 = arith.constant 0 : index
    %c0_6 = arith.constant 0 : index
    %21 = vector.load %arg5[%c0_5, %c0_6] : memref<2x10xf32, #tpu.memory_space<vmem>>, vector<2x10xf32>
    %cst_7 = arith.constant dense<0.000000e+00> : vector<2x10xf32>
    %22 = tpu.matmul %15, %20, %cst_7 {dimension_numbers = #tpu.dot_dimension_numbers<[1], [1], [0], [0], [0, 0, 1, 0], [], []>} : vector<2x25600xf32>, vector<10x25600xf32>, vector<2x10xf32> -> vector<2x10xf32>
    %23 = arith.addf %21, %22 : vector<2x10xf32>
    %c0_8 = arith.constant 0 : index
    %c0_9 = arith.constant 0 : index
    %24 = vector.load %arg5[%c0_8, %c0_9] : memref<2x10xf32, #tpu.memory_space<vmem>>, vector<2x10xf32>
    tpu.vector_store %arg5[%c0_8, %c0_9], %23 {strides = array<i32>} : memref<2x10xf32, #tpu.memory_space<vmem>>, vector<2x10xf32>,
    %c3_i32 = arith.constant 3 : i32
    %25 = arith.cmpi eq, %arg1, %c3_i32 : i32
    %26 = arith.extui %25 : i1 to i32
    %c0_i32_10 = arith.constant 0 : i32
    %27 = arith.cmpi ne, %26, %c0_i32_10 : i32
    scf.if %27 {
      %c0_11 = arith.constant 0 : index
      %c0_12 = arith.constant 0 : index
      %28 = vector.load %arg5[%c0_11, %c0_12] : memref<2x10xf32, #tpu.memory_space<vmem>>, vector<2x10xf32>
      %c0_13 = arith.constant 0 : index
      %c0_14 = arith.constant 0 : index
      %c0_15 = arith.constant 0 : index
      %29 = vector.load %arg4[%c0_13, %c0_14, %c0_15] : memref<1x2x10xf32, #tpu.memory_space<vmem>>, vector<1x2x10xf32>
      %30 = vector.shape_cast %29 : vector<1x2x10xf32> to vector<2x10xf32>
      %31 = vector.shape_cast %28 : vector<2x10xf32> to vector<1x2x10xf32>
      tpu.vector_store %arg4[%c0_13, %c0_14, %c0_15], %31 {strides = array<i32>} : memref<1x2x10xf32, #tpu.memory_space<vmem>>, vector<1x2x10xf32>,
    } else {
    }
    return
  }
  func.func @transform_0(%arg0: i32, %arg1: i32) -> (i32, i32) {
    %c4_i32 = arith.constant 4 : i32
    %0 = arith.muli %arg0, %c4_i32 : i32
    %1 = arith.addi %0, %arg1 : i32
    %c7_i32 = arith.constant 7 : i32
    %2 = arith.minsi %1, %c7_i32 : i32
    %c0_i32 = arith.constant 0 : i32
    %c0_i32_0 = arith.constant 0 : i32
    return %c0_i32, %2 : i32, i32
  }
  func.func @transform_1(%arg0: i32, %arg1: i32) -> (i32, i32) {
    %c4_i32 = arith.constant 4 : i32
    %0 = arith.muli %arg0, %c4_i32 : i32
    %1 = arith.addi %0, %arg1 : i32
    %c7_i32 = arith.constant 7 : i32
    %2 = arith.minsi %1, %c7_i32 : i32
    %c0_i32 = arith.constant 0 : i32
    %c0_i32_0 = arith.constant 0 : i32
    return %c0_i32, %2 : i32, i32
  }
  func.func @transform_2(%arg0: i32, %arg1: i32) -> (i32, i32, i32) {
    %c0_i32 = arith.constant 0 : i32
    %c0_i32_0 = arith.constant 0 : i32
    %c0_i32_1 = arith.constant 0 : i32
    return %arg0, %c0_i32, %c0_i32_0 : i32, i32, i32
  }
}

</mosaic_0001>

<bundles_post_ra>
// kernel: linear_pallas.1
= control target key start
LH: loop header
LB: loop body
LE: loop exit
PB: predicated region body
PF: predicated region fallthrough
CT: control target
= control target key end

     0   :  { %7 = vsyncpa [#allocation4], 0  ;;  %s11135_s0 = inlined_call_operand.hbm [shape: f32[2,199608], index: 0, kind: input, shape index: {}]   ;;  %s11136_s1 = inlined_call_operand.hbm [shape: f32[10,199608], index: 1, kind: input, shape index: {}]   ;;  %s11137_s2 = inlined_call_operand.vmem [shape: f32[2,2,10], index: 2, kind: output, shape index: {}]  }
   0x1   :  { %9 = vsyncpa [#allocation4 + $0x1], 0 }
   0x2   :  { %10 = vsyncpa [#allocation6], 0 }
   0x3   :  { %12 = vsyncpa [#allocation6 + $0x1], 0  ;;  %s7819_s9 = smov 0   ;;  %s7821_s10 = smov 0  }
   0x4   :  { %s7823_s11 = smov 0   ;;  %s7825_s12 = smov 0  }
   0x5   :  { %s7827_s13 = smov 0   ;;  %s7829_s14 = smov 0  }
   0x6   :  { %s7831_s15 = smov 0   ;;  %s7833_s16 = smov 0  }
   0x7 LB: > { %s27_s17 = sadd.s32 1, %s7789_s14  ;;  %s30_s18 = sadd.s32 1, %s7793_s15  ;;  %s7797_s16 = sphi %s7833_s16, %s18_s16   ;;  %s7793_s15 = sphi %s7831_s15, %s11151_s15   ;;  %s7789_s14 = sphi %s7829_s14, %s11150_s14   ;;  %s7785_s13 = sphi %s7827_s13, %s11149_s13   ;;  %s7781_s12 = sphi %s7825_s12, %s11148_s12   ;;  %s7777_s11 = sphi %s7823_s11, %s11147_s11   ;;  %s7773_s10 = sphi %s7821_s10, %s11146_s10   ;;  %s7769_s9 = sphi %s7819_s9, %s11145_s9  }
   0x8   : > { %p28_p0 = scmp.ge.s32.totalorder %s27_s17, 4  ;;  %s6944_s19 = sadd.s32 4294967295, %s7797_s16  }
   0x9   : > { %s6946_s20 = sshll.u32 %s7793_s15, 2  ;;  %p52_p1 = scmp.ne.s32.totalorder %s7777_s11, %s7773_s10 }
   0xa   : > { %s11153_s17 = smov (%p28_p0, %s27_s17), 0  ;;  %s11155_s18 = smov (!%p28_p0, %s30_s18), %s7793_s15 }
   0xb   : > { %s35_s21 = sadd.s32 %s7789_s14, %s6946_s20  ;;  %p32_p2 = scmp.ge.s32.totalorder %s11155_s18, 2 }
   0xc   : > { %p36_p3 = scmp.lt.s32.totalorder %s35_s21, 7  ;;  %p53_p4 = scmp.eq.s32.totalorder %s7797_s16, 0 }
   0xd   : > { %p58_p5 = scmp.ne.s32.totalorder %s7773_s10, %s7769_s9  ;;  %s11157_s18 = smov (%p32_p2, %s11155_s18), 0 }
   0xe   : > { %11139 = sst [smem:[#allocation9_spill]] %s11157_s18  ;;  %s11159_s21 = smov (!%p36_p3, %s35_s21), 7 }
   0xf   : > { %s6947_s22 = sshll.u32 %s11157_s18, 2  ;;  %p7874_p6 = por %p53_p4, %p52_p1 }
  0x10   : > { %s39_s24 = sadd.s32 %s6947_s22, %s11153_s17  ;;  %p59_p7 = scmp.eq.s32.totalorder %s6944_s19, 0 }
  0x11   : > { %p40_p8 = scmp.lt.s32.totalorder %s39_s24, 7  ;;  %s45_s27 = sadd.s32 1, %s7777_s11 }
  0x12   : > { %p7879_p9 = por %p59_p7, %p58_p5  ;;  %p6951_p11 = scmp.ge.s32.totalorder %s7797_s16, 8 }
  0x13   : > { %s11161_s24 = smov (!%p40_p8, %s39_s24), 7 }
  0x14   : > { %s42_s26 = ssub.s32 %s11159_s21, %s11161_s24  ;;  %138 = sbr.rel (%p6951_p11) target bundleno = 89 (0x59), region = 16 }
  0x15   : > { %p43_p10 = scmp.eq.s32.totalorder %s42_s26, 0 }
  0x17   : > { %s7886_s28 = scalar_select %p43_p10, %s7777_s11, %s45_s27  }
  0x19   : > { %141 = sbr.rel (!%p7874_p6) target bundleno = 62 (0x3e), region = 20  ;;  %s142_s29 = sand.u32 (%p7874_p6), 1, %s7777_s11  }
  0x1a   : > { %s151_s30 = smul.u32 (%p7874_p6), 200, %s11159_s21  ;;  %s7896_s8 = scalar_lea.sflag (%p7874_p6), [#allocation4], %s142_s29 }
  0x1b   : > { %s7576_s3 = smul.u32 (%p7874_p6), 400, %s142_s29 }
  0x1c   : > { %s152_s4 = ssub.s32 (%p7874_p6), 1560, %s151_s30 }
  0x1d   : > { %p153_p12 = scmp.lt.s32.totalorder (%p7874_p6), %s152_s4, 200  ;;  %s146_s9 = scalar_lea.vmem (%p7874_p6), [#allocation3], %s7576_s3 }
  0x1f   : > { %s11163_s4 = smov (!%p153_p12, %s152_s4), 200 }
  0x20   : > { %s6953_s5 = sshll.u32 %s11163_s4, 1 }
  0x21   : > { %s156_s6 = ssub.s32 400, %s6953_s5 }
  0x22   : > { %s157_s7 = sshll.u32 %s156_s6, 4 }
  0x23   : > { %158 = vsyncadd %s7896_s8, %s157_s7  ;;  %p7899_p13 = scmp.ne.s32.totalorder %s6953_s5, 0  ;;  %s7572_s20 = smul.u32 400, %s11159_s21 }
  0x24   : > { %s6957_s22 = sshll.u32 %s11163_s4, 5  ;;  %s7905_s24 = sshll.u32 %s146_s9, 4  ;;  %s167_s24 = int_to_ptr.vmem [resolvable:$true] %s7905_s24 }
  0x25   : > { %s161_s29 = scalar_lea.hbm %s11135_s0, %s7572_s20  ;;  %s7651_s5 = sshrl.u32 %s6957_s22, 4 }
  0x26   : > { %s164_s30 = sshll.u32 %s161_s29, 4  ;;  %s7660_s18 = scalar_lea.hbm %s11135_s0, 3120  ;;  %s165_s30 = int_to_ptr.hbm [resolvable:$true] %s164_s30 }
  0x27   : > { %s7649_s3 = sshra.s32 %s165_s30, 4  ;;  %s7650_s3 = int_to_ptr.hbm [resolvable:$true] %s7649_s3 }
  0x28   : > { %s7656_s6 = scalar_lea.hbm %s7650_s3, %s7651_s5 }
  0x29   : > { %p7657_p0 = scmp.ne.s32.totalorder %s7650_s3, %s7656_s6  ;;  %p7662_p3 = scmp.lt.s32.totalorder %s7660_s18, %s7656_s6 }
  0x2b   : > { %p7658_p1 = pnand %p7657_p0, %p7899_p13 }
  0x2d   : > { %p7659_p2 = pneg %p7658_p1 }
  0x2f   : > { %p7664_p4 = pnand %p7662_p3, %p7659_p2 }
  0x31   : > { %7667 = shalt.err (!%p7664_p4)
}
  0x32   : > { %s7668_s20 = sshra.s32 %s167_s24, 4  ;;  %s7799_s27 = smov [#allocation3]   ;;  %s7669_s20 = int_to_ptr.vmem [resolvable:$true] %s7668_s20 }
  0x33   : > { %s7675_s26 = scalar_lea.vmem %s7669_s20, %s7651_s5  ;;  %s7679_s29 = scalar_lea.vmem %s7799_s27, 800 }
  0x34   : > { %p7676_p5 = scmp.ne.s32.totalorder %s7669_s20, %s7675_s26  ;;  %p7681_p10 = scmp.lt.s32.totalorder %s7679_s29, %s7675_s26 }
  0x36   : > { %p7677_p7 = pnand %p7676_p5, %p7899_p13 }
  0x38   : > { %p7678_p8 = pneg %p7677_p7 }
  0x3a   : > { %p7683_p11 = pnand %p7681_p10, %p7678_p8 }
  0x3c   : > { %7686 = shalt.err (!%p7683_p11)
}
  0x3d   : > { %169 = dma.hbm_to_vmem [thread:$0]  (%p7899_p13), %s165_s30, %s6957_s22, %s167_s24, %s7896_s8  }
  0x3e PF: > { %172 = sbr.rel (!%p7874_p6) target bundleno = 89 (0x59), region = 24  ;;  %s173_s18 = sand.u32 (%p7874_p6), 1, %s7777_s11  }
  0x3f   : > { %s182_s3 = smul.u32 (%p7874_p6), 200, %s11159_s21  ;;  %s7932_s20 = scalar_lea.sflag (%p7874_p6), [#allocation6], %s173_s18 }
  0x40   : > { %s7577_s5 = smul.u32 (%p7874_p6), 3200, %s173_s18 }
  0x41   : > { %s183_s6 = ssub.s32 (%p7874_p6), 1560, %s182_s3 }
  0x42   : > { %p184_p12 = scmp.lt.s32.totalorder (%p7874_p6), %s183_s6, 200  ;;  %s177_s4 = scalar_lea.vmem (%p7874_p6), [#allocation5], %s7577_s5 }
  0x44   : > { %s11165_s6 = smov (!%p184_p12, %s183_s6), 200 }
  0x45   : > { %s6959_s7 = sshll.u32 %s11165_s6, 4 }
  0x46   : > { %s187_s19 = ssub.s32 3200, %s6959_s7 }
  0x47   : > { %s188_s9 = sshll.u32 %s187_s19, 4 }
  0x48   : > { %189 = vsyncadd %s7932_s20, %s188_s9  ;;  %p7935_p6 = scmp.ne.s32.totalorder %s6959_s7, 0  ;;  %s7573_s8 = smul.u32 1600, %s11159_s21 }
  0x49   : > { %s6962_s22 = sshll.u32 %s11165_s6, 3  ;;  %s197_s24 = sshll.u32 %s177_s4, 4  ;;  %s198_s24 = int_to_ptr.vmem [resolvable:$true] %s197_s24 }
  0x4a   : > { %s192_s27 = scalar_lea.hbm %s11136_s1, %s7573_s8  ;;  %s7575_s18 = sshll.u32 %s11165_s6, 8 }
  0x4b   : > { %s195_s29 = sshll.u32 %s192_s27, 4  ;;  %s7690_s3 = sshrl.u32 %s7575_s18, 4  ;;  %s196_s29 = int_to_ptr.hbm [resolvable:$true] %s195_s29 }
  0x4c   : > { %s7707_s5 = sshra.s32 %s198_s24, 4  ;;  %s7800_s7 = smov [#allocation5]   ;;  %s7708_s5 = int_to_ptr.vmem [resolvable:$true] %s7707_s5 }
  0x4d   : > { %s7714_s19 = scalar_lea.vmem %s7708_s5, %s7690_s3  ;;  %s7718_s21 = scalar_lea.vmem %s7800_s7, 6400 }
  0x4e   : > { %p7715_p13 = scmp.ne.s32.totalorder %s7708_s5, %s7714_s19  ;;  %p7720_p2 = scmp.lt.s32.totalorder %s7718_s21, %s7714_s19 }
  0x50   : > { %p7716_p0 = pnand %p7715_p13, %p7935_p6 }
  0x52   : > { %p7717_p1 = pneg %p7716_p0 }
  0x54   : > { %p7722_p3 = pnand %p7720_p2, %p7717_p1 }
  0x56   : > { %7725 = shalt.err (!%p7722_p3)
}
  0x57   : > { %s7801_s9 = smov 199680   ;;  %s7802_s4 = smov 25600  }
  0x58   : > { %203 = dma.hbm_to_vmem [thread:$0]  (%p7935_p6), %s196_s29, %s7575_s18, %s198_s24, %s7932_s20, %s7801_s9, %s7802_s4, %s6962_s22  }
  0x59 PF: > { %p6965_p4 = scmp.ge.s32.totalorder %s7797_s16, 1  ;;  %p205_p5 = scmp.lt.s32.totalorder %s7797_s16, 9 }
  0x5b   : > { %p206_p7 = pnand %p6965_p4, %p205_p5 }
  0x5c   : > { %s211_s6 = sand.u32 (!%p206_p7), 1, %s7773_s10  }
  0x5d   : > { %209 = sbr.rel (%p206_p7) target bundleno = 669 (0x29d), region = 28  ;;  %s212_s30 = scalar_lea.sflag (!%p206_p7), [#allocation4], %s211_s6 }
  0x5e   : > { %s7578_s8 = smul.u32 (!%p206_p7), 400, %s211_s6 }
  0x60   : > { %s7953_s26 = scalar_lea.vmem (!%p206_p7), [#allocation3], %s7578_s8 }
  0x62   : > { %7760 = dma.done.wait (%p7879_p9), %s212_s30, 6400  }
  0x63   : > { %7762 = vsyncadd (%p7879_p9), %s212_s30, 4294960896  ;;  %s7579_s20 = smul.u32 3200, %s211_s6  ;;  %s222_s23 = scalar_lea.sflag [#allocation6], %s211_s6 }
  0x65   : > { %s7959_s22 = scalar_lea.vmem [#allocation5], %s7579_s20 }
  0x66   : > { %7764 = dma.done.wait (%p7879_p9), %s222_s23, 51200  }
  0x67   : > { %7766 = vsyncadd (%p7879_p9), %s222_s23, 4294916096  ;;  %p269_p8 = scmp.lt.s32.totalorder %s7785_s13, 1  ;;  %p6967_p10 = scmp.ne.s32.totalorder %s7781_s12, 0 }
  0x69   : > { %s270_s24 = scalar_select %p269_p8, %s7785_s13, 1 }
  0x6a   : > { %276 = sbr.rel (%p6967_p10) target bundleno = 113 (0x71), region = 40 }
  0x6b   : > { %s6966_s27 = sshll.u32 %s270_s24, 1 }
  0x6c   : > { %s7970_s3 = scalar_lea.vmem %s11137_s2, %s6966_s27 }
  0x6f   : > { %vm277_vm0 = vcmask 74752   ;;  %v7803_v0 = vmov 0.0  }
  0x70   : > { %278 = vst.msk [vmem:[#allocation2] sm:$0x3] %vm277_vm0, %v7803_v0 }
  0x71 PF: > { %s6968_s25 = sshll.u32 %s7785_s13, 2  ;;  %v281_v1 = vlaneseq  ;;  %v884_v3 = vld [vmem:[%s7953_s26] sm:$0xff]  ;;  %v2236_v15 = vld [vmem:[%s7959_s22 + $0x648] sm:$0x3]  ;;  %v2238_v19 = vld [vmem:[%s7959_s22 + $0x658] sm:$0x3] }
  0x72   : > { %s280_s5 = sadd.s32 %s7781_s12, %s6968_s25  ;;  %1384 = vst [vmem:[#allocation1] ss:$4 sm:$0xff] %v884_v3  ;;  %v2235_v9 = vld [vmem:[%s7959_s22 + $0x640] sm:$0x3]  ;;  %v2237_v13 = vld [vmem:[%s7959_s22 + $0x650] sm:$0x3] }
  0x73   : > { %v7975_v2 = vand.u32 127, %v281_v1  ;;  %s482_s19 = smul.u32 25600, %s280_s5  ;;  %v885_v18 = vld [vmem:[%s7953_s26 + $0x8] sm:$0xff]  ;;  %v2037_v23 = vld [vmem:[%s7959_s22 + $0x10] sm:$0xff]  ;;  %v2035_v24 = vld [vmem:[%s7959_s22] sm:$0xff]  ;;  %p7569_p9 = scmp.ne.s32.totalorder %s7781_s12, 3 }
  0x74   : > { %1386 = vst [vmem:[#allocation1 + $0x20] ss:$4 sm:$0xff] %v885_v18  ;;  %v2036_v26 = vld [vmem:[%s7959_s22 + $0x8] sm:$0xff]  ;;  %v2241_v27 = vld [vmem:[%s7959_s22 + $0x670] sm:$0x3]  ;;  %v2038_v30 = vld [vmem:[%s7959_s22 + $0x18] sm:$0xff] }
  0x75   : > { %v284_v4 = vadd.s32 256, %v7975_v2  ;;  %v7979_v5 = vstv %s482_s19  ;;  %v283_v6 = vadd.s32 128, %v7975_v2  ;;  %v285_v7 = vadd.s32 384, %v7975_v2  ;;  %v2242_v29 = vld [vmem:[%s7959_s22 + $0x678] sm:$0x3]  ;;  %v886_v40 = vld [vmem:[%s7953_s26 + $0x10] sm:$0xff] }
  0x76   : > { %v484_v8 = vadd.s32 %v7979_v5, %v7975_v2  ;;  %v288_v10 = vadd.s32 768, %v7975_v2  ;;  %v289_v11 = vadd.s32 896, %v7975_v2  ;;  %v286_v17 = vadd.s32 512, %v7975_v2  ;;  %v2239_v39 = vld [vmem:[%s7959_s22 + $0x660] sm:$0x3]  ;;  %v2041_v45 = vld [vmem:[%s7959_s22 + $0x30] sm:$0xff] }
  0x77   : > { %v486_v12 = vadd.s32 %v7979_v5, %v284_v4  ;;  %v485_v14 = vadd.s32 %v7979_v5, %v283_v6  ;;  %v487_v16 = vadd.s32 %v7979_v5, %v285_v7  ;;  %v287_v22 = vadd.s32 640, %v7975_v2  ;;  %v2240_v44 = vld [vmem:[%s7959_s22 + $0x668] sm:$0x3]  ;;  %v2042_v48 = vld [vmem:[%s7959_s22 + $0x38] sm:$0xff]  ;;  %v2245_v49 = vld [vmem:[%s7959_s22 + $0x690] sm:$0x3] }
  0x78   : > { %vm684_vm1 = vcmp.lt.s32.totalorder %v484_v8, 199608  ;;  %v7997_v20 = vadd.s32 %v7979_v5, %v288_v10  ;;  %v8000_v21 = vadd.s32 %v7979_v5, %v289_v11  ;;  %v292_v25 = vadd.s32 1280, %v7975_v2  ;;  %v2039_v51 = vld [vmem:[%s7959_s22 + $0x20] sm:$0xff]  ;;  %v2040_v52 = vld [vmem:[%s7959_s22 + $0x28] sm:$0xff]  ;;  %v2246_v53 = vld [vmem:[%s7959_s22 + $0x698] sm:$0x3] }
  0x79   : > { %vm686_vm2 = vcmp.lt.s32.totalorder %v486_v12, 199608  ;;  %6969 = vmatpush.xpose.msk.msra.mxu0 %vm684_vm1, %v2235_v9  ;;  %vm685_vm3 = vcmp.lt.s32.totalorder %v485_v14, 199608  ;;  %vm687_vm4 = vcmp.lt.s32.totalorder %v487_v16, 199608  ;;  %v8013_v28 = vadd.s32 %v7979_v5, %v286_v17  ;;  %v1389_v31 = vld.sshfl [vmem:[#allocation1 + $0x10] sm:$0xff pattern:$0x73625140] }
  0x7a   : > { %6975 = vmatpush.xpose.msk.msra.mxu2 %vm686_vm2, %v2237_v13  ;;  %6972 = vmatpush.xpose.msk.msra.mxu1 %vm685_vm3, %v2236_v15  ;;  %vm690_vm5 = vcmp.lt.s32.totalorder %v7997_v20, 199608  ;;  %vm691_vm6 = vcmp.lt.s32.totalorder %v8000_v21, 199608  ;;  %v8020_v32 = vadd.s32 %v7979_v5, %v287_v22  ;;  %v1387_v33 = vld.sshfl [vmem:[#allocation1] sm:$0xff pattern:$0x73625140]  ;;  %v8024_v34 = vadd.s32 %v7979_v5, %v292_v25  ;;  %v2043_v3 = vld [vmem:[%s7959_s22 + $0x40] sm:$0xff] }
  0x7b   : > { %6978 = vmatpush.xpose.msk.msra.mxu3 %vm687_vm4, %v2238_v19  ;;  %v290_v35 = vadd.s32 1024, %v7975_v2  ;;  %v293_v36 = vadd.s32 1408, %v7975_v2  ;;  %v291_v37 = vadd.s32 1152, %v7975_v2  ;;  %v1388_v38 = vld.sshfl [vmem:[#allocation1 + $0x8] sm:$0xff pattern:$0x73625140] }
  0x7c   : > { %v1390_v41 = vld.sshfl [vmem:[#allocation1 + $0x18] sm:$0xff pattern:$0x73625140]  ;;  %vm688_vm7 = vcmp.lt.s32.totalorder %v8013_v28, 199608  ;;  %v296_v43 = vadd.s32 1792, %v7975_v2  ;;  %vm689_vm8 = vcmp.lt.s32.totalorder %v8020_v32, 199608 }
  0x7d   : > { %6970 = vmatpush.xpose.msk.msra.mxu0 %vm684_vm1, %v2035_v24  ;;  %v8038_v42 = vadd.s32 %v7979_v5, %v293_v36  ;;  %v8048_v46 = vadd.s32 %v7979_v5, %v290_v35  ;;  %v294_v47 = vadd.s32 1536, %v7975_v2  ;;  %vm694_vm9 = vcmp.lt.s32.totalorder %v8024_v34, 199608  ;;  %1395 = vst [vmem:[#allocation1] ss:$4 sm:$0xff] %v886_v40  ;;  %v2243_v57 = vld [vmem:[%s7959_s22 + $0x680] sm:$0x3] }
  0x7e   : > { %6976 = vmatpush.xpose.msk.msra.mxu2 %vm686_vm2, %v2037_v23  ;;  %6973 = vmatpush.xpose.msk.msra.mxu1 %vm685_vm3, %v2036_v26  ;;  %v8057_v50 = vadd.s32 %v7979_v5, %v291_v37  ;;  %v297_v54 = vadd.s32 1920, %v7975_v2  ;;  %v1393_v55 = vld.sshfl [vmem:[#allocation1 + $0x30] sm:$0xff pattern:$0x73625140]  ;;  %v8073_v58 = vadd.s32 %v7979_v5, %v296_v43  ;;  %v295_v59 = vadd.s32 1664, %v7975_v2  ;;  %v2045_v0 = vld [vmem:[%s7959_s22 + $0x50] sm:$0xff] }
  0x7f   : > { %6979 = vmatpush.xpose.msk.msra.mxu3 %vm687_vm4, %v2038_v30  ;;  %vm695_vm10 = vcmp.lt.s32.totalorder %v8038_v42, 199608  ;;  %v1391_v56 = vld.sshfl [vmem:[#allocation1 + $0x20] sm:$0xff pattern:$0x73625140]  ;;  %vm692_vm11 = vcmp.lt.s32.totalorder %v8048_v46, 199608  ;;  %v8083_v62 = vadd.s32 %v7979_v5, %v294_v47  ;;  %v2044_v7 = vld [vmem:[%s7959_s22 + $0x48] sm:$0xff] }
  0x80   : > { %6971 = vmatmul.msk.f32.vlgmr.msra.gmra.mxu0 %vm684_vm1, %v1387_v33  ;;  %v1394_v60 = vld.sshfl [vmem:[#allocation1 + $0x38] sm:$0xff pattern:$0x73625140]  ;;  %v2244_v61 = vld [vmem:[%s7959_s22 + $0x688] sm:$0x3]  ;;  %vm693_vm12 = vcmp.lt.s32.totalorder %v8057_v50, 199608  ;;  %v8094_v4 = vadd.s32 %v7979_v5, %v297_v54  ;;  %v8105_v9 = vadd.s32 %v7979_v5, %v295_v59 }
  0x81   : > { %6977 = vmatmul.msk.f32.vlgmr.msra.gmra.mxu2 %vm686_vm2, %v1389_v31  ;;  %6974 = vmatmul.msk.f32.vlgmr.msra.gmra.mxu1 %vm685_vm3, %v1388_v38  ;;  %v1392_v63 = vld.sshfl [vmem:[#allocation1 + $0x28] sm:$0xff pattern:$0x73625140]  ;;  %vm698_vm13 = vcmp.lt.s32.totalorder %v8073_v58, 199608  ;;  %v2249_v8 = vld [vmem:[%s7959_s22 + $0x6b0] sm:$0x3] }
  0x82   : > { %6987 = vmatpush.xpose.msk.msrb.mxu2 %vm690_vm5, %v2241_v27  ;;  %6980 = vmatmul.msk.f32.vlgmr.msra.gmra.mxu3 %vm687_vm4, %v1390_v41  ;;  %v887_v1 = vld [vmem:[%s7953_s26 + $0x18] sm:$0xff]  ;;  %vm696_vm14 = vcmp.lt.s32.totalorder %v8083_v62, 199608  ;;  %v2247_v11 = vld [vmem:[%s7959_s22 + $0x6a0] sm:$0x3]  ;;  %v300_v13 = vadd.s32 2304, %v7975_v2  ;;  %v298_v14 = vadd.s32 2048, %v7975_v2 }
  0x83   : > { %6990 = vmatpush.xpose.msk.msrb.mxu3 %vm691_vm6, %v2242_v29  ;;  %6981 = vmatpush.xpose.msk.msrb.mxu0 %vm688_vm7, %v2239_v39  ;;  %1396 = vst [vmem:[#allocation1 + $0x20] ss:$4 sm:$0xff] %v887_v1  ;;  %v2046_v6 = vld [vmem:[%s7959_s22 + $0x58] sm:$0xff]  ;;  %vm699_vm15 = vcmp.lt.s32.totalorder %v8094_v4, 199608  ;;  %v301_v18 = vadd.s32 2432, %v7975_v2  ;;  %v888_v19 = vld [vmem:[%s7953_s26 + $0x20] sm:$0xff] }
  0x84   : > { %6984 = vmatpush.xpose.msk.msrb.mxu1 %vm689_vm8, %v2240_v44  ;;  %v1399_v10 = vld.sshfl [vmem:[#allocation1 + $0x10] sm:$0xff pattern:$0x73625140]  ;;  %v2250_v12 = vld [vmem:[%s7959_s22 + $0x6b8] sm:$0x3]  ;;  %vm697_vm0 = vcmp.lt.s32.totalorder %v8105_v9, 199608  ;;  %v8144_v23 = vadd.s32 %v7979_v5, %v300_v13  ;;  %v8151_v27 = vadd.s32 %v7979_v5, %v298_v14 }
  0x85   : > { %v1397_v15 = vld.sshfl [vmem:[#allocation1] sm:$0xff pattern:$0x73625140]  ;;  %v1400_v16 = vld.sshfl [vmem:[#allocation1 + $0x18] sm:$0xff pattern:$0x73625140]  ;;  %v8154_v28 = vadd.s32 %v7979_v5, %v301_v18 }
  0x86   : > { %6988 = vmatpush.xpose.msk.msrb.mxu2 %vm690_vm5, %v2041_v45  ;;  %v1398_v17 = vld.sshfl [vmem:[#allocation1 + $0x8] sm:$0xff pattern:$0x73625140]  ;;  %v2248_v20 = vld [vmem:[%s7959_s22 + $0x6a8] sm:$0x3]  ;;  %v299_v21 = vadd.s32 2176, %v7975_v2 }
  0x87   : > { %6991 = vmatpush.xpose.msk.msrb.mxu3 %vm691_vm6, %v2042_v48  ;;  %6982 = vmatpush.xpose.msk.msrb.mxu0 %vm688_vm7, %v2039_v51  ;;  %1405 = vst [vmem:[#allocation1] ss:$4 sm:$0xff] %v888_v19  ;;  %v2049_v22 = vld [vmem:[%s7959_s22 + $0x70] sm:$0xff]  ;;  %v2047_v24 = vld [vmem:[%s7959_s22 + $0x60] sm:$0xff]  ;;  %v2050_v25 = vld [vmem:[%s7959_s22 + $0x78] sm:$0xff]  ;;  %vm702_vm1 = vcmp.lt.s32.totalorder %v8144_v23, 199608 }
  0x88   : > { %6985 = vmatpush.xpose.msk.msrb.mxu1 %vm689_vm8, %v2040_v52  ;;  %v2048_v29 = vld [vmem:[%s7959_s22 + $0x68] sm:$0xff]  ;;  %v8158_v32 = vadd.s32 %v7979_v5, %v299_v21  ;;  %v2253_v33 = vld [vmem:[%s7959_s22 + $0x6d0] sm:$0x3]  ;;  %v2251_v37 = vld [vmem:[%s7959_s22 + $0x6c0] sm:$0x3]  ;;  %v304_v38 = vadd.s32 2816, %v7975_v2 }
  0x89   : > { %6989 = vmatmul.msk.f32.vlgmr.msrb.gmra.mxu2 %vm690_vm5, %v1393_v55  ;;  %v889_v36 = vld [vmem:[%s7953_s26 + $0x28] sm:$0xff]  ;;  %vm700_vm2 = vcmp.lt.s32.totalorder %v8151_v27, 199608  ;;  %vm703_vm3 = vcmp.lt.s32.totalorder %v8154_v28, 199608  ;;  %v302_v39 = vadd.s32 2560, %v7975_v2  ;;  %v305_v40 = vadd.s32 2944, %v7975_v2  ;;  %v2053_v43 = vld [vmem:[%s7959_s22 + $0x90] sm:$0xff] }
  0x8a   : > { %6999 = vmatpush.xpose.msk.msra.mxu2 %vm694_vm9, %v2245_v49  ;;  %6983 = vmatmul.msk.f32.vlgmr.msrb.gmra.mxu0 %vm688_vm7, %v1391_v56  ;;  %v1403_v26 = vld.sshfl [vmem:[#allocation1 + $0x30] sm:$0xff pattern:$0x73625140]  ;;  %v1401_v30 = vld.sshfl [vmem:[#allocation1 + $0x20] sm:$0xff pattern:$0x73625140]  ;;  %v8198_v46 = vadd.s32 %v7979_v5, %v304_v38 }
  0x8b   : > { %7002 = vmatpush.xpose.msk.msra.mxu3 %vm695_vm10, %v2246_v53  ;;  %6993 = vmatpush.xpose.msk.msra.mxu0 %vm692_vm11, %v2243_v57  ;;  %v1404_v31 = vld.sshfl [vmem:[#allocation1 + $0x38] sm:$0xff pattern:$0x73625140]  ;;  %v1402_v35 = vld.sshfl [vmem:[#allocation1 + $0x28] sm:$0xff pattern:$0x73625140]  ;;  %v8203_v49 = vadd.s32 %v7979_v5, %v302_v39  ;;  %v8206_v50 = vadd.s32 %v7979_v5, %v305_v40 }
  0x8c   : > { %6996 = vmatpush.xpose.msk.msra.mxu1 %vm693_vm12, %v2244_v61  ;;  %6992 = vmatmul.msk.f32.vlgmr.msrb.gmra.mxu3 %vm691_vm6, %v1394_v60  ;;  %1406 = vst [vmem:[#allocation1 + $0x20] ss:$4 sm:$0xff] %v889_v36  ;;  %v2254_v34 = vld [vmem:[%s7959_s22 + $0x6d8] sm:$0x3]  ;;  %vm701_vm4 = vcmp.lt.s32.totalorder %v8158_v32, 199608  ;;  %v303_v42 = vadd.s32 2688, %v7975_v2 }
  0x8d   : > { %6986 = vmatmul.msk.f32.vlgmr.msrb.gmra.mxu1 %vm689_vm8, %v1392_v63  ;;  %v2252_v41 = vld [vmem:[%s7959_s22 + $0x6c8] sm:$0x3]  ;;  %v308_v45 = vadd.s32 3328, %v7975_v2  ;;  %v890_v52 = vld [vmem:[%s7953_s26 + $0x30] sm:$0xff]  ;;  %v2054_v55 = vld [vmem:[%s7959_s22 + $0x98] sm:$0xff]  ;;  %v306_v56 = vadd.s32 3072, %v7975_v2 }
  0x8e   : > { %7000 = vmatpush.xpose.msk.msra.mxu2 %vm694_vm9, %v2045_v0  ;;  %v1409_v44 = vld.sshfl [vmem:[#allocation1 + $0x10] sm:$0xff pattern:$0x73625140]  ;;  %v1407_v47 = vld.sshfl [vmem:[#allocation1] sm:$0xff pattern:$0x73625140]  ;;  %v8210_v53 = vadd.s32 %v7979_v5, %v303_v42 }
  0x8f   : > { %6994 = vmatpush.xpose.msk.msra.mxu0 %vm692_vm11, %v2043_v3  ;;  %7003 = vmatpush.xpose.msk.msra.mxu3 %vm695_vm10, %v2046_v6  ;;  %v1410_v48 = vld.sshfl [vmem:[#allocation1 + $0x18] sm:$0xff pattern:$0x73625140]  ;;  %v1408_v51 = vld.sshfl [vmem:[#allocation1 + $0x8] sm:$0xff pattern:$0x73625140]  ;;  %v8225_v60 = vadd.s32 %v7979_v5, %v308_v45  ;;  %v8248_v1 = vadd.s32 %v7979_v5, %v306_v56 }
  0x90   : > { %6997 = vmatpush.xpose.msk.msra.mxu1 %vm693_vm12, %v2044_v7  ;;  %1415 = vst [vmem:[#allocation1] ss:$4 sm:$0xff] %v890_v52  ;;  %v2051_v54 = vld [vmem:[%s7959_s22 + $0x80] sm:$0xff]  ;;  %v2052_v57 = vld [vmem:[%s7959_s22 + $0x88] sm:$0xff]  ;;  %vm706_vm5 = vcmp.lt.s32.totalorder %v8198_v46, 199608  ;;  %v309_v61 = vadd.s32 3456, %v7975_v2 }
  0x91   : > { %7001 = vmatmul.msk.f32.vlgmr.msra.gmra.mxu2 %vm694_vm9, %v1399_v10  ;;  %v2257_v59 = vld [vmem:[%s7959_s22 + $0x6f0] sm:$0x3]  ;;  %vm704_vm6 = vcmp.lt.s32.totalorder %v8203_v49, 199608  ;;  %v2255_v58 = vld [vmem:[%s7959_s22 + $0x6e0] sm:$0x3]  ;;  %vm707_vm7 = vcmp.lt.s32.totalorder %v8206_v50, 199608 }
  0x92   : > { %7011 = vmatpush.xpose.msk.msrb.mxu2 %vm698_vm13, %v2249_v8  ;;  %6995 = vmatmul.msk.f32.vlgmr.msra.gmra.mxu0 %vm692_vm11, %v1397_v15  ;;  %v2258_v62 = vld [vmem:[%s7959_s22 + $0x6f8] sm:$0x3]  ;;  %vm705_vm8 = vcmp.lt.s32.totalorder %v8210_v53, 199608  ;;  %v2256_v63 = vld [vmem:[%s7959_s22 + $0x6e8] sm:$0x3]  ;;  %v307_v0 = vadd.s32 3200, %v7975_v2  ;;  %v8257_v4 = vadd.s32 %v7979_v5, %v309_v61 }
  0x93   : > { %7005 = vmatpush.xpose.msk.msrb.mxu0 %vm696_vm14, %v2247_v11  ;;  %7014 = vmatpush.xpose.msk.msrb.mxu3 %vm699_vm15, %v2250_v12  ;;  %v2057_v3 = vld [vmem:[%s7959_s22 + $0xb0] sm:$0xff]  ;;  %vm710_vm9 = vcmp.lt.s32.totalorder %v8225_v60, 199608  ;;  %v891_v6 = vld [vmem:[%s7953_s26 + $0x38] sm:$0xff]  ;;  %v2055_v7 = vld [vmem:[%s7959_s22 + $0xa0] sm:$0xff]  ;;  %v312_v18 = vadd.s32 3840, %v7975_v2  ;;  %v310_v21 = vadd.s32 3584, %v7975_v2 }
  0x94   : > { %7008 = vmatpush.xpose.msk.msrb.mxu1 %vm697_vm0, %v2248_v20  ;;  %7004 = vmatmul.msk.f32.vlgmr.msra.gmra.mxu3 %vm695_vm10, %v1400_v16  ;;  %v2058_v8 = vld [vmem:[%s7959_s22 + $0xb8] sm:$0xff]  ;;  %v1413_v9 = vld.sshfl [vmem:[#allocation1 + $0x30] sm:$0xff pattern:$0x73625140]  ;;  %v2261_v12 = vld [vmem:[%s7959_s22 + $0x710] sm:$0x3]  ;;  %v8267_v15 = vadd.s32 %v7979_v5, %v307_v0 }
  0x95   : > { %6998 = vmatmul.msk.f32.vlgmr.msra.gmra.mxu1 %vm693_vm12, %v1398_v17  ;;  %v1411_v10 = vld.sshfl [vmem:[#allocation1 + $0x20] sm:$0xff pattern:$0x73625140]  ;;  %v2056_v11 = vld [vmem:[%s7959_s22 + $0xa8] sm:$0xff]  ;;  %vm708_vm10 = vcmp.lt.s32.totalorder %v8248_v1, 199608  ;;  %vm711_vm11 = vcmp.lt.s32.totalorder %v8257_v4, 199608  ;;  %v8319_v32 = vadd.s32 %v7979_v5, %v310_v21 }
  0x96   : > { %7012 = vmatpush.xpose.msk.msrb.mxu2 %vm698_vm13, %v2049_v22  ;;  %v1414_v13 = vld.sshfl [vmem:[#allocation1 + $0x38] sm:$0xff pattern:$0x73625140]  ;;  %v1412_v14 = vld.sshfl [vmem:[#allocation1 + $0x28] sm:$0xff pattern:$0x73625140] }
  0x97   : > { %7006 = vmatpush.xpose.msk.msrb.mxu0 %vm696_vm14, %v2047_v24  ;;  %7015 = vmatpush.xpose.msk.msrb.mxu3 %vm699_vm15, %v2050_v25  ;;  %v2259_v16 = vld [vmem:[%s7959_s22 + $0x700] sm:$0x3]  ;;  %v2262_v17 = vld [vmem:[%s7959_s22 + $0x718] sm:$0x3]  ;;  %1416 = vst [vmem:[#allocation1 + $0x20] ss:$4 sm:$0xff] %v891_v6 }
  0x98   : > { %7009 = vmatpush.xpose.msk.msrb.mxu1 %vm697_vm0, %v2048_v29  ;;  %v2260_v19 = vld [vmem:[%s7959_s22 + $0x708] sm:$0x3]  ;;  %v313_v22 = vadd.s32 3968, %v7975_v2  ;;  %v8289_v23 = vld.sshfl [vmem:[#allocation1] sm:$0xff pattern:$0x73625140]  ;;  %v8312_v29 = vadd.s32 %v7979_v5, %v312_v18 }
  0x99   : > { %7013 = vmatmul.msk.f32.vlgmr.msrb.gmra.mxu2 %vm698_vm13, %v1403_v26  ;;  %v8281_v20 = vld.sshfl [vmem:[#allocation1 + $0x10] sm:$0xff pattern:$0x73625140]  ;;  %v8291_v24 = vld.sshfl [vmem:[#allocation1 + $0x18] sm:$0xff pattern:$0x73625140] }
  0x9a   : > { %7023 = vmatpush.xpose.msk.msra.mxu2 %vm702_vm1, %v2253_v33  ;;  %7007 = vmatmul.msk.f32.vlgmr.msrb.gmra.mxu0 %vm696_vm14, %v1401_v30  ;;  %vm709_vm12 = vcmp.lt.s32.totalorder %v8267_v15, 199608  ;;  %v8298_v25 = vld.sshfl [vmem:[#allocation1 + $0x8] sm:$0xff pattern:$0x73625140]  ;;  %v311_v26 = vadd.s32 3712, %v7975_v2  ;;  %v2061_v28 = vld [vmem:[%s7959_s22 + $0xd0] sm:$0xff]  ;;  %v8322_v33 = vadd.s32 %v7979_v5, %v313_v22 }
  0x9b   : > { %7017 = vmatpush.xpose.msk.msra.mxu0 %vm700_vm2, %v2251_v37  ;;  %7026 = vmatpush.xpose.msk.msra.mxu3 %vm703_vm3, %v2254_v34  ;;  %v892_v27 = vld [vmem:[%s7953_s26 + $0x40] sm:$0xff]  ;;  %v2060_v36 = vld [vmem:[%s7959_s22 + $0xc8] sm:$0xff]  ;;  %vm714_vm13 = vcmp.lt.s32.totalorder %v8312_v29, 199608  ;;  %vm712_vm14 = vcmp.lt.s32.totalorder %v8319_v32, 199608  ;;  %v314_v45 = vadd.s32 4096, %v7975_v2  ;;  %v317_v46 = vadd.s32 4480, %v7975_v2 }
  0x9c   : > { %7020 = vmatpush.xpose.msk.msra.mxu1 %vm701_vm4, %v2252_v41  ;;  %7016 = vmatmul.msk.f32.vlgmr.msrb.gmra.mxu3 %vm699_vm15, %v1404_v31  ;;  %1425 = vst [vmem:[#allocation1] ss:$4 sm:$0xff] %v892_v27  ;;  %v2059_v30 = vld [vmem:[%s7959_s22 + $0xc0] sm:$0xff]  ;;  %v2062_v31 = vld [vmem:[%s7959_s22 + $0xd8] sm:$0xff]  ;;  %v2265_v37 = vld [vmem:[%s7959_s22 + $0x730] sm:$0x3]  ;;  %v8328_v38 = vadd.s32 %v7979_v5, %v311_v26 }
  0x9d   : > { %7010 = vmatmul.msk.f32.vlgmr.msrb.gmra.mxu1 %vm697_vm0, %v1402_v35  ;;  %v893_v35 = vld [vmem:[%s7953_s26 + $0x48] sm:$0xff]  ;;  %v2263_v42 = vld [vmem:[%s7959_s22 + $0x720] sm:$0x3]  ;;  %vm715_vm15 = vcmp.lt.s32.totalorder %v8322_v33, 199608  ;;  %v2065_v49 = vld [vmem:[%s7959_s22 + $0xf0] sm:$0xff]  ;;  %v8388_v56 = vadd.s32 %v7979_v5, %v317_v46  ;;  %v318_v1 = vadd.s32 4608, %v7975_v2 }
  0x9e   : > { %7024 = vmatpush.xpose.msk.msra.mxu2 %vm702_vm1, %v2053_v43  ;;  %v8330_v34 = vld.sshfl [vmem:[#allocation1 + $0x30] sm:$0xff pattern:$0x73625140]  ;;  %v8332_v39 = vld.sshfl [vmem:[#allocation1 + $0x20] sm:$0xff pattern:$0x73625140] }
  0x9f   : > { %7018 = vmatpush.xpose.msk.msra.mxu0 %vm700_vm2, %v2051_v54  ;;  %7027 = vmatpush.xpose.msk.msra.mxu3 %vm703_vm3, %v2054_v55  ;;  %v8336_v40 = vld.sshfl [vmem:[#allocation1 + $0x38] sm:$0xff pattern:$0x73625140]  ;;  %v8338_v41 = vld.sshfl [vmem:[#allocation1 + $0x28] sm:$0xff pattern:$0x73625140]  ;;  %v8385_v55 = vadd.s32 %v7979_v5, %v314_v45 }
  0xa0   : > { %7021 = vmatpush.xpose.msk.msra.mxu1 %vm701_vm4, %v2052_v57  ;;  %v316_v43 = vadd.s32 4352, %v7975_v2  ;;  %1426 = vst [vmem:[#allocation1 + $0x20] ss:$4 sm:$0xff] %v893_v35  ;;  %vm713_vm0 = vcmp.lt.s32.totalorder %v8328_v38, 199608  ;;  %v2269_v0 = vld [vmem:[%s7959_s22 + $0x750] sm:$0x3] }
  0xa1   : > { %7025 = vmatmul.msk.f32.vlgmr.msra.gmra.mxu2 %vm702_vm1, %v1409_v44  ;;  %v2266_v44 = vld [vmem:[%s7959_s22 + $0x738] sm:$0x3]  ;;  %v2268_v4 = vld [vmem:[%s7959_s22 + $0x748] sm:$0x3]  ;;  %v2271_v27 = vld [vmem:[%s7959_s22 + $0x760] sm:$0x3] }
  0xa2   : > { %7035 = vmatpush.xpose.msk.msrb.mxu2 %vm706_vm5, %v2257_v59  ;;  %7019 = vmatmul.msk.f32.vlgmr.msra.gmra.mxu0 %vm700_vm2, %v1407_v47  ;;  %v2264_v47 = vld [vmem:[%s7959_s22 + $0x728] sm:$0x3]  ;;  %v8376_v52 = vadd.s32 %v7979_v5, %v316_v43  ;;  %v894_v59 = vld [vmem:[%s7953_s26 + $0x50] sm:$0xff]  ;;  %vm716_vm2 = vcmp.lt.s32.totalorder %v8385_v55, 199608  ;;  %v2270_v60 = vld [vmem:[%s7959_s22 + $0x758] sm:$0x3] }
  0xa3   : > { %7029 = vmatpush.xpose.msk.msrb.mxu0 %vm704_vm6, %v2255_v58  ;;  %7038 = vmatpush.xpose.msk.msrb.mxu3 %vm707_vm7, %v2258_v62  ;;  %v8368_v50 = vld.sshfl [vmem:[#allocation1 + $0x10] sm:$0xff pattern:$0x73625140]  ;;  %v8378_v53 = vld.sshfl [vmem:[#allocation1] sm:$0xff pattern:$0x73625140] }
  0xa4   : > { %7032 = vmatpush.xpose.msk.msrb.mxu1 %vm705_vm8, %v2256_v63  ;;  %7028 = vmatmul.msk.f32.vlgmr.msra.gmra.mxu3 %vm703_vm3, %v1410_v48  ;;  %v315_v48 = vadd.s32 4224, %v7975_v2  ;;  %v8380_v54 = vld.sshfl [vmem:[#allocation1 + $0x18] sm:$0xff pattern:$0x73625140]  ;;  %v2063_v58 = vld [vmem:[%s7959_s22 + $0xe0] sm:$0xff]  ;;  %v2066_v62 = vld [vmem:[%s7959_s22 + $0xf8] sm:$0xff] }
  0xa5   : > { %7022 = vmatmul.msk.f32.vlgmr.msra.gmra.mxu1 %vm701_vm4, %v1408_v51  ;;  %v320_v51 = vadd.s32 4864, %v7975_v2  ;;  %v8390_v57 = vld.sshfl [vmem:[#allocation1 + $0x8] sm:$0xff pattern:$0x73625140]  ;;  %v2064_v63 = vld [vmem:[%s7959_s22 + $0xe8] sm:$0xff]  ;;  %vm718_vm1 = vcmp.lt.s32.totalorder %v8376_v52, 199608 }
  0xa6   : > { %7036 = vmatpush.xpose.msk.msrb.mxu2 %vm706_vm5, %v2057_v3  ;;  %v8394_v61 = vadd.s32 %v7979_v5, %v315_v48  ;;  %1435 = vst [vmem:[#allocation1] ss:$4 sm:$0xff] %v894_v59  ;;  %v2267_v3 = vld [vmem:[%s7959_s22 + $0x740] sm:$0x3]  ;;  %vm719_vm3 = vcmp.lt.s32.totalorder %v8388_v56, 199608  ;;  %v2070_v15 = vld [vmem:[%s7959_s22 + $0x118] sm:$0xff] }
  0xa7   : > { %7030 = vmatpush.xpose.msk.msrb.mxu0 %vm704_vm6, %v2055_v7  ;;  %7039 = vmatpush.xpose.msk.msrb.mxu3 %vm707_vm7, %v2058_v8  ;;  %v8411_v6 = vadd.s32 %v7979_v5, %v320_v51  ;;  %v321_v7 = vadd.s32 4992, %v7975_v2  ;;  %v319_v8 = vadd.s32 4736, %v7975_v2  ;;  %v8458_v18 = vld.sshfl [vmem:[#allocation1 + $0x28] sm:$0xff pattern:$0x73625140]  ;;  %v2068_v26 = vld [vmem:[%s7959_s22 + $0x108] sm:$0xff] }
  0xa8   : > { %7033 = vmatpush.xpose.msk.msrb.mxu1 %vm705_vm8, %v2056_v11  ;;  %vm717_vm4 = vcmp.lt.s32.totalorder %v8394_v61, 199608  ;;  %v8443_v11 = vld.sshfl [vmem:[#allocation1 + $0x20] sm:$0xff pattern:$0x73625140]  ;;  %v2272_v32 = vld [vmem:[%s7959_s22 + $0x768] sm:$0x3] }
  0xa9   : > { %7037 = vmatmul.msk.f32.vlgmr.msrb.gmra.mxu2 %vm706_vm5, %v1413_v9  ;;  %v2069_v9 = vld [vmem:[%s7959_s22 + $0x110] sm:$0xff]  ;;  %vm722_vm5 = vcmp.lt.s32.totalorder %v8411_v6, 199608  ;;  %v8464_v21 = vadd.s32 %v7979_v5, %v319_v8  ;;  %v2274_v29 = vld [vmem:[%s7959_s22 + $0x778] sm:$0x3]  ;;  %v323_v33 = vadd.s32 5248, %v7975_v2  ;;  %v326_v46 = vadd.s32 5632, %v7975_v2 }
  0xaa   : > { %7047 = vmatpush.xpose.msk.msra.mxu2 %vm710_vm9, %v2261_v12  ;;  %7031 = vmatmul.msk.f32.vlgmr.msrb.gmra.mxu0 %vm704_vm6, %v1411_v10  ;;  %v8441_v10 = vld.sshfl [vmem:[#allocation1 + $0x30] sm:$0xff pattern:$0x73625140]  ;;  %v8445_v12 = vld.sshfl [vmem:[#allocation1 + $0x38] sm:$0xff pattern:$0x73625140] }
  0xab   : > { %7041 = vmatpush.xpose.msk.msra.mxu0 %vm708_vm10, %v2259_v16  ;;  %7050 = vmatpush.xpose.msk.msra.mxu3 %vm711_vm11, %v2262_v17  ;;  %v8453_v16 = vadd.s32 %v7979_v5, %v318_v1  ;;  %v8456_v17 = vadd.s32 %v7979_v5, %v321_v7  ;;  %v2073_v35 = vld [vmem:[%s7959_s22 + $0x130] sm:$0xff]  ;;  %v2278_v45 = vld [vmem:[%s7959_s22 + $0x798] sm:$0x3]  ;;  %v2276_v48 = vld [vmem:[%s7959_s22 + $0x788] sm:$0x3]  ;;  %v327_v51 = vadd.s32 5760, %v7975_v2  ;;  %v8583_v59 = vadd.s32 %v7979_v5, %v326_v46 }
  0xac   : > { %7044 = vmatpush.xpose.msk.msra.mxu1 %vm709_vm12, %v2260_v19  ;;  %7040 = vmatmul.msk.f32.vlgmr.msrb.gmra.mxu3 %vm707_vm7, %v1414_v13  ;;  %v895_v13 = vld [vmem:[%s7953_s26 + $0x58] sm:$0xff]  ;;  %v2277_v43 = vld [vmem:[%s7959_s22 + $0x790] sm:$0x3]  ;;  %v2075_v56 = vld [vmem:[%s7959_s22 + $0x140] sm:$0xff] }
  0xad   : > { %7034 = vmatmul.msk.f32.vlgmr.msrb.gmra.mxu1 %vm705_vm8, %v1412_v14  ;;  %v2067_v14 = vld [vmem:[%s7959_s22 + $0x100] sm:$0xff]  ;;  %v8466_v22 = vld.sshfl [vmem:[#allocation1] sm:$0xff pattern:$0x73625140]  ;;  %1436 = vst [vmem:[#allocation1 + $0x20] ss:$4 sm:$0xff] %v895_v13 }
  0xae   : > { %7048 = vmatpush.xpose.msk.msra.mxu2 %vm710_vm9, %v2061_v28  ;;  %v8460_v19 = vld.sshfl [vmem:[#allocation1 + $0x10] sm:$0xff pattern:$0x73625140]  ;;  %v324_v28 = vadd.s32 5376, %v7975_v2  ;;  %vm720_vm6 = vcmp.lt.s32.totalorder %v8453_v16, 199608  ;;  %vm723_vm7 = vcmp.lt.s32.totalorder %v8456_v17, 199608 }
  0xaf   : > { %7042 = vmatpush.xpose.msk.msra.mxu0 %vm708_vm10, %v2059_v30  ;;  %7051 = vmatpush.xpose.msk.msra.mxu3 %vm711_vm11, %v2062_v31  ;;  %v322_v30 = vadd.s32 5120, %v7975_v2  ;;  %v325_v31 = vadd.s32 5504, %v7975_v2  ;;  %vm721_vm8 = vcmp.lt.s32.totalorder %v8464_v21, 199608  ;;  %v2281_v1 = vld [vmem:[%s7959_s22 + $0x7b0] sm:$0x3]  ;;  %v330_v13 = vadd.s32 6144, %v7975_v2 }
  0xb0   : > { %7045 = vmatpush.xpose.msk.msra.mxu1 %vm709_vm12, %v2060_v36  ;;  %v8512_v36 = vadd.s32 %v7979_v5, %v324_v28  ;;  %v2279_v8 = vld [vmem:[%s7959_s22 + $0x7a0] sm:$0x3]  ;;  %v2282_v6 = vld [vmem:[%s7959_s22 + $0x7b8] sm:$0x3] }
  0xb1   : > { %7049 = vmatmul.msk.f32.vlgmr.msra.gmra.mxu2 %vm710_vm9, %v8281_v20  ;;  %v2273_v20 = vld [vmem:[%s7959_s22 + $0x770] sm:$0x3]  ;;  %v8520_v38 = vadd.s32 %v7979_v5, %v325_v31  ;;  %v8645_v16 = vadd.s32 %v7979_v5, %v330_v13  ;;  %v2082_v21 = vld [vmem:[%s7959_s22 + $0x178] sm:$0xff]  ;;  %v334_v31 = vadd.s32 6656, %v7975_v2  ;;  %v344_v13 = vadd.s32 7936, %v7975_v2 }
  0xb2   : > { %7059 = vmatpush.xpose.msk.msrb.mxu2 %vm714_vm13, %v2265_v37  ;;  %7043 = vmatmul.msk.f32.vlgmr.msra.gmra.mxu0 %vm708_vm10, %v8289_v23  ;;  %v8468_v23 = vld.sshfl [vmem:[#allocation1 + $0x18] sm:$0xff pattern:$0x73625140]  ;;  %v8517_v37 = vadd.s32 %v7979_v5, %v322_v30  ;;  %vm726_vm9 = vcmp.lt.s32.totalorder %v8512_v36, 199608  ;;  %v2286_v28 = vld [vmem:[%s7959_s22 + $0x7d8] sm:$0x3] }
  0xb3   : > { %7053 = vmatpush.xpose.msk.msrb.mxu0 %vm712_vm14, %v2263_v42  ;;  %7062 = vmatpush.xpose.msk.msrb.mxu3 %vm715_vm15, %v2266_v44  ;;  %v2072_v42 = vld [vmem:[%s7959_s22 + $0x128] sm:$0xff]  ;;  %v2275_v44 = vld [vmem:[%s7959_s22 + $0x780] sm:$0x3]  ;;  %v336_v30 = vadd.s32 6912, %v7975_v2  ;;  %v2085_v36 = vld [vmem:[%s7959_s22 + $0x190] sm:$0xff] }
  0xb4   : > { %7056 = vmatpush.xpose.msk.msrb.mxu1 %vm713_vm0, %v2264_v47  ;;  %7052 = vmatmul.msk.f32.vlgmr.msra.gmra.mxu3 %vm711_vm11, %v8291_v24  ;;  %v8472_v24 = vld.sshfl [vmem:[#allocation1 + $0x8] sm:$0xff pattern:$0x73625140]  ;;  %vm724_vm10 = vcmp.lt.s32.totalorder %v8517_v37, 199608  ;;  %vm727_vm11 = vcmp.lt.s32.totalorder %v8520_v38, 199608  ;;  %v329_v47 = vadd.s32 6016, %v7975_v2  ;;  %v8710_v38 = vadd.s32 %v7979_v5, %v334_v31 }
  0xb5   : > { %7046 = vmatmul.msk.f32.vlgmr.msra.gmra.mxu1 %vm709_vm12, %v8298_v25  ;;  %v896_v25 = vld [vmem:[%s7953_s26 + $0x60] sm:$0xff]  ;;  %v8707_v37 = vadd.s32 %v7979_v5, %v336_v30  ;;  %v2296_v30 = vld [vmem:[%s7959_s22 + $0x828] sm:$0x3]  ;;  %v348_v31 = vadd.s32 8448, %v7975_v2 }
  0xb6   : > { %7060 = vmatpush.xpose.msk.msrb.mxu2 %vm714_vm13, %v2065_v49  ;;  %1445 = vst [vmem:[#allocation1] ss:$4 sm:$0xff] %v896_v25  ;;  %v2077_v49 = vld [vmem:[%s7959_s22 + $0x150] sm:$0xff]  ;;  %v8566_v52 = vld.sshfl [vmem:[#allocation1 + $0x30] sm:$0xff pattern:$0x73625140]  ;;  %v8586_v61 = vadd.s32 %v7979_v5, %v329_v47 }
  0xb7   : > { %7054 = vmatpush.xpose.msk.msrb.mxu0 %vm712_vm14, %v2063_v58  ;;  %7063 = vmatpush.xpose.msk.msrb.mxu3 %vm715_vm15, %v2066_v62  ;;  %v8576_v55 = vld.sshfl [vmem:[#allocation1 + $0x28] sm:$0xff pattern:$0x73625140]  ;;  %v2080_v25 = vld [vmem:[%s7959_s22 + $0x168] sm:$0xff] }
  0xb8   : > { %7057 = vmatpush.xpose.msk.msrb.mxu1 %vm713_vm0, %v2064_v63  ;;  %v897_v63 = vld [vmem:[%s7953_s26 + $0x68] sm:$0xff] }
  0xb9   : > { %7061 = vmatmul.msk.f32.vlgmr.msrb.gmra.mxu2 %vm714_vm13, %v8330_v34  ;;  %v8523_v34 = vadd.s32 %v7979_v5, %v323_v33  ;;  %v2086_v47 = vld [vmem:[%s7959_s22 + $0x198] sm:$0xff] }
  0xba   : > { %7071 = vmatpush.xpose.msk.msra.mxu2 %vm718_vm1, %v2269_v0  ;;  %7055 = vmatmul.msk.f32.vlgmr.msrb.gmra.mxu0 %vm712_vm14, %v8332_v39  ;;  %v328_v39 = vadd.s32 5888, %v7975_v2  ;;  %v2076_v0 = vld [vmem:[%s7959_s22 + $0x148] sm:$0xff]  ;;  %vm728_vm14 = vcmp.lt.s32.totalorder %v8583_v59, 199608  ;;  %v339_v59 = vadd.s32 7296, %v7975_v2 }
  0xbb   : > { %7065 = vmatpush.xpose.msk.msra.mxu0 %vm716_vm2, %v2267_v3  ;;  %7074 = vmatpush.xpose.msk.msra.mxu3 %vm719_vm3, %v2270_v60  ;;  %vm725_vm12 = vcmp.lt.s32.totalorder %v8523_v34, 199608  ;;  %v8596_v3 = vadd.s32 %v7979_v5, %v327_v51  ;;  %v2083_v34 = vld [vmem:[%s7959_s22 + $0x180] sm:$0xff]  ;;  %v2084_v51 = vld [vmem:[%s7959_s22 + $0x188] sm:$0xff] }
  0xbc   : > { %7068 = vmatpush.xpose.msk.msra.mxu1 %vm717_vm4, %v2268_v4  ;;  %7064 = vmatmul.msk.f32.vlgmr.msrb.gmra.mxu3 %vm715_vm15, %v8336_v40  ;;  %v2071_v40 = vld [vmem:[%s7959_s22 + $0x120] sm:$0xff]  ;;  %vm731_vm15 = vcmp.lt.s32.totalorder %v8586_v61, 199608  ;;  %v2089_v61 = vld [vmem:[%s7959_s22 + $0x1b0] sm:$0xff] }
  0xbd   : > { %7058 = vmatmul.msk.f32.vlgmr.msrb.gmra.mxu1 %vm713_vm0, %v8338_v41  ;;  %v2074_v41 = vld [vmem:[%s7959_s22 + $0x138] sm:$0xff]  ;;  %v8588_v58 = vld.sshfl [vmem:[#allocation1 + $0x10] sm:$0xff pattern:$0x73625140]  ;;  %vm729_vm0 = vcmp.lt.s32.totalorder %v8596_v3, 199608 }
  0xbe   : > { %7072 = vmatpush.xpose.msk.msra.mxu2 %vm718_vm1, %v2069_v9  ;;  %v8590_v62 = vld.sshfl [vmem:[#allocation1] sm:$0xff pattern:$0x73625140]  ;;  %v8598_v60 = vld.sshfl [vmem:[#allocation1 + $0x18] sm:$0xff pattern:$0x73625140] }
  0xbf   : > { %7066 = vmatpush.xpose.msk.msra.mxu0 %vm716_vm2, %v2067_v14  ;;  %7075 = vmatpush.xpose.msk.msra.mxu3 %vm719_vm3, %v2070_v15  ;;  %v8603_v7 = vld.sshfl [vmem:[#allocation1 + $0x8] sm:$0xff pattern:$0x73625140]  ;;  %v332_v9 = vadd.s32 6400, %v7975_v2  ;;  %v2081_v14 = vld [vmem:[%s7959_s22 + $0x170] sm:$0xff] }
  0xc0   : > { %7069 = vmatpush.xpose.msk.msra.mxu1 %vm717_vm4, %v2068_v26  ;;  %v898_v4 = vld [vmem:[%s7953_s26 + $0x70] sm:$0xff] }
  0xc1   : > { %7073 = vmatmul.msk.f32.vlgmr.msra.gmra.mxu2 %vm718_vm1, %v8368_v50  ;;  %v8559_v50 = vadd.s32 %v7979_v5, %v328_v39  ;;  %1455 = vst [vmem:[#allocation1] ss:$4 sm:$0xff] %v898_v4  ;;  %v8642_v15 = vadd.s32 %v7979_v5, %v332_v9  ;;  %v2285_v26 = vld [vmem:[%s7959_s22 + $0x7d0] sm:$0x3]  ;;  %v2088_v4 = vld [vmem:[%s7959_s22 + $0x1a8] sm:$0xff] }
  0xc2   : > { %7083 = vmatpush.xpose.msk.msrb.mxu2 %vm722_vm5, %v2273_v20  ;;  %7067 = vmatmul.msk.f32.vlgmr.msra.gmra.mxu0 %vm716_vm2, %v8378_v53  ;;  %v8568_v53 = vld.sshfl [vmem:[#allocation1 + $0x20] sm:$0xff pattern:$0x73625140]  ;;  %v2079_v20 = vld [vmem:[%s7959_s22 + $0x160] sm:$0xff]  ;;  %vm732_vm2 = vcmp.lt.s32.totalorder %v8645_v16, 199608 }
  0xc3   : > { %7077 = vmatpush.xpose.msk.msrb.mxu0 %vm720_vm6, %v2271_v27  ;;  %7086 = vmatpush.xpose.msk.msrb.mxu3 %vm723_vm7, %v2274_v29  ;;  %vm730_vm13 = vcmp.lt.s32.totalorder %v8559_v50, 199608  ;;  %v2283_v27 = vld [vmem:[%s7959_s22 + $0x7c0] sm:$0x3]  ;;  %vm734_vm1 = vcmp.lt.s32.totalorder %v8642_v15, 199608  ;;  %v2284_v29 = vld [vmem:[%s7959_s22 + $0x7c8] sm:$0x3] }
  0xc4   : > { %7080 = vmatpush.xpose.msk.msrb.mxu1 %vm721_vm8, %v2272_v32  ;;  %7076 = vmatmul.msk.f32.vlgmr.msra.gmra.mxu3 %vm719_vm3, %v8380_v54  ;;  %v8574_v54 = vld.sshfl [vmem:[#allocation1 + $0x38] sm:$0xff pattern:$0x73625140]  ;;  %v2287_v50 = vld [vmem:[%s7959_s22 + $0x7e0] sm:$0x3] }
  0xc5   : > { %7070 = vmatmul.msk.f32.vlgmr.msra.gmra.mxu1 %vm717_vm4, %v8390_v57  ;;  %v2078_v57 = vld [vmem:[%s7959_s22 + $0x158] sm:$0xff]  ;;  %1446 = vst [vmem:[#allocation1 + $0x20] ss:$4 sm:$0xff] %v897_v63  ;;  %v2087_v63 = vld [vmem:[%s7959_s22 + $0x1a0] sm:$0xff]  ;;  %v2293_v3 = vld [vmem:[%s7959_s22 + $0x810] sm:$0x3] }
  0xc6   : > { %7084 = vmatpush.xpose.msk.msrb.mxu2 %vm722_vm5, %v2073_v35  ;;  %v899_v32 = vld [vmem:[%s7953_s26 + $0x78] sm:$0xff] }
  0xc7   : > { %7078 = vmatpush.xpose.msk.msrb.mxu0 %vm720_vm6, %v2071_v40  ;;  %7087 = vmatpush.xpose.msk.msrb.mxu3 %vm723_vm7, %v2074_v41  ;;  %v340_v40 = vadd.s32 7424, %v7975_v2  ;;  %v338_v41 = vadd.s32 7168, %v7975_v2  ;;  %v2294_v9 = vld [vmem:[%s7959_s22 + $0x818] sm:$0x3] }
  0xc8   : > { %7081 = vmatpush.xpose.msk.msrb.mxu1 %vm721_vm8, %v2072_v42  ;;  %v341_v42 = vadd.s32 7552, %v7975_v2  ;;  %v8728_v46 = vld.sshfl [vmem:[#allocation1 + $0x18] sm:$0xff pattern:$0x73625140] }
  0xc9   : > { %7085 = vmatmul.msk.f32.vlgmr.msrb.gmra.mxu2 %vm722_vm5, %v8441_v10  ;;  %v333_v10 = vadd.s32 6528, %v7975_v2  ;;  %vm738_vm5 = vcmp.lt.s32.totalorder %v8707_v37, 199608  ;;  %v2097_v37 = vld [vmem:[%s7959_s22 + $0x1f0] sm:$0xff] }
  0xca   : > { %7095 = vmatpush.xpose.msk.msra.mxu2 %vm726_vm9, %v2277_v43  ;;  %7079 = vmatmul.msk.f32.vlgmr.msrb.gmra.mxu0 %vm720_vm6, %v8443_v11  ;;  %v331_v11 = vadd.s32 6272, %v7975_v2  ;;  %v8721_v43 = vld.sshfl [vmem:[#allocation1 + $0x10] sm:$0xff pattern:$0x73625140]  ;;  %vm736_vm6 = vcmp.lt.s32.totalorder %v8710_v38, 199608  ;;  %v8902_v38 = vadd.s32 %v7979_v5, %v348_v31 }
  0xcb   : > { %7089 = vmatpush.xpose.msk.msra.mxu0 %vm724_vm10, %v2275_v44  ;;  %7098 = vmatpush.xpose.msk.msra.mxu3 %vm727_vm11, %v2278_v45  ;;  %v8650_v17 = vadd.s32 %v7979_v5, %v333_v10  ;;  %v8726_v45 = vld.sshfl [vmem:[#allocation1] sm:$0xff pattern:$0x73625140]  ;;  %v345_v10 = vadd.s32 8064, %v7975_v2  ;;  %v2309_v31 = vld [vmem:[%s7959_s22 + $0x890] sm:$0x3] }
  0xcc   : > { %7092 = vmatpush.xpose.msk.msra.mxu1 %vm725_vm12, %v2276_v48  ;;  %7088 = vmatmul.msk.f32.vlgmr.msrb.gmra.mxu3 %vm723_vm7, %v8445_v12  ;;  %v2280_v12 = vld [vmem:[%s7959_s22 + $0x7a8] sm:$0x3]  ;;  %v8697_v33 = vld.sshfl [vmem:[#allocation1 + $0x38] sm:$0xff pattern:$0x73625140] }
  0xcd   : > { %7082 = vmatmul.msk.f32.vlgmr.msrb.gmra.mxu1 %vm721_vm8, %v8458_v18  ;;  %v8653_v18 = vadd.s32 %v7979_v5, %v331_v11  ;;  %vm735_vm3 = vcmp.lt.s32.totalorder %v8650_v17, 199608  ;;  %v8699_v35 = vld.sshfl [vmem:[#allocation1 + $0x28] sm:$0xff pattern:$0x73625140]  ;;  %v343_v11 = vadd.s32 7808, %v7975_v2  ;;  %v8843_v16 = vadd.s32 %v7979_v5, %v345_v10 }
  0xce   : > { %7096 = vmatpush.xpose.msk.msra.mxu2 %vm726_vm9, %v2077_v49  ;;  %v8733_v48 = vld.sshfl [vmem:[#allocation1 + $0x8] sm:$0xff pattern:$0x73625140]  ;;  %v357_v10 = vadd.s32 9600, %v7975_v2 }
  0xcf   : > { %7090 = vmatpush.xpose.msk.msra.mxu0 %vm724_vm10, %v2075_v56  ;;  %7099 = vmatpush.xpose.msk.msra.mxu3 %vm727_vm11, %v2078_v57  ;;  %vm733_vm4 = vcmp.lt.s32.totalorder %v8653_v18, 199608  ;;  %v900_v49 = vld [vmem:[%s7953_s26 + $0x80] sm:$0xff]  ;;  %v8768_v57 = vadd.s32 %v7979_v5, %v341_v42  ;;  %v8848_v17 = vadd.s32 %v7979_v5, %v343_v11  ;;  %v355_v11 = vadd.s32 9344, %v7975_v2 }
  0xd0   : > { %7093 = vmatpush.xpose.msk.msra.mxu1 %vm725_vm12, %v2076_v0  ;;  %v2289_v56 = vld [vmem:[%s7959_s22 + $0x7f0] sm:$0x3]  ;;  %1465 = vst [vmem:[#allocation1] ss:$4 sm:$0xff] %v900_v49  ;;  %v2090_v0 = vld [vmem:[%s7959_s22 + $0x1b8] sm:$0xff]  ;;  %v2091_v18 = vld [vmem:[%s7959_s22 + $0x1c0] sm:$0xff] }
  0xd1   : > { %7097 = vmatmul.msk.f32.vlgmr.msra.gmra.mxu2 %vm726_vm9, %v8460_v19  ;;  %v337_v19 = vadd.s32 7040, %v7975_v2 }
  0xd2   : > { %7107 = vmatpush.xpose.msk.msrb.mxu2 %vm730_vm13, %v2281_v1  ;;  %7091 = vmatmul.msk.f32.vlgmr.msra.gmra.mxu0 %vm724_vm10, %v8466_v22  ;;  %v335_v22 = vadd.s32 6784, %v7975_v2  ;;  %v8789_v1 = vadd.s32 %v7979_v5, %v339_v59  ;;  %v352_v59 = vadd.s32 8960, %v7975_v2 }
  0xd3   : > { %7101 = vmatpush.xpose.msk.msrb.mxu0 %vm728_vm14, %v2279_v8  ;;  %7110 = vmatpush.xpose.msk.msrb.mxu3 %vm731_vm15, %v2282_v6  ;;  %v8716_v39 = vadd.s32 %v7979_v5, %v337_v19  ;;  %v2291_v8 = vld [vmem:[%s7959_s22 + $0x800] sm:$0x3]  ;;  %v342_v6 = vadd.s32 7680, %v7975_v2  ;;  %v346_v19 = vadd.s32 8192, %v7975_v2 }
  0xd4   : > { %7104 = vmatpush.xpose.msk.msrb.mxu1 %vm729_vm0, %v2280_v12  ;;  %7100 = vmatmul.msk.f32.vlgmr.msra.gmra.mxu3 %vm727_vm11, %v8468_v23  ;;  %v8689_v23 = vld.sshfl [vmem:[#allocation1 + $0x30] sm:$0xff pattern:$0x73625140]  ;;  %v8724_v44 = vadd.s32 %v7979_v5, %v335_v22  ;;  %vm743_vm11 = vcmp.lt.s32.totalorder %v8768_v57, 199608  ;;  %v349_v22 = vadd.s32 8576, %v7975_v2  ;;  %v8967_v57 = vadd.s32 %v7979_v5, %v352_v59  ;;  %v2110_v59 = vld [vmem:[%s7959_s22 + $0x258] sm:$0xff] }
  0xd5   : > { %7094 = vmatmul.msk.f32.vlgmr.msra.gmra.mxu1 %vm725_vm12, %v8472_v24  ;;  %v8691_v24 = vld.sshfl [vmem:[#allocation1 + $0x20] sm:$0xff pattern:$0x73625140]  ;;  %vm739_vm7 = vcmp.lt.s32.totalorder %v8716_v39, 199608  ;;  %vm741_vm12 = vcmp.lt.s32.totalorder %v8789_v1, 199608  ;;  %v8840_v15 = vadd.s32 %v7979_v5, %v342_v6  ;;  %v356_v1 = vadd.s32 9472, %v7975_v2 }
  0xd6   : > { %7108 = vmatpush.xpose.msk.msrb.mxu2 %vm730_vm13, %v2081_v14  ;;  %1456 = vst [vmem:[#allocation1 + $0x20] ss:$4 sm:$0xff] %v899_v32  ;;  %vm737_vm8 = vcmp.lt.s32.totalorder %v8724_v44, 199608  ;;  %v901_v12 = vld [vmem:[%s7953_s26 + $0x88] sm:$0xff]  ;;  %v347_v32 = vadd.s32 8320, %v7975_v2 }
  0xd7   : > { %7102 = vmatpush.xpose.msk.msrb.mxu0 %vm728_vm14, %v2079_v20  ;;  %7111 = vmatpush.xpose.msk.msrb.mxu3 %vm731_vm15, %v2082_v21  ;;  %v2098_v39 = vld [vmem:[%s7959_s22 + $0x1f8] sm:$0xff]  ;;  %v2096_v44 = vld [vmem:[%s7959_s22 + $0x1e8] sm:$0xff] }
  0xd8   : > { %7105 = vmatpush.xpose.msk.msrb.mxu1 %vm729_vm0, %v2080_v25  ;;  %v2094_v25 = vld [vmem:[%s7959_s22 + $0x1d8] sm:$0xff] }
  0xd9   : > { %7109 = vmatmul.msk.f32.vlgmr.msrb.gmra.mxu2 %vm730_vm13, %v8566_v52  ;;  %v2290_v52 = vld [vmem:[%s7959_s22 + $0x7f8] sm:$0x3] }
  0xda   : > { %7119 = vmatpush.xpose.msk.msra.mxu2 %vm734_vm1, %v2285_v26  ;;  %7103 = vmatmul.msk.f32.vlgmr.msrb.gmra.mxu0 %vm728_vm14, %v8568_v53  ;;  %v8756_v53 = vadd.s32 %v7979_v5, %v340_v40  ;;  %v2092_v26 = vld [vmem:[%s7959_s22 + $0x1c8] sm:$0xff]  ;;  %vm744_vm14 = vcmp.lt.s32.totalorder %v8840_v15, 199608  ;;  %v8909_v40 = vadd.s32 %v7979_v5, %v346_v19  ;;  %v9033_v15 = vadd.s32 %v7979_v5, %v357_v10  ;;  %v2307_v19 = vld [vmem:[%s7959_s22 + $0x880] sm:$0x3] }
  0xdb   : > { %7113 = vmatpush.xpose.msk.msra.mxu0 %vm732_vm2, %v2283_v27  ;;  %7122 = vmatpush.xpose.msk.msra.mxu3 %vm735_vm3, %v2286_v28  ;;  %v2297_v27 = vld [vmem:[%s7959_s22 + $0x830] sm:$0x3]  ;;  %v2295_v28 = vld [vmem:[%s7959_s22 + $0x820] sm:$0x3] }
  0xdc   : > { %7116 = vmatpush.xpose.msk.msra.mxu1 %vm733_vm4, %v2284_v29  ;;  %7112 = vmatmul.msk.f32.vlgmr.msrb.gmra.mxu3 %vm731_vm15, %v8574_v54  ;;  %v2288_v54 = vld [vmem:[%s7959_s22 + $0x7e8] sm:$0x3]  ;;  %vm742_vm9 = vcmp.lt.s32.totalorder %v8756_v53, 199608  ;;  %v2298_v29 = vld [vmem:[%s7959_s22 + $0x838] sm:$0x3]  ;;  %vm747_vm15 = vcmp.lt.s32.totalorder %v8843_v16, 199608  ;;  %v9036_v16 = vadd.s32 %v7979_v5, %v355_v11 }
  0xdd   : > { %7106 = vmatmul.msk.f32.vlgmr.msrb.gmra.mxu1 %vm729_vm0, %v8576_v55  ;;  %v8765_v55 = vadd.s32 %v7979_v5, %v338_v41  ;;  %v8807_v14 = vld.sshfl [vmem:[#allocation1 + $0x30] sm:$0xff pattern:$0x73625140]  ;;  %v8809_v20 = vld.sshfl [vmem:[#allocation1 + $0x20] sm:$0xff pattern:$0x73625140]  ;;  %v8912_v41 = vadd.s32 %v7979_v5, %v349_v22 }
  0xde   : > { %7120 = vmatpush.xpose.msk.msra.mxu2 %vm734_vm1, %v2085_v36  ;;  %v8817_v21 = vld.sshfl [vmem:[#allocation1 + $0x38] sm:$0xff pattern:$0x73625140]  ;;  %vm745_vm0 = vcmp.lt.s32.totalorder %v8848_v17, 199608  ;;  %v353_v53 = vadd.s32 9088, %v7975_v2  ;;  %v365_v11 = vadd.s32 10624, %v7975_v2 }
  0xdf   : > { %7114 = vmatpush.xpose.msk.msra.mxu0 %vm732_vm2, %v2083_v34  ;;  %7123 = vmatpush.xpose.msk.msra.mxu3 %vm735_vm3, %v2086_v47  ;;  %vm740_vm10 = vcmp.lt.s32.totalorder %v8765_v55, 199608  ;;  %v8894_v36 = vld.sshfl [vmem:[#allocation1 + $0x8] sm:$0xff pattern:$0x73625140]  ;;  %v8918_v47 = vadd.s32 %v7979_v5, %v347_v32  ;;  %v2101_v55 = vld [vmem:[%s7959_s22 + $0x210] sm:$0xff] }
  0xe0   : > { %7117 = vmatpush.xpose.msk.msra.mxu1 %vm733_vm4, %v2084_v51  ;;  %v2095_v34 = vld [vmem:[%s7959_s22 + $0x1e0] sm:$0xff]  ;;  %v2310_v22 = vld [vmem:[%s7959_s22 + $0x898] sm:$0x3]  ;;  %v2308_v32 = vld [vmem:[%s7959_s22 + $0x888] sm:$0x3] }
  0xe1   : > { %7121 = vmatmul.msk.f32.vlgmr.msra.gmra.mxu2 %vm734_vm1, %v8588_v58  ;;  %v8819_v58 = vld.sshfl [vmem:[#allocation1 + $0x28] sm:$0xff pattern:$0x73625140]  ;;  %vm750_vm1 = vcmp.lt.s32.totalorder %v8902_v38, 199608 }
  0xe2   : > { %7131 = vmatpush.xpose.msk.msrb.mxu2 %vm738_vm5, %v2289_v56  ;;  %7115 = vmatmul.msk.f32.vlgmr.msra.gmra.mxu0 %vm732_vm2, %v8590_v62  ;;  %v2292_v62 = vld [vmem:[%s7959_s22 + $0x808] sm:$0x3]  ;;  %1466 = vst [vmem:[#allocation1 + $0x20] ss:$4 sm:$0xff] %v901_v12  ;;  %v2301_v56 = vld [vmem:[%s7959_s22 + $0x850] sm:$0x3] }
  0xe3   : > { %7125 = vmatpush.xpose.msk.msrb.mxu0 %vm736_vm6, %v2287_v50  ;;  %7134 = vmatpush.xpose.msk.msrb.mxu3 %vm739_vm7, %v2290_v52  ;;  %v903_v52 = vld [vmem:[%s7953_s26 + $0x98] sm:$0xff]  ;;  %vm748_vm2 = vcmp.lt.s32.totalorder %v8909_v40, 199608  ;;  %v2311_v10 = vld [vmem:[%s7959_s22 + $0x8a0] sm:$0x3] }
  0xe4   : > { %7128 = vmatpush.xpose.msk.msrb.mxu1 %vm737_vm8, %v2288_v54  ;;  %7124 = vmatmul.msk.f32.vlgmr.msra.gmra.mxu3 %vm735_vm3, %v8598_v60  ;;  %v2093_v60 = vld [vmem:[%s7959_s22 + $0x1d0] sm:$0xff]  ;;  %v2299_v54 = vld [vmem:[%s7959_s22 + $0x840] sm:$0x3]  ;;  %vm751_vm3 = vcmp.lt.s32.totalorder %v8912_v41, 199608 }
  0xe5   : > { %7118 = vmatmul.msk.f32.vlgmr.msra.gmra.mxu1 %vm733_vm4, %v8603_v7  ;;  %v8837_v7 = vadd.s32 %v7979_v5, %v344_v13  ;;  %vm749_vm4 = vcmp.lt.s32.totalorder %v8918_v47, 199608 }
  0xe6   : > { %7132 = vmatpush.xpose.msk.msrb.mxu2 %vm738_vm5, %v2089_v61  ;;  %v2099_v61 = vld [vmem:[%s7959_s22 + $0x200] sm:$0xff] }
  0xe7   : > { %7126 = vmatpush.xpose.msk.msrb.mxu0 %vm736_vm6, %v2087_v63  ;;  %7135 = vmatpush.xpose.msk.msrb.mxu3 %vm739_vm7, %v2090_v0  ;;  %vm746_vm13 = vcmp.lt.s32.totalorder %v8837_v7, 199608  ;;  %v2102_v63 = vld [vmem:[%s7959_s22 + $0x218] sm:$0xff] }
  0xe8   : > { %7129 = vmatpush.xpose.msk.msrb.mxu1 %vm737_vm8, %v2088_v4  ;;  %v354_v4 = vadd.s32 9216, %v7975_v2 }
  0xe9   : > { %7133 = vmatmul.msk.f32.vlgmr.msrb.gmra.mxu2 %vm738_vm5, %v8689_v23  ;;  %v902_v23 = vld [vmem:[%s7953_s26 + $0x90] sm:$0xff]  ;;  %vm754_vm5 = vcmp.lt.s32.totalorder %v8967_v57, 199608 }
  0xea   : > { %7143 = vmatpush.xpose.msk.msra.mxu2 %vm742_vm9, %v2293_v3  ;;  %7127 = vmatmul.msk.f32.vlgmr.msrb.gmra.mxu0 %vm736_vm6, %v8691_v24  ;;  %v8884_v24 = vld.sshfl [vmem:[#allocation1 + $0x10] sm:$0xff pattern:$0x73625140]  ;;  %v8920_v49 = vld.sshfl [vmem:[#allocation1 + $0x20] sm:$0xff pattern:$0x73625140]  ;;  %v8977_v3 = vadd.s32 %v7979_v5, %v353_v53  ;;  %v9026_v7 = vadd.s32 %v7979_v5, %v354_v4 }
  0xeb   : > { %7137 = vmatpush.xpose.msk.msra.mxu0 %vm740_vm10, %v2291_v8  ;;  %7146 = vmatpush.xpose.msk.msra.mxu3 %vm743_vm11, %v2294_v9  ;;  %v8914_v42 = vld.sshfl [vmem:[#allocation1 + $0x30] sm:$0xff pattern:$0x73625140]  ;;  %v8922_v51 = vld.sshfl [vmem:[#allocation1 + $0x38] sm:$0xff pattern:$0x73625140] }
  0xec   : > { %7140 = vmatpush.xpose.msk.msra.mxu1 %vm741_vm12, %v2292_v62  ;;  %7136 = vmatmul.msk.f32.vlgmr.msrb.gmra.mxu3 %vm739_vm7, %v8697_v33  ;;  %v8886_v33 = vld.sshfl [vmem:[#allocation1] sm:$0xff pattern:$0x73625140]  ;;  %v8927_v50 = vld.sshfl [vmem:[#allocation1 + $0x28] sm:$0xff pattern:$0x73625140] }
  0xed   : > { %7130 = vmatmul.msk.f32.vlgmr.msrb.gmra.mxu1 %vm737_vm8, %v8699_v35  ;;  %v8892_v35 = vld.sshfl [vmem:[#allocation1 + $0x18] sm:$0xff pattern:$0x73625140]  ;;  %1476 = vst [vmem:[#allocation1 + $0x20] ss:$4 sm:$0xff] %v903_v52  ;;  %vm755_vm7 = vcmp.lt.s32.totalorder %v8977_v3, 199608 }
  0xee   : > { %7144 = vmatpush.xpose.msk.msra.mxu2 %vm742_vm9, %v2093_v60  ;;  %1475 = vst [vmem:[#allocation1] ss:$4 sm:$0xff] %v902_v23  ;;  %v904_v62 = vld [vmem:[%s7953_s26 + $0xa0] sm:$0xff]  ;;  %v2100_v60 = vld [vmem:[%s7959_s22 + $0x208] sm:$0xff]  ;;  %v358_v23 = vadd.s32 9728, %v7975_v2 }
  0xef   : > { %7138 = vmatpush.xpose.msk.msra.mxu0 %vm740_vm10, %v2091_v18  ;;  %7147 = vmatpush.xpose.msk.msra.mxu3 %vm743_vm11, %v2094_v25  ;;  %v2305_v18 = vld [vmem:[%s7959_s22 + $0x870] sm:$0x3] }
  0xf0   : > { %7141 = vmatpush.xpose.msk.msra.mxu1 %vm741_vm12, %v2092_v26  ;;  %v2105_v25 = vld [vmem:[%s7959_s22 + $0x230] sm:$0xff]  ;;  %v2103_v26 = vld [vmem:[%s7959_s22 + $0x220] sm:$0xff] }
  0xf1   : > { %7145 = vmatmul.msk.f32.vlgmr.msra.gmra.mxu2 %vm742_vm9, %v8721_v43  ;;  %v2302_v43 = vld [vmem:[%s7959_s22 + $0x858] sm:$0x3] }
  0xf2   : > { %7155 = vmatpush.xpose.msk.msrb.mxu2 %vm746_vm13, %v2297_v27  ;;  %7139 = vmatmul.msk.f32.vlgmr.msra.gmra.mxu0 %vm740_vm10, %v8726_v45  ;;  %v350_v45 = vadd.s32 8704, %v7975_v2  ;;  %v360_v27 = vadd.s32 9984, %v7975_v2  ;;  %vm756_vm10 = vcmp.lt.s32.totalorder %v9026_v7, 199608  ;;  %v369_v7 = vadd.s32 11136, %v7975_v2 }
  0xf3   : > { %7149 = vmatpush.xpose.msk.msrb.mxu0 %vm744_vm14, %v2295_v28  ;;  %7158 = vmatpush.xpose.msk.msrb.mxu3 %vm747_vm15, %v2298_v29  ;;  %v2106_v29 = vld [vmem:[%s7959_s22 + $0x238] sm:$0xff] }
  0xf4   : > { %7152 = vmatpush.xpose.msk.msrb.mxu1 %vm745_vm0, %v2296_v30  ;;  %7148 = vmatmul.msk.f32.vlgmr.msra.gmra.mxu3 %vm743_vm11, %v8728_v46  ;;  %v2300_v46 = vld [vmem:[%s7959_s22 + $0x848] sm:$0x3]  ;;  %v8974_v0 = vadd.s32 %v7979_v5, %v350_v45  ;;  %vm759_vm11 = vcmp.lt.s32.totalorder %v9033_v15, 199608  ;;  %v9080_v38 = vld.sshfl [vmem:[#allocation1 + $0x20] sm:$0xff pattern:$0x73625140] }
  0xf5   : > { %7142 = vmatmul.msk.f32.vlgmr.msra.gmra.mxu1 %vm741_vm12, %v8733_v48  ;;  %v351_v48 = vadd.s32 8832, %v7975_v2  ;;  %v8981_v8 = vld.sshfl [vmem:[#allocation1 + $0x10] sm:$0xff pattern:$0x73625140]  ;;  %vm757_vm12 = vcmp.lt.s32.totalorder %v9036_v16, 199608 }
  0xf6   : > { %7156 = vmatpush.xpose.msk.msrb.mxu2 %vm746_vm13, %v2097_v37  ;;  %v8986_v13 = vld.sshfl [vmem:[#allocation1] sm:$0xff pattern:$0x73625140]  ;;  %v8988_v6 = vld.sshfl [vmem:[#allocation1 + $0x18] sm:$0xff pattern:$0x73625140] }
  0xf7   : > { %7150 = vmatpush.xpose.msk.msrb.mxu0 %vm744_vm14, %v2095_v34  ;;  %7159 = vmatpush.xpose.msk.msrb.mxu3 %vm747_vm15, %v2098_v39  ;;  %v8984_v9 = vadd.s32 %v7979_v5, %v351_v48  ;;  %v8994_v12 = vld.sshfl [vmem:[#allocation1 + $0x8] sm:$0xff pattern:$0x73625140]  ;;  %vm752_vm6 = vcmp.lt.s32.totalorder %v8974_v0, 199608  ;;  %v2104_v30 = vld [vmem:[%s7959_s22 + $0x228] sm:$0xff]  ;;  %v361_v37 = vadd.s32 10112, %v7975_v2 }
  0xf8   : > { %7153 = vmatpush.xpose.msk.msrb.mxu1 %vm745_vm0, %v2096_v44  ;;  %1485 = vst [vmem:[#allocation1] ss:$4 sm:$0xff] %v904_v62  ;;  %v359_v34 = vadd.s32 9856, %v7975_v2  ;;  %v905_v39 = vld [vmem:[%s7953_s26 + $0xa8] sm:$0xff]  ;;  %v363_v62 = vadd.s32 10368, %v7975_v2 }
  0xf9   : > { %7157 = vmatmul.msk.f32.vlgmr.msrb.gmra.mxu2 %vm746_vm13, %v8807_v14  ;;  %v2303_v14 = vld [vmem:[%s7959_s22 + $0x860] sm:$0x3]  ;;  %vm753_vm8 = vcmp.lt.s32.totalorder %v8984_v9, 199608  ;;  %v9108_v45 = vadd.s32 %v7979_v5, %v361_v37  ;;  %v2108_v48 = vld [vmem:[%s7959_s22 + $0x248] sm:$0xff] }
  0xfa   : > { %7167 = vmatpush.xpose.msk.msra.mxu2 %vm750_vm1, %v2301_v56  ;;  %7151 = vmatmul.msk.f32.vlgmr.msrb.gmra.mxu0 %vm744_vm14, %v8809_v20  ;;  %v2306_v20 = vld [vmem:[%s7959_s22 + $0x878] sm:$0x3]  ;;  %v2109_v56 = vld [vmem:[%s7959_s22 + $0x250] sm:$0xff]  ;;  %v2315_v37 = vld [vmem:[%s7959_s22 + $0x8c0] sm:$0x3] }
  0xfb   : > { %7161 = vmatpush.xpose.msk.msra.mxu0 %vm748_vm2, %v2299_v54  ;;  %7170 = vmatpush.xpose.msk.msra.mxu3 %vm751_vm3, %v2302_v43  ;;  %v2107_v54 = vld [vmem:[%s7959_s22 + $0x240] sm:$0xff]  ;;  %v9105_v43 = vadd.s32 %v7979_v5, %v358_v23 }
  0xfc   : > { %7164 = vmatpush.xpose.msk.msra.mxu1 %vm749_vm4, %v2300_v46  ;;  %7160 = vmatmul.msk.f32.vlgmr.msrb.gmra.mxu3 %vm747_vm15, %v8817_v21  ;;  %v2304_v21 = vld [vmem:[%s7959_s22 + $0x868] sm:$0x3]  ;;  %vm763_vm15 = vcmp.lt.s32.totalorder %v9108_v45, 199608 }
  0xfd   : > { %7154 = vmatmul.msk.f32.vlgmr.msrb.gmra.mxu1 %vm745_vm0, %v8819_v58  ;;  %v9023_v58 = vadd.s32 %v7979_v5, %v356_v1  ;;  %v2853_v17 = vpop.f32.mrf.mxu0  ;;  %v362_v1 = vadd.s32 10240, %v7975_v2  ;;  %vm760_vm14 = vcmp.lt.s32.totalorder %v9105_v43, 199608 }
  0xfe   : > { %7168 = vmatpush.xpose.msk.msra.mxu2 %vm750_vm1, %v2101_v55  ;;  %v2873_v28 = vpop.f32.mrf.mxu1  ;;  %v2313_v55 = vld [vmem:[%s7959_s22 + $0x8b0] sm:$0x3] }
  0xff   : > { %7162 = vmatpush.xpose.msk.msra.mxu0 %vm748_vm2, %v2099_v61  ;;  %7171 = vmatpush.xpose.msk.msra.mxu3 %vm751_vm3, %v2102_v63  ;;  %vm758_vm9 = vcmp.lt.s32.totalorder %v9023_v58, 199608  ;;  %v2874_v40 = vadd.f32 %v2873_v28, %v2853_v17  ;;  %v9113_v61 = vadd.s32 %v7979_v5, %v359_v34  ;;  %v364_v63 = vadd.s32 10496, %v7975_v2  ;;  %v9117_v4 = vld.sshfl [vmem:[#allocation1 + $0x10] sm:$0xff pattern:$0x73625140]  ;;  %v2113_v17 = vld [vmem:[%s7959_s22 + $0x270] sm:$0xff] }
 0x100   : > { %7165 = vmatpush.xpose.msk.msra.mxu1 %vm749_vm4, %v2100_v60  ;;  %v9124_v60 = vld.sshfl [vmem:[#allocation1] sm:$0xff pattern:$0x73625140]  ;;  %v9160_v0 = vadd.s32 %v7979_v5, %v362_v1  ;;  %v368_v28 = vadd.s32 11008, %v7975_v2  ;;  %v2316_v58 = vld [vmem:[%s7959_s22 + $0x8c8] sm:$0x3] }
 0x101   : > { %7169 = vmatmul.msk.f32.vlgmr.msra.gmra.mxu2 %vm750_vm1, %v8884_v24  ;;  %v9076_v24 = vadd.s32 %v7979_v5, %v360_v27  ;;  %vm761_vm0 = vcmp.lt.s32.totalorder %v9113_v61, 199608  ;;  %v2318_v34 = vld [vmem:[%s7959_s22 + $0x8d8] sm:$0x3]  ;;  %v2116_v1 = vld [vmem:[%s7959_s22 + $0x288] sm:$0xff] }
 0x102   : > { %7179 = vmatpush.xpose.msk.msrb.mxu2 %vm754_vm5, %v2305_v18  ;;  %7163 = vmatmul.msk.f32.vlgmr.msra.gmra.mxu0 %vm748_vm2, %v8886_v33  ;;  %v9078_v33 = vld.sshfl [vmem:[#allocation1 + $0x30] sm:$0xff pattern:$0x73625140]  ;;  %vm764_vm2 = vcmp.lt.s32.totalorder %v9160_v0, 199608  ;;  %v377_v0 = vadd.s32 12160, %v7975_v2 }
 0x103   : > { %7173 = vmatpush.xpose.msk.msrb.mxu0 %vm752_vm6, %v2303_v14  ;;  %7182 = vmatpush.xpose.msk.msrb.mxu3 %vm755_vm7, %v2306_v20  ;;  %vm762_vm13 = vcmp.lt.s32.totalorder %v9076_v24, 199608  ;;  %v906_v18 = vld [vmem:[%s7953_s26 + $0xb0] sm:$0xff]  ;;  %v2322_v24 = vld [vmem:[%s7959_s22 + $0x8f8] sm:$0x3] }
 0x104   : > { %7176 = vmatpush.xpose.msk.msrb.mxu1 %vm753_vm8, %v2304_v21  ;;  %7172 = vmatmul.msk.f32.vlgmr.msra.gmra.mxu3 %vm751_vm3, %v8892_v35  ;;  %v9086_v35 = vld.sshfl [vmem:[#allocation1 + $0x38] sm:$0xff pattern:$0x73625140]  ;;  %v2893_v41 = vpop.f32.mrf.mxu2  ;;  %v9135_v21 = vld.sshfl [vmem:[#allocation1 + $0x8] sm:$0xff pattern:$0x73625140] }
 0x105   : > { %7166 = vmatmul.msk.f32.vlgmr.msra.gmra.mxu1 %vm749_vm4, %v8894_v36  ;;  %v9088_v36 = vld.sshfl [vmem:[#allocation1 + $0x28] sm:$0xff pattern:$0x73625140]  ;;  %v2894_v44 = vadd.f32 %v2893_v41, %v2874_v40  ;;  %v2913_v47 = vpop.f32.mrf.mxu3  ;;  %v9133_v20 = vld.sshfl [vmem:[#allocation1 + $0x18] sm:$0xff pattern:$0x73625140] }
 0x106   : > { %7180 = vmatpush.xpose.msk.msrb.mxu2 %vm754_vm5, %v2105_v25  ;;  %1486 = vst [vmem:[#allocation1 + $0x20] ss:$4 sm:$0xff] %v905_v39  ;;  %v9168_v25 = vadd.s32 %v7979_v5, %v365_v11  ;;  %v367_v39 = vadd.s32 10880, %v7975_v2  ;;  %v907_v40 = vld [vmem:[%s7953_s26 + $0xb8] sm:$0xff] }
 0x107   : > { %7174 = vmatpush.xpose.msk.msrb.mxu0 %vm752_vm6, %v2103_v26  ;;  %7183 = vmatpush.xpose.msk.msrb.mxu3 %vm755_vm7, %v2106_v29  ;;  %v2933_v52 = vpop.f32.mrf.mxu0  ;;  %v2914_v53 = vadd.f32 %v2913_v47, %v2894_v44  ;;  %1495 = vst [vmem:[#allocation1] ss:$4 sm:$0xff] %v906_v18  ;;  %v9171_v26 = vadd.s32 %v7979_v5, %v363_v62  ;;  %v372_v62 = vadd.s32 11520, %v7975_v2  ;;  %v370_v18 = vadd.s32 11264, %v7975_v2 }
 0x108   : > { %7177 = vmatpush.xpose.msk.msrb.mxu1 %vm753_vm8, %v2104_v30  ;;  %vm767_vm3 = vcmp.lt.s32.totalorder %v9168_v25, 199608  ;;  %v9243_v11 = vadd.s32 %v7979_v5, %v367_v39  ;;  %v2326_v39 = vld [vmem:[%s7959_s22 + $0x918] sm:$0x3] }
 0x109   : > { %v2934_v14 = vadd.f32 %v2933_v52, %v2914_v53  ;;  %7181 = vmatmul.msk.f32.vlgmr.msrb.gmra.mxu2 %vm754_vm5, %v8914_v42  ;;  %v2314_v42 = vld [vmem:[%s7959_s22 + $0x8b8] sm:$0x3]  ;;  %vm765_vm4 = vcmp.lt.s32.totalorder %v9171_v26, 199608  ;;  %v2117_v52 = vld [vmem:[%s7959_s22 + $0x290] sm:$0xff]  ;;  %v9290_v43 = vadd.s32 %v7979_v5, %v370_v18  ;;  %v2124_v18 = vld [vmem:[%s7959_s22 + $0x2c8] sm:$0xff] }
 0x10a   : > { %7191 = vmatpush.xpose.msk.msra.mxu2 %vm758_vm9, %v2309_v31  ;;  %v2953_v46 = vpop.f32.mrf.mxu1  ;;  %7175 = vmatmul.msk.f32.vlgmr.msrb.gmra.mxu0 %vm752_vm6, %v8920_v49  ;;  %v2111_v31 = vld [vmem:[%s7959_s22 + $0x260] sm:$0xff]  ;;  %v2118_v53 = vld [vmem:[%s7959_s22 + $0x298] sm:$0xff] }
 0x10b   : > { %7185 = vmatpush.xpose.msk.msra.mxu0 %vm756_vm10, %v2307_v19  ;;  %7194 = vmatpush.xpose.msk.msra.mxu3 %vm759_vm11, %v2310_v22  ;;  %v2954_v49 = vadd.f32 %v2953_v46, %v2934_v14  ;;  %v2114_v19 = vld [vmem:[%s7959_s22 + $0x278] sm:$0xff]  ;;  %v2112_v22 = vld [vmem:[%s7959_s22 + $0x268] sm:$0xff] }
 0x10c   : > { %7188 = vmatpush.xpose.msk.msra.mxu1 %vm757_vm12, %v2308_v32  ;;  %7184 = vmatmul.msk.f32.vlgmr.msrb.gmra.mxu3 %vm755_vm7, %v8922_v51  ;;  %v2312_v51 = vld [vmem:[%s7959_s22 + $0x8a8] sm:$0x3]  ;;  %v2973_v57 = vpop.f32.mrf.mxu2  ;;  %v2317_v32 = vld [vmem:[%s7959_s22 + $0x8d0] sm:$0x3] }
 0x10d   : > { %7178 = vmatmul.msk.f32.vlgmr.msrb.gmra.mxu1 %vm753_vm8, %v8927_v50  ;;  %v9157_v50 = vadd.s32 %v7979_v5, %v364_v63  ;;  %v2974_v3 = vadd.f32 %v2973_v57, %v2954_v49  ;;  %v9220_v16 = vld.sshfl [vmem:[#allocation1 + $0x38] sm:$0xff pattern:$0x73625140]  ;;  %v9222_v44 = vld.sshfl [vmem:[#allocation1 + $0x28] sm:$0xff pattern:$0x73625140] }
 0x10e   : > { %7192 = vmatpush.xpose.msk.msra.mxu2 %vm758_vm9, %v2109_v56  ;;  %v9247_v14 = vld.sshfl [vmem:[#allocation1 + $0x10] sm:$0xff pattern:$0x73625140]  ;;  %v373_v49 = vadd.s32 11648, %v7975_v2  ;;  %vm769_vm8 = vcmp.lt.s32.totalorder %v9243_v11, 199608 }
 0x10f   : > { %7186 = vmatpush.xpose.msk.msra.mxu0 %vm756_vm10, %v2107_v54  ;;  %7195 = vmatpush.xpose.msk.msra.mxu3 %vm759_vm11, %v2110_v59  ;;  %v2993_v9 = vpop.f32.mrf.mxu3  ;;  %v3013_v27 = vpop.f32.mrf.mxu0  ;;  %vm766_vm1 = vcmp.lt.s32.totalorder %v9157_v50, 199608  ;;  %v2115_v59 = vld [vmem:[%s7959_s22 + $0x280] sm:$0xff]  ;;  %v9254_v57 = vld.sshfl [vmem:[#allocation1] sm:$0xff pattern:$0x73625140] }
 0x110   : > { %7189 = vmatpush.xpose.msk.msra.mxu1 %vm757_vm12, %v2108_v48  ;;  %v2994_v29 = vadd.f32 %v2993_v9, %v2974_v3  ;;  %v9238_v48 = vadd.s32 %v7979_v5, %v369_v7  ;;  %v908_v3 = vld [vmem:[%s7953_s26 + $0xc0] sm:$0xff]  ;;  %v2324_v50 = vld [vmem:[%s7959_s22 + $0x908] sm:$0x3] }
 0x111   : > { %7193 = vmatmul.msk.f32.vlgmr.msra.gmra.mxu2 %vm758_vm9, %v8981_v8  ;;  %v9202_v8 = vadd.s32 %v7979_v5, %v368_v28  ;;  %v2121_v28 = vld [vmem:[%s7959_s22 + $0x2b0] sm:$0xff]  ;;  %v2323_v7 = vld [vmem:[%s7959_s22 + $0x900] sm:$0x3] }
 0x112   : > { %7203 = vmatpush.xpose.msk.msrb.mxu2 %vm762_vm13, %v2313_v55  ;;  %v3033_v30 = vpop.f32.mrf.mxu1  ;;  %v3014_v23 = vadd.f32 %v3013_v27, %v2994_v29  ;;  %7187 = vmatmul.msk.f32.vlgmr.msra.gmra.mxu0 %vm756_vm10, %v8986_v13  ;;  %v366_v13 = vadd.s32 10752, %v7975_v2  ;;  %v9265_v27 = vld.sshfl [vmem:[#allocation1 + $0x8] sm:$0xff pattern:$0x73625140]  ;;  %vm771_vm7 = vcmp.lt.s32.totalorder %v9238_v48, 199608  ;;  %v9298_v29 = vadd.s32 %v7979_v5, %v373_v49 }
 0x113   : > { %7197 = vmatpush.xpose.msk.msrb.mxu0 %vm760_vm14, %v2311_v10  ;;  %7206 = vmatpush.xpose.msk.msrb.mxu3 %vm763_vm15, %v2314_v42  ;;  %vm770_vm5 = vcmp.lt.s32.totalorder %v9202_v8, 199608  ;;  %v2321_v10 = vld [vmem:[%s7959_s22 + $0x8f0] sm:$0x3]  ;;  %v2319_v42 = vld [vmem:[%s7959_s22 + $0x8e0] sm:$0x3]  ;;  %vm772_vm10 = vcmp.lt.s32.totalorder %v9290_v43, 199608 }
 0x114   : > { %7200 = vmatpush.xpose.msk.msrb.mxu1 %vm761_vm0, %v2312_v51  ;;  %7196 = vmatmul.msk.f32.vlgmr.msra.gmra.mxu3 %vm759_vm11, %v8988_v6  ;;  %v3034_v41 = vadd.f32 %v3033_v30, %v3014_v23  ;;  %v9212_v6 = vld.sshfl [vmem:[#allocation1 + $0x30] sm:$0xff pattern:$0x73625140]  ;;  %v3053_v15 = vpop.f32.mrf.mxu2  ;;  %v9235_v46 = vadd.s32 %v7979_v5, %v366_v13  ;;  %v371_v51 = vadd.s32 11392, %v7975_v2  ;;  %vm775_vm11 = vcmp.lt.s32.totalorder %v9298_v29, 199608 }
 0x115   : > { %7190 = vmatmul.msk.f32.vlgmr.msra.gmra.mxu1 %vm757_vm12, %v8994_v12  ;;  %v9214_v12 = vld.sshfl [vmem:[#allocation1 + $0x20] sm:$0xff pattern:$0x73625140]  ;;  %v2119_v23 = vld [vmem:[%s7959_s22 + $0x2a0] sm:$0xff]  ;;  %v385_v43 = vadd.s32 13184, %v7975_v2 }
 0x116   : > { %7204 = vmatpush.xpose.msk.msrb.mxu2 %vm762_vm13, %v2113_v17  ;;  %v3054_v47 = vadd.f32 %v3053_v15, %v3034_v41  ;;  %1496 = vst [vmem:[#allocation1 + $0x20] ss:$4 sm:$0xff] %v907_v40  ;;  %v9263_v17 = vld.sshfl [vmem:[#allocation1 + $0x18] sm:$0xff pattern:$0x73625140]  ;;  %vm768_vm6 = vcmp.lt.s32.totalorder %v9235_v46, 199608  ;;  %v9301_v30 = vadd.s32 %v7979_v5, %v371_v51 }
 0x117   : > { %7198 = vmatpush.xpose.msk.msrb.mxu0 %vm760_vm14, %v2111_v31  ;;  %7207 = vmatpush.xpose.msk.msrb.mxu3 %vm763_vm15, %v2114_v19  ;;  %v3073_v56 = vpop.f32.mrf.mxu3  ;;  %v3093_v54 = vpop.f32.mrf.mxu0  ;;  %1505 = vst [vmem:[#allocation1] ss:$4 sm:$0xff] %v908_v3  ;;  %v376_v19 = vadd.s32 12032, %v7975_v2  ;;  %v375_v40 = vadd.s32 11904, %v7975_v2  ;;  %v909_v41 = vld [vmem:[%s7953_s26 + $0xc8] sm:$0xff]  ;;  %v380_v51 = vadd.s32 12544, %v7975_v2 }
 0x118   : > { %7201 = vmatpush.xpose.msk.msrb.mxu1 %vm761_vm0, %v2112_v22  ;;  %v3074_v55 = vadd.f32 %v3073_v56, %v3054_v47  ;;  %vm773_vm12 = vcmp.lt.s32.totalorder %v9301_v30, 199608  ;;  %v378_v3 = vadd.s32 12288, %v7975_v2  ;;  %v2330_v8 = vld [vmem:[%s7959_s22 + $0x938] sm:$0x3] }
 0x119   : > { %7205 = vmatmul.msk.f32.vlgmr.msrb.gmra.mxu2 %vm762_vm13, %v9078_v33  ;;  %v9373_v49 = vadd.s32 %v7979_v5, %v375_v40  ;;  %v2334_v40 = vld [vmem:[%s7959_s22 + $0x958] sm:$0x3] }
 0x11a   : > { %7215 = vmatpush.xpose.msk.msra.mxu2 %vm766_vm1, %v2317_v32  ;;  %v3113_v63 = vpop.f32.mrf.mxu1  ;;  %v3094_v9 = vadd.f32 %v3093_v54, %v3074_v55  ;;  %7199 = vmatmul.msk.f32.vlgmr.msrb.gmra.mxu0 %vm760_vm14, %v9080_v38  ;;  %v2320_v38 = vld [vmem:[%s7959_s22 + $0x8e8] sm:$0x3]  ;;  %v2125_v54 = vld [vmem:[%s7959_s22 + $0x2d0] sm:$0xff]  ;;  %v2126_v55 = vld [vmem:[%s7959_s22 + $0x2d8] sm:$0xff]  ;;  %v9420_v46 = vadd.s32 %v7979_v5, %v378_v3 }
 0x11b   : > { %7209 = vmatpush.xpose.msk.msra.mxu0 %vm764_vm2, %v2315_v37  ;;  %7218 = vmatpush.xpose.msk.msra.mxu3 %vm767_vm3, %v2318_v34  ;;  %v2122_v37 = vld [vmem:[%s7959_s22 + $0x2b8] sm:$0xff]  ;;  %v2120_v34 = vld [vmem:[%s7959_s22 + $0x2a8] sm:$0xff] }
 0x11c   : > { %7212 = vmatpush.xpose.msk.msra.mxu1 %vm765_vm4, %v2316_v58  ;;  %7208 = vmatmul.msk.f32.vlgmr.msrb.gmra.mxu3 %vm763_vm15, %v9086_v35  ;;  %v3114_v33 = vadd.f32 %v3113_v63, %v3094_v9  ;;  %v3133_v35 = vpop.f32.mrf.mxu2  ;;  %v2325_v58 = vld [vmem:[%s7959_s22 + $0x910] sm:$0x3]  ;;  %v2132_v3 = vld [vmem:[%s7959_s22 + $0x308] sm:$0xff] }
 0x11d   : > { %7202 = vmatmul.msk.f32.vlgmr.msrb.gmra.mxu1 %vm761_vm0, %v9088_v36  ;;  %v9287_v36 = vadd.s32 %v7979_v5, %v372_v62  ;;  %v9350_v26 = vld.sshfl [vmem:[#allocation1 + $0x38] sm:$0xff pattern:$0x73625140]  ;;  %v9352_v47 = vld.sshfl [vmem:[#allocation1 + $0x28] sm:$0xff pattern:$0x73625140] }
 0x11e   : > { %7216 = vmatpush.xpose.msk.msra.mxu2 %vm766_vm1, %v2117_v52  ;;  %v3134_v45 = vadd.f32 %v3133_v35, %v3114_v33  ;;  %v9377_v9 = vld.sshfl [vmem:[#allocation1 + $0x10] sm:$0xff pattern:$0x73625140]  ;;  %v381_v33 = vadd.s32 12672, %v7975_v2  ;;  %vm777_vm0 = vcmp.lt.s32.totalorder %v9373_v49, 199608 }
 0x11f   : > { %7210 = vmatpush.xpose.msk.msra.mxu0 %vm764_vm2, %v2115_v59  ;;  %7219 = vmatpush.xpose.msk.msra.mxu3 %vm767_vm3, %v2118_v53  ;;  %v3153_v61 = vpop.f32.mrf.mxu3  ;;  %v3173_v31 = vpop.f32.mrf.mxu0  ;;  %vm774_vm9 = vcmp.lt.s32.totalorder %v9287_v36, 199608  ;;  %v2123_v53 = vld [vmem:[%s7959_s22 + $0x2c0] sm:$0xff]  ;;  %v9384_v35 = vld.sshfl [vmem:[#allocation1] sm:$0xff pattern:$0x73625140] }
 0x120   : > { %7213 = vmatpush.xpose.msk.msra.mxu1 %vm765_vm4, %v2116_v1  ;;  %v3154_v22 = vadd.f32 %v3153_v61, %v3134_v45  ;;  %v9368_v1 = vadd.s32 %v7979_v5, %v377_v0  ;;  %v910_v45 = vld [vmem:[%s7953_s26 + $0xd0] sm:$0xff]  ;;  %v2332_v36 = vld [vmem:[%s7959_s22 + $0x948] sm:$0x3] }
 0x121   : > { %7217 = vmatmul.msk.f32.vlgmr.msra.gmra.mxu2 %vm766_vm1, %v9117_v4  ;;  %v9332_v4 = vadd.s32 %v7979_v5, %v376_v19  ;;  %v2129_v19 = vld [vmem:[%s7959_s22 + $0x2f0] sm:$0xff]  ;;  %v2331_v0 = vld [vmem:[%s7959_s22 + $0x940] sm:$0x3] }
 0x122   : > { %7227 = vmatpush.xpose.msk.msrb.mxu2 %vm770_vm5, %v2321_v10  ;;  %v3193_v32 = vpop.f32.mrf.mxu1  ;;  %v3174_v13 = vadd.f32 %v3173_v31, %v3154_v22  ;;  %7211 = vmatmul.msk.f32.vlgmr.msra.gmra.mxu0 %vm764_vm2, %v9124_v60  ;;  %v374_v60 = vadd.s32 11776, %v7975_v2  ;;  %v9395_v31 = vld.sshfl [vmem:[#allocation1 + $0x8] sm:$0xff pattern:$0x73625140]  ;;  %vm779_vm15 = vcmp.lt.s32.totalorder %v9368_v1, 199608  ;;  %v9428_v22 = vadd.s32 %v7979_v5, %v381_v33 }
 0x123   : > { %7221 = vmatpush.xpose.msk.msrb.mxu0 %vm768_vm6, %v2319_v42  ;;  %7230 = vmatpush.xpose.msk.msrb.mxu3 %vm771_vm7, %v2322_v24  ;;  %vm778_vm13 = vcmp.lt.s32.totalorder %v9332_v4, 199608  ;;  %v2329_v42 = vld [vmem:[%s7959_s22 + $0x930] sm:$0x3]  ;;  %v2327_v24 = vld [vmem:[%s7959_s22 + $0x920] sm:$0x3]  ;;  %vm780_vm2 = vcmp.lt.s32.totalorder %v9420_v46, 199608 }
 0x124   : > { %7224 = vmatpush.xpose.msk.msrb.mxu1 %vm769_vm8, %v2320_v38  ;;  %7220 = vmatmul.msk.f32.vlgmr.msra.gmra.mxu3 %vm767_vm3, %v9133_v20  ;;  %v3194_v15 = vadd.f32 %v3193_v32, %v3174_v13  ;;  %v9342_v20 = vld.sshfl [vmem:[#allocation1 + $0x30] sm:$0xff pattern:$0x73625140]  ;;  %v3213_v25 = vpop.f32.mrf.mxu2  ;;  %v9365_v63 = vadd.s32 %v7979_v5, %v374_v60  ;;  %v379_v38 = vadd.s32 12416, %v7975_v2  ;;  %vm783_vm3 = vcmp.lt.s32.totalorder %v9428_v22, 199608 }
 0x125   : > { %7214 = vmatmul.msk.f32.vlgmr.msra.gmra.mxu1 %vm765_vm4, %v9135_v21  ;;  %v9344_v21 = vld.sshfl [vmem:[#allocation1 + $0x20] sm:$0xff pattern:$0x73625140]  ;;  %v2127_v13 = vld [vmem:[%s7959_s22 + $0x2e0] sm:$0xff]  ;;  %v393_v46 = vadd.s32 14208, %v7975_v2 }
 0x126   : > { %7228 = vmatpush.xpose.msk.msrb.mxu2 %vm770_vm5, %v2121_v28  ;;  %v3214_v56 = vadd.f32 %v3213_v25, %v3194_v15  ;;  %1506 = vst [vmem:[#allocation1 + $0x20] ss:$4 sm:$0xff] %v909_v41  ;;  %v9393_v28 = vld.sshfl [vmem:[#allocation1 + $0x18] sm:$0xff pattern:$0x73625140]  ;;  %vm776_vm14 = vcmp.lt.s32.totalorder %v9365_v63, 199608  ;;  %v9431_v32 = vadd.s32 %v7979_v5, %v379_v38 }
 0x127   : > { %7222 = vmatpush.xpose.msk.msrb.mxu0 %vm768_vm6, %v2119_v23  ;;  %7231 = vmatpush.xpose.msk.msrb.mxu3 %vm771_vm7, %v2122_v37  ;;  %v3233_v52 = vpop.f32.mrf.mxu3  ;;  %v3253_v59 = vpop.f32.mrf.mxu0  ;;  %1515 = vst [vmem:[#allocation1] ss:$4 sm:$0xff] %v910_v45  ;;  %v384_v37 = vadd.s32 13056, %v7975_v2  ;;  %v383_v41 = vadd.s32 12928, %v7975_v2  ;;  %v911_v15 = vld [vmem:[%s7953_s26 + $0xd8] sm:$0xff]  ;;  %v388_v38 = vadd.s32 13568, %v7975_v2 }
 0x128   : > { %7225 = vmatpush.xpose.msk.msrb.mxu1 %vm769_vm8, %v2120_v34  ;;  %v3234_v10 = vadd.f32 %v3233_v52, %v3214_v56  ;;  %vm781_vm4 = vcmp.lt.s32.totalorder %v9431_v32, 199608  ;;  %v386_v45 = vadd.s32 13312, %v7975_v2  ;;  %v2338_v4 = vld [vmem:[%s7959_s22 + $0x978] sm:$0x3] }
 0x129   : > { %7229 = vmatmul.msk.f32.vlgmr.msrb.gmra.mxu2 %vm770_vm5, %v9212_v6  ;;  %v9503_v33 = vadd.s32 %v7979_v5, %v383_v41  ;;  %v2342_v41 = vld [vmem:[%s7959_s22 + $0x998] sm:$0x3] }
 0x12a   : > { %7239 = vmatpush.xpose.msk.msra.mxu2 %vm774_vm9, %v2325_v58  ;;  %v3273_v62 = vpop.f32.mrf.mxu1  ;;  %v3254_v61 = vadd.f32 %v3253_v59, %v3234_v10  ;;  %7223 = vmatmul.msk.f32.vlgmr.msrb.gmra.mxu0 %vm768_vm6, %v9214_v12  ;;  %v2328_v12 = vld [vmem:[%s7959_s22 + $0x928] sm:$0x3]  ;;  %v2133_v59 = vld [vmem:[%s7959_s22 + $0x310] sm:$0xff]  ;;  %v2134_v10 = vld [vmem:[%s7959_s22 + $0x318] sm:$0xff]  ;;  %v9550_v63 = vadd.s32 %v7979_v5, %v386_v45 }
 0x12b   : > { %7233 = vmatpush.xpose.msk.msra.mxu0 %vm772_vm10, %v2323_v7  ;;  %7242 = vmatpush.xpose.msk.msra.mxu3 %vm775_vm11, %v2326_v39  ;;  %v2130_v7 = vld [vmem:[%s7959_s22 + $0x2f8] sm:$0xff]  ;;  %v2128_v39 = vld [vmem:[%s7959_s22 + $0x2e8] sm:$0xff] }
 0x12c   : > { %7236 = vmatpush.xpose.msk.msra.mxu1 %vm773_vm12, %v2324_v50  ;;  %7232 = vmatmul.msk.f32.vlgmr.msrb.gmra.mxu3 %vm771_vm7, %v9220_v16  ;;  %v3274_v6 = vadd.f32 %v3273_v62, %v3254_v61  ;;  %v3293_v16 = vpop.f32.mrf.mxu2  ;;  %v2333_v50 = vld [vmem:[%s7959_s22 + $0x950] sm:$0x3]  ;;  %v2140_v45 = vld [vmem:[%s7959_s22 + $0x348] sm:$0xff] }
 0x12d   : > { %7226 = vmatmul.msk.f32.vlgmr.msrb.gmra.mxu1 %vm769_vm8, %v9222_v44  ;;  %v9417_v44 = vadd.s32 %v7979_v5, %v380_v51  ;;  %v9480_v30 = vld.sshfl [vmem:[#allocation1 + $0x38] sm:$0xff pattern:$0x73625140]  ;;  %v9482_v56 = vld.sshfl [vmem:[#allocation1 + $0x28] sm:$0xff pattern:$0x73625140] }
 0x12e   : > { %7240 = vmatpush.xpose.msk.msra.mxu2 %vm774_vm9, %v2125_v54  ;;  %v3294_v48 = vadd.f32 %v3293_v16, %v3274_v6  ;;  %v9507_v61 = vld.sshfl [vmem:[#allocation1 + $0x10] sm:$0xff pattern:$0x73625140]  ;;  %v389_v6 = vadd.s32 13696, %v7975_v2  ;;  %vm785_vm8 = vcmp.lt.s32.totalorder %v9503_v33, 199608 }
 0x12f   : > { %7234 = vmatpush.xpose.msk.msra.mxu0 %vm772_vm10, %v2123_v53  ;;  %7243 = vmatpush.xpose.msk.msra.mxu3 %vm775_vm11, %v2126_v55  ;;  %v3313_v11 = vpop.f32.mrf.mxu3  ;;  %v3333_v23 = vpop.f32.mrf.mxu0  ;;  %vm782_vm1 = vcmp.lt.s32.totalorder %v9417_v44, 199608  ;;  %v2131_v55 = vld [vmem:[%s7959_s22 + $0x300] sm:$0xff]  ;;  %v9514_v16 = vld.sshfl [vmem:[#allocation1] sm:$0xff pattern:$0x73625140] }
 0x130   : > { %7237 = vmatpush.xpose.msk.msra.mxu1 %vm773_vm12, %v2124_v18  ;;  %v3314_v34 = vadd.f32 %v3313_v11, %v3294_v48  ;;  %v9498_v18 = vadd.s32 %v7979_v5, %v385_v43  ;;  %v912_v48 = vld [vmem:[%s7953_s26 + $0xe0] sm:$0xff]  ;;  %v2340_v44 = vld [vmem:[%s7959_s22 + $0x988] sm:$0x3] }
 0x131   : > { %7241 = vmatmul.msk.f32.vlgmr.msra.gmra.mxu2 %vm774_vm9, %v9247_v14  ;;  %v9462_v14 = vadd.s32 %v7979_v5, %v384_v37  ;;  %v2137_v37 = vld [vmem:[%s7959_s22 + $0x330] sm:$0xff]  ;;  %v2339_v43 = vld [vmem:[%s7959_s22 + $0x980] sm:$0x3] }
 0x132   : > { %7251 = vmatpush.xpose.msk.msrb.mxu2 %vm778_vm13, %v2329_v42  ;;  %v3353_v58 = vpop.f32.mrf.mxu1  ;;  %v3334_v60 = vadd.f32 %v3333_v23, %v3314_v34  ;;  %7235 = vmatmul.msk.f32.vlgmr.msra.gmra.mxu0 %vm772_vm10, %v9254_v57  ;;  %v382_v57 = vadd.s32 12800, %v7975_v2  ;;  %v9525_v23 = vld.sshfl [vmem:[#allocation1 + $0x8] sm:$0xff pattern:$0x73625140]  ;;  %vm787_vm7 = vcmp.lt.s32.totalorder %v9498_v18, 199608  ;;  %v9558_v34 = vadd.s32 %v7979_v5, %v389_v6 }
 0x133   : > { %7245 = vmatpush.xpose.msk.msrb.mxu0 %vm776_vm14, %v2327_v24  ;;  %7254 = vmatpush.xpose.msk.msrb.mxu3 %vm779_vm15, %v2330_v8  ;;  %vm786_vm5 = vcmp.lt.s32.totalorder %v9462_v14, 199608  ;;  %v2337_v24 = vld [vmem:[%s7959_s22 + $0x970] sm:$0x3]  ;;  %v2335_v8 = vld [vmem:[%s7959_s22 + $0x960] sm:$0x3]  ;;  %vm788_vm10 = vcmp.lt.s32.totalorder %v9550_v63, 199608 }
 0x134   : > { %7248 = vmatpush.xpose.msk.msrb.mxu1 %vm777_vm0, %v2328_v12  ;;  %7244 = vmatmul.msk.f32.vlgmr.msra.gmra.mxu3 %vm775_vm11, %v9263_v17  ;;  %v3354_v25 = vadd.f32 %v3353_v58, %v3334_v60  ;;  %v9472_v17 = vld.sshfl [vmem:[#allocation1 + $0x30] sm:$0xff pattern:$0x73625140]  ;;  %v3373_v29 = vpop.f32.mrf.mxu2  ;;  %v9495_v62 = vadd.s32 %v7979_v5, %v382_v57  ;;  %v387_v12 = vadd.s32 13440, %v7975_v2  ;;  %vm791_vm11 = vcmp.lt.s32.totalorder %v9558_v34, 199608 }
 0x135   : > { %7238 = vmatmul.msk.f32.vlgmr.msra.gmra.mxu1 %vm773_vm12, %v9265_v27  ;;  %v9474_v27 = vld.sshfl [vmem:[#allocation1 + $0x20] sm:$0xff pattern:$0x73625140]  ;;  %v2135_v60 = vld [vmem:[%s7959_s22 + $0x320] sm:$0xff]  ;;  %v401_v63 = vadd.s32 15232, %v7975_v2 }
 0x136   : > { %7252 = vmatpush.xpose.msk.msrb.mxu2 %vm778_vm13, %v2129_v19  ;;  %v3374_v52 = vadd.f32 %v3373_v29, %v3354_v25  ;;  %1516 = vst [vmem:[#allocation1 + $0x20] ss:$4 sm:$0xff] %v911_v15  ;;  %v9523_v19 = vld.sshfl [vmem:[#allocation1 + $0x18] sm:$0xff pattern:$0x73625140]  ;;  %vm784_vm6 = vcmp.lt.s32.totalorder %v9495_v62, 199608  ;;  %v9561_v58 = vadd.s32 %v7979_v5, %v387_v12 }
 0x137   : > { %7246 = vmatpush.xpose.msk.msrb.mxu0 %vm776_vm14, %v2127_v13  ;;  %7255 = vmatpush.xpose.msk.msrb.mxu3 %vm779_vm15, %v2130_v7  ;;  %v3393_v54 = vpop.f32.mrf.mxu3  ;;  %v3413_v53 = vpop.f32.mrf.mxu0  ;;  %1525 = vst [vmem:[#allocation1] ss:$4 sm:$0xff] %v912_v48  ;;  %v392_v7 = vadd.s32 14080, %v7975_v2  ;;  %v391_v15 = vadd.s32 13952, %v7975_v2  ;;  %v913_v25 = vld [vmem:[%s7953_s26 + $0xe8] sm:$0xff]  ;;  %v396_v12 = vadd.s32 14592, %v7975_v2 }
 0x138   : > { %7249 = vmatpush.xpose.msk.msrb.mxu1 %vm777_vm0, %v2128_v39  ;;  %v3394_v42 = vadd.f32 %v3393_v54, %v3374_v52  ;;  %vm789_vm12 = vcmp.lt.s32.totalorder %v9561_v58, 199608  ;;  %v394_v48 = vadd.s32 14336, %v7975_v2  ;;  %v2346_v14 = vld [vmem:[%s7959_s22 + $0x9b8] sm:$0x3] }
 0x139   : > { %7253 = vmatmul.msk.f32.vlgmr.msrb.gmra.mxu2 %vm778_vm13, %v9342_v20  ;;  %v9633_v6 = vadd.s32 %v7979_v5, %v391_v15  ;;  %v2350_v15 = vld [vmem:[%s7959_s22 + $0x9d8] sm:$0x3] }
 0x13a   : > { %7263 = vmatpush.xpose.msk.msra.mxu2 %vm782_vm1, %v2333_v50  ;;  %v3433_v51 = vpop.f32.mrf.mxu1  ;;  %v3414_v11 = vadd.f32 %v3413_v53, %v3394_v42  ;;  %7247 = vmatmul.msk.f32.vlgmr.msrb.gmra.mxu0 %vm776_vm14, %v9344_v21  ;;  %v2336_v21 = vld [vmem:[%s7959_s22 + $0x968] sm:$0x3]  ;;  %v2141_v53 = vld [vmem:[%s7959_s22 + $0x350] sm:$0xff]  ;;  %v2142_v42 = vld [vmem:[%s7959_s22 + $0x358] sm:$0xff]  ;;  %v9680_v62 = vadd.s32 %v7979_v5, %v394_v48 }
 0x13b   : > { %7257 = vmatpush.xpose.msk.msra.mxu0 %vm780_vm2, %v2331_v0  ;;  %7266 = vmatpush.xpose.msk.msra.mxu3 %vm783_vm3, %v2334_v40  ;;  %v2138_v0 = vld [vmem:[%s7959_s22 + $0x338] sm:$0xff]  ;;  %v2136_v40 = vld [vmem:[%s7959_s22 + $0x328] sm:$0xff] }
 0x13c   : > { %7260 = vmatpush.xpose.msk.msra.mxu1 %vm781_vm4, %v2332_v36  ;;  %7256 = vmatmul.msk.f32.vlgmr.msrb.gmra.mxu3 %vm779_vm15, %v9350_v26  ;;  %v3434_v20 = vadd.f32 %v3433_v51, %v3414_v11  ;;  %v3453_v26 = vpop.f32.mrf.mxu2  ;;  %v2341_v36 = vld [vmem:[%s7959_s22 + $0x990] sm:$0x3]  ;;  %v2148_v48 = vld [vmem:[%s7959_s22 + $0x388] sm:$0xff] }
 0x13d   : > { %7250 = vmatmul.msk.f32.vlgmr.msrb.gmra.mxu1 %vm777_vm0, %v9352_v47  ;;  %v9547_v47 = vadd.s32 %v7979_v5, %v388_v38  ;;  %v9610_v32 = vld.sshfl [vmem:[#allocation1 + $0x38] sm:$0xff pattern:$0x73625140]  ;;  %v9612_v52 = vld.sshfl [vmem:[#allocation1 + $0x28] sm:$0xff pattern:$0x73625140] }
 0x13e   : > { %7264 = vmatpush.xpose.msk.msra.mxu2 %vm782_vm1, %v2133_v59  ;;  %v3454_v1 = vadd.f32 %v3453_v26, %v3434_v20  ;;  %v9637_v11 = vld.sshfl [vmem:[#allocation1 + $0x10] sm:$0xff pattern:$0x73625140]  ;;  %v397_v20 = vadd.s32 14720, %v7975_v2  ;;  %vm793_vm0 = vcmp.lt.s32.totalorder %v9633_v6, 199608 }
 0x13f   : > { %7258 = vmatpush.xpose.msk.msra.mxu0 %vm780_vm2, %v2131_v55  ;;  %7267 = vmatpush.xpose.msk.msra.mxu3 %vm783_vm3, %v2134_v10  ;;  %v3473_v49 = vpop.f32.mrf.mxu3  ;;  %v3493_v13 = vpop.f32.mrf.mxu0  ;;  %vm790_vm9 = vcmp.lt.s32.totalorder %v9547_v47, 199608  ;;  %v2139_v10 = vld [vmem:[%s7959_s22 + $0x340] sm:$0xff]  ;;  %v9644_v26 = vld.sshfl [vmem:[#allocation1] sm:$0xff pattern:$0x73625140] }
 0x140   : > { %7261 = vmatpush.xpose.msk.msra.mxu1 %vm781_vm4, %v2132_v3  ;;  %v3474_v39 = vadd.f32 %v3473_v49, %v3454_v1  ;;  %v9628_v3 = vadd.s32 %v7979_v5, %v393_v46  ;;  %v914_v1 = vld [vmem:[%s7953_s26 + $0xf0] sm:$0xff]  ;;  %v2348_v47 = vld [vmem:[%s7959_s22 + $0x9c8] sm:$0x3] }
 0x141   : > { %7265 = vmatmul.msk.f32.vlgmr.msra.gmra.mxu2 %vm782_vm1, %v9377_v9  ;;  %v9592_v9 = vadd.s32 %v7979_v5, %v392_v7  ;;  %v2145_v7 = vld [vmem:[%s7959_s22 + $0x370] sm:$0xff]  ;;  %v2347_v46 = vld [vmem:[%s7959_s22 + $0x9c0] sm:$0x3] }
 0x142   : > { %7275 = vmatpush.xpose.msk.msrb.mxu2 %vm786_vm5, %v2337_v24  ;;  %v3513_v50 = vpop.f32.mrf.mxu1  ;;  %v3494_v57 = vadd.f32 %v3493_v13, %v3474_v39  ;;  %7259 = vmatmul.msk.f32.vlgmr.msra.gmra.mxu0 %vm780_vm2, %v9384_v35  ;;  %v390_v35 = vadd.s32 13824, %v7975_v2  ;;  %v9655_v13 = vld.sshfl [vmem:[#allocation1 + $0x8] sm:$0xff pattern:$0x73625140]  ;;  %vm795_vm15 = vcmp.lt.s32.totalorder %v9628_v3, 199608  ;;  %v9688_v39 = vadd.s32 %v7979_v5, %v397_v20 }
 0x143   : > { %7269 = vmatpush.xpose.msk.msrb.mxu0 %vm784_vm6, %v2335_v8  ;;  %7278 = vmatpush.xpose.msk.msrb.mxu3 %vm787_vm7, %v2338_v4  ;;  %vm794_vm13 = vcmp.lt.s32.totalorder %v9592_v9, 199608  ;;  %v2345_v8 = vld [vmem:[%s7959_s22 + $0x9b0] sm:$0x3]  ;;  %v2343_v4 = vld [vmem:[%s7959_s22 + $0x9a0] sm:$0x3]  ;;  %vm796_vm2 = vcmp.lt.s32.totalorder %v9680_v62, 199608 }
 0x144   : > { %7272 = vmatpush.xpose.msk.msrb.mxu1 %vm785_vm8, %v2336_v21  ;;  %7268 = vmatmul.msk.f32.vlgmr.msra.gmra.mxu3 %vm783_vm3, %v9393_v28  ;;  %v3514_v29 = vadd.f32 %v3513_v50, %v3494_v57  ;;  %v9602_v28 = vld.sshfl [vmem:[#allocation1 + $0x30] sm:$0xff pattern:$0x73625140]  ;;  %v3533_v22 = vpop.f32.mrf.mxu2  ;;  %v9625_v51 = vadd.s32 %v7979_v5, %v390_v35  ;;  %v395_v21 = vadd.s32 14464, %v7975_v2  ;;  %vm799_vm3 = vcmp.lt.s32.totalorder %v9688_v39, 199608 }
 0x145   : > { %7262 = vmatmul.msk.f32.vlgmr.msra.gmra.mxu1 %vm781_vm4, %v9395_v31  ;;  %v9604_v31 = vld.sshfl [vmem:[#allocation1 + $0x20] sm:$0xff pattern:$0x73625140]  ;;  %v2143_v57 = vld [vmem:[%s7959_s22 + $0x360] sm:$0xff]  ;;  %v409_v62 = vadd.s32 16256, %v7975_v2 }
 0x146   : > { %7276 = vmatpush.xpose.msk.msrb.mxu2 %vm786_vm5, %v2137_v37  ;;  %v3534_v54 = vadd.f32 %v3533_v22, %v3514_v29  ;;  %1526 = vst [vmem:[#allocation1 + $0x20] ss:$4 sm:$0xff] %v913_v25  ;;  %v9653_v37 = vld.sshfl [vmem:[#allocation1 + $0x18] sm:$0xff pattern:$0x73625140]  ;;  %vm792_vm14 = vcmp.lt.s32.totalorder %v9625_v51, 199608  ;;  %v9691_v50 = vadd.s32 %v7979_v5, %v395_v21 }
 0x147   : > { %7270 = vmatpush.xpose.msk.msrb.mxu0 %vm784_vm6, %v2135_v60  ;;  %7279 = vmatpush.xpose.msk.msrb.mxu3 %vm787_vm7, %v2138_v0  ;;  %v3553_v59 = vpop.f32.mrf.mxu3  ;;  %v3573_v55 = vpop.f32.mrf.mxu0  ;;  %1535 = vst [vmem:[#allocation1] ss:$4 sm:$0xff] %v914_v1  ;;  %v400_v0 = vadd.s32 15104, %v7975_v2  ;;  %v399_v25 = vadd.s32 14976, %v7975_v2  ;;  %v915_v29 = vld [vmem:[%s7953_s26 + $0xf8] sm:$0xff]  ;;  %v404_v21 = vadd.s32 15616, %v7975_v2 }
 0x148   : > { %7273 = vmatpush.xpose.msk.msrb.mxu1 %vm785_vm8, %v2136_v40  ;;  %v3554_v24 = vadd.f32 %v3553_v59, %v3534_v54  ;;  %vm797_vm4 = vcmp.lt.s32.totalorder %v9691_v50, 199608  ;;  %v402_v1 = vadd.s32 15360, %v7975_v2  ;;  %v2354_v9 = vld [vmem:[%s7959_s22 + $0x9f8] sm:$0x3] }
 0x149   : > { %7277 = vmatmul.msk.f32.vlgmr.msrb.gmra.mxu2 %vm786_vm5, %v9472_v17  ;;  %v9763_v20 = vadd.s32 %v7979_v5, %v399_v25  ;;  %v2358_v25 = vld [vmem:[%s7959_s22 + $0xa18] sm:$0x3] }
 0x14a   : > { %7287 = vmatpush.xpose.msk.msra.mxu2 %vm790_vm9, %v2341_v36  ;;  %v3593_v38 = vpop.f32.mrf.mxu1  ;;  %v3574_v49 = vadd.f32 %v3573_v55, %v3554_v24  ;;  %7271 = vmatmul.msk.f32.vlgmr.msrb.gmra.mxu0 %vm784_vm6, %v9474_v27  ;;  %v2344_v27 = vld [vmem:[%s7959_s22 + $0x9a8] sm:$0x3]  ;;  %v2149_v55 = vld [vmem:[%s7959_s22 + $0x390] sm:$0xff]  ;;  %v2150_v24 = vld [vmem:[%s7959_s22 + $0x398] sm:$0xff]  ;;  %v9810_v51 = vadd.s32 %v7979_v5, %v402_v1 }
 0x14b   : > { %7281 = vmatpush.xpose.msk.msra.mxu0 %vm788_vm10, %v2339_v43  ;;  %7290 = vmatpush.xpose.msk.msra.mxu3 %vm791_vm11, %v2342_v41  ;;  %v2146_v43 = vld [vmem:[%s7959_s22 + $0x378] sm:$0xff]  ;;  %v2144_v41 = vld [vmem:[%s7959_s22 + $0x368] sm:$0xff] }
 0x14c   : > { %7284 = vmatpush.xpose.msk.msra.mxu1 %vm789_vm12, %v2340_v44  ;;  %7280 = vmatmul.msk.f32.vlgmr.msrb.gmra.mxu3 %vm787_vm7, %v9480_v30  ;;  %v3594_v17 = vadd.f32 %v3593_v38, %v3574_v49  ;;  %v3613_v30 = vpop.f32.mrf.mxu2  ;;  %v2349_v44 = vld [vmem:[%s7959_s22 + $0x9d0] sm:$0x3]  ;;  %v2156_v1 = vld [vmem:[%s7959_s22 + $0x3c8] sm:$0xff] }
 0x14d   : > { %7274 = vmatmul.msk.f32.vlgmr.msrb.gmra.mxu1 %vm785_vm8, %v9482_v56  ;;  %v9677_v56 = vadd.s32 %v7979_v5, %v396_v12  ;;  %v9740_v58 = vld.sshfl [vmem:[#allocation1 + $0x38] sm:$0xff pattern:$0x73625140]  ;;  %v9742_v54 = vld.sshfl [vmem:[#allocation1 + $0x28] sm:$0xff pattern:$0x73625140] }
 0x14e   : > { %7288 = vmatpush.xpose.msk.msra.mxu2 %vm790_vm9, %v2141_v53  ;;  %v3614_v18 = vadd.f32 %v3613_v30, %v3594_v17  ;;  %v9767_v49 = vld.sshfl [vmem:[#allocation1 + $0x10] sm:$0xff pattern:$0x73625140]  ;;  %v405_v17 = vadd.s32 15744, %v7975_v2  ;;  %vm801_vm8 = vcmp.lt.s32.totalorder %v9763_v20, 199608 }
 0x14f   : > { %7282 = vmatpush.xpose.msk.msra.mxu0 %vm788_vm10, %v2139_v10  ;;  %7291 = vmatpush.xpose.msk.msra.mxu3 %vm791_vm11, %v2142_v42  ;;  %v3633_v33 = vpop.f32.mrf.mxu3  ;;  %v3653_v60 = vpop.f32.mrf.mxu0  ;;  %vm798_vm1 = vcmp.lt.s32.totalorder %v9677_v56, 199608  ;;  %v2147_v42 = vld [vmem:[%s7959_s22 + $0x380] sm:$0xff]  ;;  %v9774_v30 = vld.sshfl [vmem:[#allocation1] sm:$0xff pattern:$0x73625140] }
 0x150   : > { %7285 = vmatpush.xpose.msk.msra.mxu1 %vm789_vm12, %v2140_v45  ;;  %v3634_v40 = vadd.f32 %v3633_v33, %v3614_v18  ;;  %v9758_v45 = vadd.s32 %v7979_v5, %v401_v63  ;;  %v916_v18 = vld [vmem:[%s7953_s26 + $0x100] sm:$0xff]  ;;  %v2356_v56 = vld [vmem:[%s7959_s22 + $0xa08] sm:$0x3] }
 0x151   : > { %7289 = vmatmul.msk.f32.vlgmr.msra.gmra.mxu2 %vm790_vm9, %v9507_v61  ;;  %v9722_v61 = vadd.s32 %v7979_v5, %v400_v0  ;;  %v2153_v0 = vld [vmem:[%s7959_s22 + $0x3b0] sm:$0xff]  ;;  %v2355_v63 = vld [vmem:[%s7959_s22 + $0xa00] sm:$0x3] }
 0x152   : > { %7299 = vmatpush.xpose.msk.msrb.mxu2 %vm794_vm13, %v2345_v8  ;;  %v3673_v36 = vpop.f32.mrf.mxu1  ;;  %v3654_v35 = vadd.f32 %v3653_v60, %v3634_v40  ;;  %7283 = vmatmul.msk.f32.vlgmr.msra.gmra.mxu0 %vm788_vm10, %v9514_v16  ;;  %v398_v16 = vadd.s32 14848, %v7975_v2  ;;  %v9785_v60 = vld.sshfl [vmem:[#allocation1 + $0x8] sm:$0xff pattern:$0x73625140]  ;;  %vm803_vm7 = vcmp.lt.s32.totalorder %v9758_v45, 199608  ;;  %v9818_v40 = vadd.s32 %v7979_v5, %v405_v17 }
 0x153   : > { %7293 = vmatpush.xpose.msk.msrb.mxu0 %vm792_vm14, %v2343_v4  ;;  %7302 = vmatpush.xpose.msk.msrb.mxu3 %vm795_vm15, %v2346_v14  ;;  %vm802_vm5 = vcmp.lt.s32.totalorder %v9722_v61, 199608  ;;  %v2353_v4 = vld [vmem:[%s7959_s22 + $0x9f0] sm:$0x3]  ;;  %v2351_v14 = vld [vmem:[%s7959_s22 + $0x9e0] sm:$0x3]  ;;  %vm804_vm10 = vcmp.lt.s32.totalorder %v9810_v51, 199608 }
 0x154   : > { %7296 = vmatpush.xpose.msk.msrb.mxu1 %vm793_vm0, %v2344_v27  ;;  %7292 = vmatmul.msk.f32.vlgmr.msra.gmra.mxu3 %vm791_vm11, %v9523_v19  ;;  %v3674_v22 = vadd.f32 %v3673_v36, %v3654_v35  ;;  %v9732_v19 = vld.sshfl [vmem:[#allocation1 + $0x30] sm:$0xff pattern:$0x73625140]  ;;  %v3693_v34 = vpop.f32.mrf.mxu2  ;;  %v9755_v38 = vadd.s32 %v7979_v5, %v398_v16  ;;  %v403_v27 = vadd.s32 15488, %v7975_v2  ;;  %vm807_vm11 = vcmp.lt.s32.totalorder %v9818_v40, 199608 }
 0x155   : > { %7286 = vmatmul.msk.f32.vlgmr.msra.gmra.mxu1 %vm789_vm12, %v9525_v23  ;;  %v9734_v23 = vld.sshfl [vmem:[#allocation1 + $0x20] sm:$0xff pattern:$0x73625140]  ;;  %v2151_v35 = vld [vmem:[%s7959_s22 + $0x3a0] sm:$0xff]  ;;  %v417_v51 = vadd.s32 17280, %v7975_v2 }
 0x156   : > { %7300 = vmatpush.xpose.msk.msrb.mxu2 %vm794_vm13, %v2145_v7  ;;  %v3694_v59 = vadd.f32 %v3693_v34, %v3674_v22  ;;  %1536 = vst [vmem:[#allocation1 + $0x20] ss:$4 sm:$0xff] %v915_v29  ;;  %v9783_v7 = vld.sshfl [vmem:[#allocation1 + $0x18] sm:$0xff pattern:$0x73625140]  ;;  %vm800_vm6 = vcmp.lt.s32.totalorder %v9755_v38, 199608  ;;  %v9821_v36 = vadd.s32 %v7979_v5, %v403_v27 }
 0x157   : > { %7294 = vmatpush.xpose.msk.msrb.mxu0 %vm792_vm14, %v2143_v57  ;;  %7303 = vmatpush.xpose.msk.msrb.mxu3 %vm795_vm15, %v2146_v43  ;;  %v3713_v53 = vpop.f32.mrf.mxu3  ;;  %v3733_v10 = vpop.f32.mrf.mxu0  ;;  %1545 = vst [vmem:[#allocation1] ss:$4 sm:$0xff] %v916_v18  ;;  %v408_v43 = vadd.s32 16128, %v7975_v2  ;;  %v407_v29 = vadd.s32 16000, %v7975_v2  ;;  %v917_v22 = vld [vmem:[%s7953_s26 + $0x108] sm:$0xff]  ;;  %v412_v27 = vadd.s32 16640, %v7975_v2 }
 0x158   : > { %7297 = vmatpush.xpose.msk.msrb.mxu1 %vm793_vm0, %v2144_v41  ;;  %v3714_v8 = vadd.f32 %v3713_v53, %v3694_v59  ;;  %vm805_vm12 = vcmp.lt.s32.totalorder %v9821_v36, 199608  ;;  %v410_v18 = vadd.s32 16384, %v7975_v2  ;;  %v2362_v61 = vld [vmem:[%s7959_s22 + $0xa38] sm:$0x3] }
 0x159   : > { %7301 = vmatmul.msk.f32.vlgmr.msrb.gmra.mxu2 %vm794_vm13, %v9602_v28  ;;  %v9893_v17 = vadd.s32 %v7979_v5, %v407_v29  ;;  %v2366_v29 = vld [vmem:[%s7959_s22 + $0xa58] sm:$0x3] }
 0x15a   : > { %7311 = vmatpush.xpose.msk.msra.mxu2 %vm798_vm1, %v2349_v44  ;;  %v3753_v12 = vpop.f32.mrf.mxu1  ;;  %v3734_v33 = vadd.f32 %v3733_v10, %v3714_v8  ;;  %7295 = vmatmul.msk.f32.vlgmr.msrb.gmra.mxu0 %vm792_vm14, %v9604_v31  ;;  %v2352_v31 = vld [vmem:[%s7959_s22 + $0x9e8] sm:$0x3]  ;;  %v2157_v10 = vld [vmem:[%s7959_s22 + $0x3d0] sm:$0xff]  ;;  %v2158_v8 = vld [vmem:[%s7959_s22 + $0x3d8] sm:$0xff]  ;;  %v9940_v38 = vadd.s32 %v7979_v5, %v410_v18 }
 0x15b   : > { %7305 = vmatpush.xpose.msk.msra.mxu0 %vm796_vm2, %v2347_v46  ;;  %7314 = vmatpush.xpose.msk.msra.mxu3 %vm799_vm3, %v2350_v15  ;;  %v2154_v46 = vld [vmem:[%s7959_s22 + $0x3b8] sm:$0xff]  ;;  %v2152_v15 = vld [vmem:[%s7959_s22 + $0x3a8] sm:$0xff] }
 0x15c   : > { %7308 = vmatpush.xpose.msk.msra.mxu1 %vm797_vm4, %v2348_v47  ;;  %7304 = vmatmul.msk.f32.vlgmr.msrb.gmra.mxu3 %vm795_vm15, %v9610_v32  ;;  %v3754_v28 = vadd.f32 %v3753_v12, %v3734_v33  ;;  %v3773_v32 = vpop.f32.mrf.mxu2  ;;  %v2357_v47 = vld [vmem:[%s7959_s22 + $0xa10] sm:$0x3]  ;;  %v2164_v18 = vld [vmem:[%s7959_s22 + $0x408] sm:$0xff] }
 0x15d   : > { %7298 = vmatmul.msk.f32.vlgmr.msrb.gmra.mxu1 %vm793_vm0, %v9612_v52  ;;  %v9807_v52 = vadd.s32 %v7979_v5, %v404_v21  ;;  %v9870_v50 = vld.sshfl [vmem:[#allocation1 + $0x38] sm:$0xff pattern:$0x73625140]  ;;  %v9872_v59 = vld.sshfl [vmem:[#allocation1 + $0x28] sm:$0xff pattern:$0x73625140] }
 0x15e   : > { %7312 = vmatpush.xpose.msk.msra.mxu2 %vm798_vm1, %v2149_v55  ;;  %v3774_v3 = vadd.f32 %v3773_v32, %v3754_v28  ;;  %v9897_v33 = vld.sshfl [vmem:[#allocation1 + $0x10] sm:$0xff pattern:$0x73625140]  ;;  %v413_v28 = vadd.s32 16768, %v7975_v2  ;;  %vm809_vm0 = vcmp.lt.s32.totalorder %v9893_v17, 199608 }
 0x15f   : > { %7306 = vmatpush.xpose.msk.msra.mxu0 %vm796_vm2, %v2147_v42  ;;  %7315 = vmatpush.xpose.msk.msra.mxu3 %vm799_vm3, %v2150_v24  ;;  %v3793_v6 = vpop.f32.mrf.mxu3  ;;  %v3813_v57 = vpop.f32.mrf.mxu0  ;;  %vm806_vm9 = vcmp.lt.s32.totalorder %v9807_v52, 199608  ;;  %v2155_v24 = vld [vmem:[%s7959_s22 + $0x3c0] sm:$0xff]  ;;  %v9904_v32 = vld.sshfl [vmem:[#allocation1] sm:$0xff pattern:$0x73625140] }
 0x160   : > { %7309 = vmatpush.xpose.msk.msra.mxu1 %vm797_vm4, %v2148_v48  ;;  %v3794_v41 = vadd.f32 %v3793_v6, %v3774_v3  ;;  %v9888_v48 = vadd.s32 %v7979_v5, %v409_v62  ;;  %v918_v3 = vld [vmem:[%s7953_s26 + $0x110] sm:$0xff]  ;;  %v2364_v52 = vld [vmem:[%s7959_s22 + $0xa48] sm:$0x3] }
 0x161   : > { %7313 = vmatmul.msk.f32.vlgmr.msra.gmra.mxu2 %vm798_vm1, %v9637_v11  ;;  %v9852_v11 = vadd.s32 %v7979_v5, %v408_v43  ;;  %v2161_v43 = vld [vmem:[%s7959_s22 + $0x3f0] sm:$0xff]  ;;  %v2363_v62 = vld [vmem:[%s7959_s22 + $0xa40] sm:$0x3] }
 0x162   : > { %7323 = vmatpush.xpose.msk.msrb.mxu2 %vm802_vm5, %v2353_v4  ;;  %v3833_v44 = vpop.f32.mrf.mxu1  ;;  %v3814_v16 = vadd.f32 %v3813_v57, %v3794_v41  ;;  %7307 = vmatmul.msk.f32.vlgmr.msra.gmra.mxu0 %vm796_vm2, %v9644_v26  ;;  %v406_v26 = vadd.s32 15872, %v7975_v2  ;;  %v9915_v57 = vld.sshfl [vmem:[#allocation1 + $0x8] sm:$0xff pattern:$0x73625140]  ;;  %vm811_vm15 = vcmp.lt.s32.totalorder %v9888_v48, 199608  ;;  %v9948_v41 = vadd.s32 %v7979_v5, %v413_v28 }
 0x163   : > { %7317 = vmatpush.xpose.msk.msrb.mxu0 %vm800_vm6, %v2351_v14  ;;  %7326 = vmatpush.xpose.msk.msrb.mxu3 %vm803_vm7, %v2354_v9  ;;  %vm810_vm13 = vcmp.lt.s32.totalorder %v9852_v11, 199608  ;;  %v2361_v14 = vld [vmem:[%s7959_s22 + $0xa30] sm:$0x3]  ;;  %v2359_v9 = vld [vmem:[%s7959_s22 + $0xa20] sm:$0x3]  ;;  %vm812_vm2 = vcmp.lt.s32.totalorder %v9940_v38, 199608 }
 0x164   : > { %7320 = vmatpush.xpose.msk.msrb.mxu1 %vm801_vm8, %v2352_v31  ;;  %7316 = vmatmul.msk.f32.vlgmr.msra.gmra.mxu3 %vm799_vm3, %v9653_v37  ;;  %v3834_v34 = vadd.f32 %v3833_v44, %v3814_v16  ;;  %v9862_v37 = vld.sshfl [vmem:[#allocation1 + $0x30] sm:$0xff pattern:$0x73625140]  ;;  %v3853_v39 = vpop.f32.mrf.mxu2  ;;  %v9885_v12 = vadd.s32 %v7979_v5, %v406_v26  ;;  %v411_v31 = vadd.s32 16512, %v7975_v2  ;;  %vm815_vm3 = vcmp.lt.s32.totalorder %v9948_v41, 199608 }
 0x165   : > { %7310 = vmatmul.msk.f32.vlgmr.msra.gmra.mxu1 %vm797_vm4, %v9655_v13  ;;  %v9864_v13 = vld.sshfl [vmem:[#allocation1 + $0x20] sm:$0xff pattern:$0x73625140]  ;;  %v2159_v16 = vld [vmem:[%s7959_s22 + $0x3e0] sm:$0xff]  ;;  %v425_v38 = vadd.s32 18304, %v7975_v2 }
 0x166   : > { %7324 = vmatpush.xpose.msk.msrb.mxu2 %vm802_vm5, %v2153_v0  ;;  %v3854_v53 = vadd.f32 %v3853_v39, %v3834_v34  ;;  %1546 = vst [vmem:[#allocation1 + $0x20] ss:$4 sm:$0xff] %v917_v22  ;;  %v9913_v0 = vld.sshfl [vmem:[#allocation1 + $0x18] sm:$0xff pattern:$0x73625140]  ;;  %vm808_vm14 = vcmp.lt.s32.totalorder %v9885_v12, 199608  ;;  %v9951_v44 = vadd.s32 %v7979_v5, %v411_v31 }
 0x167   : > { %7318 = vmatpush.xpose.msk.msrb.mxu0 %vm800_vm6, %v2151_v35  ;;  %7327 = vmatpush.xpose.msk.msrb.mxu3 %vm803_vm7, %v2154_v46  ;;  %v3873_v55 = vpop.f32.mrf.mxu3  ;;  %v3893_v42 = vpop.f32.mrf.mxu0  ;;  %1555 = vst [vmem:[#allocation1] ss:$4 sm:$0xff] %v918_v3  ;;  %v416_v46 = vadd.s32 17152, %v7975_v2  ;;  %v415_v22 = vadd.s32 17024, %v7975_v2  ;;  %v919_v34 = vld [vmem:[%s7953_s26 + $0x118] sm:$0xff]  ;;  %v420_v31 = vadd.s32 17664, %v7975_v2 }
 0x168   : > { %7321 = vmatpush.xpose.msk.msrb.mxu1 %vm801_vm8, %v2152_v15  ;;  %v3874_v4 = vadd.f32 %v3873_v55, %v3854_v53  ;;  %vm813_vm4 = vcmp.lt.s32.totalorder %v9951_v44, 199608  ;;  %v418_v3 = vadd.s32 17408, %v7975_v2  ;;  %v2370_v11 = vld [vmem:[%s7959_s22 + $0xa78] sm:$0x3] }
 0x169   : > { %7325 = vmatmul.msk.f32.vlgmr.msrb.gmra.mxu2 %vm802_vm5, %v9732_v19  ;;  %v10023_v28 = vadd.s32 %v7979_v5, %v415_v22  ;;  %v2374_v22 = vld [vmem:[%s7959_s22 + $0xa98] sm:$0x3] }
 0x16a   : > { %7335 = vmatpush.xpose.msk.msra.mxu2 %vm806_vm9, %v2357_v47  ;;  %v3913_v21 = vpop.f32.mrf.mxu1  ;;  %v3894_v6 = vadd.f32 %v3893_v42, %v3874_v4  ;;  %7319 = vmatmul.msk.f32.vlgmr.msrb.gmra.mxu0 %vm800_vm6, %v9734_v23  ;;  %v2360_v23 = vld [vmem:[%s7959_s22 + $0xa28] sm:$0x3]  ;;  %v2165_v42 = vld [vmem:[%s7959_s22 + $0x410] sm:$0xff]  ;;  %v2166_v4 = vld [vmem:[%s7959_s22 + $0x418] sm:$0xff]  ;;  %v10070_v12 = vadd.s32 %v7979_v5, %v418_v3 }
 0x16b   : > { %7329 = vmatpush.xpose.msk.msra.mxu0 %vm804_vm10, %v2355_v63  ;;  %7338 = vmatpush.xpose.msk.msra.mxu3 %vm807_vm11, %v2358_v25  ;;  %v2162_v63 = vld [vmem:[%s7959_s22 + $0x3f8] sm:$0xff]  ;;  %v2160_v25 = vld [vmem:[%s7959_s22 + $0x3e8] sm:$0xff] }
 0x16c   : > { %7332 = vmatpush.xpose.msk.msra.mxu1 %vm805_vm12, %v2356_v56  ;;  %7328 = vmatmul.msk.f32.vlgmr.msrb.gmra.mxu3 %vm803_vm7, %v9740_v58  ;;  %v3914_v19 = vadd.f32 %v3913_v21, %v3894_v6  ;;  %v3933_v58 = vpop.f32.mrf.mxu2  ;;  %v2365_v56 = vld [vmem:[%s7959_s22 + $0xa50] sm:$0x3]  ;;  %v2172_v3 = vld [vmem:[%s7959_s22 + $0x448] sm:$0xff] }
 0x16d   : > { %7322 = vmatmul.msk.f32.vlgmr.msrb.gmra.mxu1 %vm801_vm8, %v9742_v54  ;;  %v9937_v54 = vadd.s32 %v7979_v5, %v412_v27  ;;  %v10000_v36 = vld.sshfl [vmem:[#allocation1 + $0x38] sm:$0xff pattern:$0x73625140]  ;;  %v10002_v53 = vld.sshfl [vmem:[#allocation1 + $0x28] sm:$0xff pattern:$0x73625140] }
 0x16e   : > { %7336 = vmatpush.xpose.msk.msra.mxu2 %vm806_vm9, %v2157_v10  ;;  %v3934_v45 = vadd.f32 %v3933_v58, %v3914_v19  ;;  %v10027_v6 = vld.sshfl [vmem:[#allocation1 + $0x10] sm:$0xff pattern:$0x73625140]  ;;  %v421_v19 = vadd.s32 17792, %v7975_v2  ;;  %vm817_vm8 = vcmp.lt.s32.totalorder %v10023_v28, 199608 }
 0x16f   : > { %7330 = vmatpush.xpose.msk.msra.mxu0 %vm804_vm10, %v2155_v24  ;;  %7339 = vmatpush.xpose.msk.msra.mxu3 %vm807_vm11, %v2158_v8  ;;  %v3953_v20 = vpop.f32.mrf.mxu3  ;;  %v3973_v35 = vpop.f32.mrf.mxu0  ;;  %vm814_vm1 = vcmp.lt.s32.totalorder %v9937_v54, 199608  ;;  %v2163_v8 = vld [vmem:[%s7959_s22 + $0x400] sm:$0xff]  ;;  %v10034_v58 = vld.sshfl [vmem:[#allocation1] sm:$0xff pattern:$0x73625140] }
 0x170   : > { %7333 = vmatpush.xpose.msk.msra.mxu1 %vm805_vm12, %v2156_v1  ;;  %v3954_v15 = vadd.f32 %v3953_v20, %v3934_v45  ;;  %v10018_v1 = vadd.s32 %v7979_v5, %v417_v51  ;;  %v920_v45 = vld [vmem:[%s7953_s26 + $0x120] sm:$0xff]  ;;  %v2372_v54 = vld [vmem:[%s7959_s22 + $0xa88] sm:$0x3] }
 0x171   : > { %7337 = vmatmul.msk.f32.vlgmr.msra.gmra.mxu2 %vm806_vm9, %v9767_v49  ;;  %v9982_v49 = vadd.s32 %v7979_v5, %v416_v46  ;;  %v2169_v46 = vld [vmem:[%s7959_s22 + $0x430] sm:$0xff]  ;;  %v2371_v51 = vld [vmem:[%s7959_s22 + $0xa80] sm:$0x3] }
 0x172   : > { %7347 = vmatpush.xpose.msk.msrb.mxu2 %vm810_vm13, %v2361_v14  ;;  %v3993_v47 = vpop.f32.mrf.mxu1  ;;  %v3974_v26 = vadd.f32 %v3973_v35, %v3954_v15  ;;  %7331 = vmatmul.msk.f32.vlgmr.msra.gmra.mxu0 %vm804_vm10, %v9774_v30  ;;  %v414_v30 = vadd.s32 16896, %v7975_v2  ;;  %v10045_v35 = vld.sshfl [vmem:[#allocation1 + $0x8] sm:$0xff pattern:$0x73625140]  ;;  %vm819_vm7 = vcmp.lt.s32.totalorder %v10018_v1, 199608  ;;  %v10078_v15 = vadd.s32 %v7979_v5, %v421_v19 }
 0x173   : > { %7341 = vmatpush.xpose.msk.msrb.mxu0 %vm808_vm14, %v2359_v9  ;;  %7350 = vmatpush.xpose.msk.msrb.mxu3 %vm811_vm15, %v2362_v61  ;;  %vm818_vm5 = vcmp.lt.s32.totalorder %v9982_v49, 199608  ;;  %v2369_v9 = vld [vmem:[%s7959_s22 + $0xa70] sm:$0x3]  ;;  %v2367_v61 = vld [vmem:[%s7959_s22 + $0xa60] sm:$0x3]  ;;  %vm820_vm10 = vcmp.lt.s32.totalorder %v10070_v12, 199608 }
 0x174   : > { %7344 = vmatpush.xpose.msk.msrb.mxu1 %vm809_vm0, %v2360_v23  ;;  %7340 = vmatmul.msk.f32.vlgmr.msra.gmra.mxu3 %vm807_vm11, %v9783_v7  ;;  %v3994_v39 = vadd.f32 %v3993_v47, %v3974_v26  ;;  %v9992_v7 = vld.sshfl [vmem:[#allocation1 + $0x30] sm:$0xff pattern:$0x73625140]  ;;  %v4013_v40 = vpop.f32.mrf.mxu2  ;;  %v10015_v21 = vadd.s32 %v7979_v5, %v414_v30  ;;  %v419_v23 = vadd.s32 17536, %v7975_v2  ;;  %vm823_vm11 = vcmp.lt.s32.totalorder %v10078_v15, 199608 }
 0x175   : > { %7334 = vmatmul.msk.f32.vlgmr.msra.gmra.mxu1 %vm805_vm12, %v9785_v60  ;;  %v9994_v60 = vld.sshfl [vmem:[#allocation1 + $0x20] sm:$0xff pattern:$0x73625140]  ;;  %v2167_v26 = vld [vmem:[%s7959_s22 + $0x420] sm:$0xff]  ;;  %v433_v12 = vadd.s32 19328, %v7975_v2 }
 0x176   : > { %7348 = vmatpush.xpose.msk.msrb.mxu2 %vm810_vm13, %v2161_v43  ;;  %v4014_v55 = vadd.f32 %v4013_v40, %v3994_v39  ;;  %1556 = vst [vmem:[#allocation1 + $0x20] ss:$4 sm:$0xff] %v919_v34  ;;  %v10043_v43 = vld.sshfl [vmem:[#allocation1 + $0x18] sm:$0xff pattern:$0x73625140]  ;;  %vm816_vm6 = vcmp.lt.s32.totalorder %v10015_v21, 199608  ;;  %v10081_v47 = vadd.s32 %v7979_v5, %v419_v23 }
 0x177   : > { %7342 = vmatpush.xpose.msk.msrb.mxu0 %vm808_vm14, %v2159_v16  ;;  %7351 = vmatpush.xpose.msk.msrb.mxu3 %vm811_vm15, %v2162_v63  ;;  %v4033_v10 = vpop.f32.mrf.mxu3  ;;  %v4053_v24 = vpop.f32.mrf.mxu0  ;;  %1565 = vst [vmem:[#allocation1] ss:$4 sm:$0xff] %v920_v45  ;;  %v424_v63 = vadd.s32 18176, %v7975_v2  ;;  %v423_v34 = vadd.s32 18048, %v7975_v2  ;;  %v921_v39 = vld [vmem:[%s7953_s26 + $0x128] sm:$0xff]  ;;  %v428_v23 = vadd.s32 18688, %v7975_v2 }
 0x178   : > { %7345 = vmatpush.xpose.msk.msrb.mxu1 %vm809_vm0, %v2160_v25  ;;  %v4034_v14 = vadd.f32 %v4033_v10, %v4014_v55  ;;  %vm821_vm12 = vcmp.lt.s32.totalorder %v10081_v47, 199608  ;;  %v426_v45 = vadd.s32 18432, %v7975_v2  ;;  %v2378_v49 = vld [vmem:[%s7959_s22 + $0xab8] sm:$0x3] }
 0x179   : > { %7349 = vmatmul.msk.f32.vlgmr.msrb.gmra.mxu2 %vm810_vm13, %v9862_v37  ;;  %v10153_v19 = vadd.s32 %v7979_v5, %v423_v34  ;;  %v2382_v34 = vld [vmem:[%s7959_s22 + $0xad8] sm:$0x3] }
 0x17a   : > { %7359 = vmatpush.xpose.msk.msra.mxu2 %vm814_vm1, %v2365_v56  ;;  %v4073_v27 = vpop.f32.mrf.mxu1  ;;  %v4054_v20 = vadd.f32 %v4053_v24, %v4034_v14  ;;  %7343 = vmatmul.msk.f32.vlgmr.msrb.gmra.mxu0 %vm808_vm14, %v9864_v13  ;;  %v2368_v13 = vld [vmem:[%s7959_s22 + $0xa68] sm:$0x3]  ;;  %v2173_v24 = vld [vmem:[%s7959_s22 + $0x450] sm:$0xff]  ;;  %v2174_v14 = vld [vmem:[%s7959_s22 + $0x458] sm:$0xff]  ;;  %v10200_v21 = vadd.s32 %v7979_v5, %v426_v45 }
 0x17b   : > { %7353 = vmatpush.xpose.msk.msra.mxu0 %vm812_vm2, %v2363_v62  ;;  %7362 = vmatpush.xpose.msk.msra.mxu3 %vm815_vm3, %v2366_v29  ;;  %v2170_v62 = vld [vmem:[%s7959_s22 + $0x438] sm:$0xff]  ;;  %v2168_v29 = vld [vmem:[%s7959_s22 + $0x428] sm:$0xff] }
 0x17c   : > { %7356 = vmatpush.xpose.msk.msra.mxu1 %vm813_vm4, %v2364_v52  ;;  %7352 = vmatmul.msk.f32.vlgmr.msrb.gmra.mxu3 %vm811_vm15, %v9870_v50  ;;  %v4074_v37 = vadd.f32 %v4073_v27, %v4054_v20  ;;  %v4093_v50 = vpop.f32.mrf.mxu2  ;;  %v2373_v52 = vld [vmem:[%s7959_s22 + $0xa90] sm:$0x3]  ;;  %v2180_v45 = vld [vmem:[%s7959_s22 + $0x488] sm:$0xff] }
 0x17d   : > { %7346 = vmatmul.msk.f32.vlgmr.msrb.gmra.mxu1 %vm809_vm0, %v9872_v59  ;;  %v10067_v59 = vadd.s32 %v7979_v5, %v420_v31  ;;  %v10130_v44 = vld.sshfl [vmem:[#allocation1 + $0x38] sm:$0xff pattern:$0x73625140]  ;;  %v10132_v55 = vld.sshfl [vmem:[#allocation1 + $0x28] sm:$0xff pattern:$0x73625140] }
 0x17e   : > { %7360 = vmatpush.xpose.msk.msra.mxu2 %vm814_vm1, %v2165_v42  ;;  %v4094_v48 = vadd.f32 %v4093_v50, %v4074_v37  ;;  %v10157_v20 = vld.sshfl [vmem:[#allocation1 + $0x10] sm:$0xff pattern:$0x73625140]  ;;  %v429_v37 = vadd.s32 18816, %v7975_v2  ;;  %vm825_vm0 = vcmp.lt.s32.totalorder %v10153_v19, 199608 }
 0x17f   : > { %7354 = vmatpush.xpose.msk.msra.mxu0 %vm812_vm2, %v2163_v8  ;;  %7363 = vmatpush.xpose.msk.msra.mxu3 %vm815_vm3, %v2166_v4  ;;  %v4113_v17 = vpop.f32.mrf.mxu3  ;;  %v4133_v16 = vpop.f32.mrf.mxu0  ;;  %vm822_vm9 = vcmp.lt.s32.totalorder %v10067_v59, 199608  ;;  %v2171_v4 = vld [vmem:[%s7959_s22 + $0x440] sm:$0xff]  ;;  %v10164_v50 = vld.sshfl [vmem:[#allocation1] sm:$0xff pattern:$0x73625140] }
 0x180   : > { %7357 = vmatpush.xpose.msk.msra.mxu1 %vm813_vm4, %v2164_v18  ;;  %v4114_v25 = vadd.f32 %v4113_v17, %v4094_v48  ;;  %v10148_v18 = vadd.s32 %v7979_v5, %v425_v38  ;;  %v922_v48 = vld [vmem:[%s7953_s26 + $0x130] sm:$0xff]  ;;  %v2380_v59 = vld [vmem:[%s7959_s22 + $0xac8] sm:$0x3] }
 0x181   : > { %7361 = vmatmul.msk.f32.vlgmr.msra.gmra.mxu2 %vm814_vm1, %v9897_v33  ;;  %v10112_v33 = vadd.s32 %v7979_v5, %v424_v63  ;;  %v2177_v63 = vld [vmem:[%s7959_s22 + $0x470] sm:$0xff]  ;;  %v2379_v38 = vld [vmem:[%s7959_s22 + $0xac0] sm:$0x3] }
 0x182   : > { %7371 = vmatpush.xpose.msk.msrb.mxu2 %vm818_vm5, %v2369_v9  ;;  %v4153_v56 = vpop.f32.mrf.mxu1  ;;  %v4134_v30 = vadd.f32 %v4133_v16, %v4114_v25  ;;  %7355 = vmatmul.msk.f32.vlgmr.msra.gmra.mxu0 %vm812_vm2, %v9904_v32  ;;  %v422_v32 = vadd.s32 17920, %v7975_v2  ;;  %v10175_v16 = vld.sshfl [vmem:[#allocation1 + $0x8] sm:$0xff pattern:$0x73625140]  ;;  %vm827_vm15 = vcmp.lt.s32.totalorder %v10148_v18, 199608  ;;  %v10208_v25 = vadd.s32 %v7979_v5, %v429_v37 }
 0x183   : > { %7365 = vmatpush.xpose.msk.msrb.mxu0 %vm816_vm6, %v2367_v61  ;;  %7374 = vmatpush.xpose.msk.msrb.mxu3 %vm819_vm7, %v2370_v11  ;;  %vm826_vm13 = vcmp.lt.s32.totalorder %v10112_v33, 199608  ;;  %v2377_v61 = vld [vmem:[%s7959_s22 + $0xab0] sm:$0x3]  ;;  %v2375_v11 = vld [vmem:[%s7959_s22 + $0xaa0] sm:$0x3]  ;;  %vm828_vm2 = vcmp.lt.s32.totalorder %v10200_v21, 199608 }
 0x184   : > { %7368 = vmatpush.xpose.msk.msrb.mxu1 %vm817_vm8, %v2368_v13  ;;  %7364 = vmatmul.msk.f32.vlgmr.msra.gmra.mxu3 %vm815_vm3, %v9913_v0  ;;  %v4154_v40 = vadd.f32 %v4153_v56, %v4134_v30  ;;  %v10122_v0 = vld.sshfl [vmem:[#allocation1 + $0x30] sm:$0xff pattern:$0x73625140]  ;;  %v4173_v41 = vpop.f32.mrf.mxu2  ;;  %v10145_v27 = vadd.s32 %v7979_v5, %v422_v32  ;;  %v427_v13 = vadd.s32 18560, %v7975_v2  ;;  %vm831_vm3 = vcmp.lt.s32.totalorder %v10208_v25, 199608 }
 0x185   : > { %7358 = vmatmul.msk.f32.vlgmr.msra.gmra.mxu1 %vm813_vm4, %v9915_v57  ;;  %v10124_v57 = vld.sshfl [vmem:[#allocation1 + $0x20] sm:$0xff pattern:$0x73625140]  ;;  %v2175_v30 = vld [vmem:[%s7959_s22 + $0x460] sm:$0xff]  ;;  %v441_v21 = vadd.s32 20352, %v7975_v2 }
 0x186   : > { %7372 = vmatpush.xpose.msk.msrb.mxu2 %vm818_vm5, %v2169_v46  ;;  %v4174_v10 = vadd.f32 %v4173_v41, %v4154_v40  ;;  %1566 = vst [vmem:[#allocation1 + $0x20] ss:$4 sm:$0xff] %v921_v39  ;;  %v10173_v46 = vld.sshfl [vmem:[#allocation1 + $0x18] sm:$0xff pattern:$0x73625140]  ;;  %vm824_vm14 = vcmp.lt.s32.totalorder %v10145_v27, 199608  ;;  %v10211_v56 = vadd.s32 %v7979_v5, %v427_v13 }
 0x187   : > { %7366 = vmatpush.xpose.msk.msrb.mxu0 %vm816_vm6, %v2167_v26  ;;  %7375 = vmatpush.xpose.msk.msrb.mxu3 %vm819_vm7, %v2170_v62  ;;  %v4193_v42 = vpop.f32.mrf.mxu3  ;;  %v4213_v8 = vpop.f32.mrf.mxu0  ;;  %1575 = vst [vmem:[#allocation1] ss:$4 sm:$0xff] %v922_v48  ;;  %v432_v62 = vadd.s32 19200, %v7975_v2  ;;  %v431_v39 = vadd.s32 19072, %v7975_v2  ;;  %v923_v40 = vld [vmem:[%s7953_s26 + $0x138] sm:$0xff]  ;;  %v436_v13 = vadd.s32 19712, %v7975_v2 }
 0x188   : > { %7369 = vmatpush.xpose.msk.msrb.mxu1 %vm817_vm8, %v2168_v29  ;;  %v4194_v9 = vadd.f32 %v4193_v42, %v4174_v10  ;;  %vm829_vm4 = vcmp.lt.s32.totalorder %v10211_v56, 199608  ;;  %v434_v48 = vadd.s32 19456, %v7975_v2  ;;  %v2386_v33 = vld [vmem:[%s7959_s22 + $0xaf8] sm:$0x3] }
 0x189   : > { %7373 = vmatmul.msk.f32.vlgmr.msrb.gmra.mxu2 %vm818_vm5, %v9992_v7  ;;  %v10283_v37 = vadd.s32 %v7979_v5, %v431_v39  ;;  %v2390_v39 = vld [vmem:[%s7959_s22 + $0xb18] sm:$0x3] }
 0x18a   : > { %7383 = vmatpush.xpose.msk.msra.mxu2 %vm822_vm9, %v2373_v52  ;;  %v4233_v31 = vpop.f32.mrf.mxu1  ;;  %v4214_v17 = vadd.f32 %v4213_v8, %v4194_v9  ;;  %7367 = vmatmul.msk.f32.vlgmr.msrb.gmra.mxu0 %vm816_vm6, %v9994_v60  ;;  %v2376_v60 = vld [vmem:[%s7959_s22 + $0xaa8] sm:$0x3]  ;;  %v2181_v8 = vld [vmem:[%s7959_s22 + $0x490] sm:$0xff]  ;;  %v2182_v9 = vld [vmem:[%s7959_s22 + $0x498] sm:$0xff]  ;;  %v10330_v27 = vadd.s32 %v7979_v5, %v434_v48 }
 0x18b   : > { %7377 = vmatpush.xpose.msk.msra.mxu0 %vm820_vm10, %v2371_v51  ;;  %7386 = vmatpush.xpose.msk.msra.mxu3 %vm823_vm11, %v2374_v22  ;;  %v2178_v51 = vld [vmem:[%s7959_s22 + $0x478] sm:$0xff]  ;;  %v2176_v22 = vld [vmem:[%s7959_s22 + $0x468] sm:$0xff] }
 0x18c   : > { %7380 = vmatpush.xpose.msk.msra.mxu1 %vm821_vm12, %v2372_v54  ;;  %7376 = vmatmul.msk.f32.vlgmr.msrb.gmra.mxu3 %vm819_vm7, %v10000_v36  ;;  %v4234_v7 = vadd.f32 %v4233_v31, %v4214_v17  ;;  %v4253_v36 = vpop.f32.mrf.mxu2  ;;  %v2381_v54 = vld [vmem:[%s7959_s22 + $0xad0] sm:$0x3]  ;;  %v2188_v48 = vld [vmem:[%s7959_s22 + $0x4c8] sm:$0xff] }
 0x18d   : > { %7370 = vmatmul.msk.f32.vlgmr.msrb.gmra.mxu1 %vm817_vm8, %v10002_v53  ;;  %v10197_v53 = vadd.s32 %v7979_v5, %v428_v23  ;;  %v10260_v47 = vld.sshfl [vmem:[#allocation1 + $0x38] sm:$0xff pattern:$0x73625140]  ;;  %v10262_v10 = vld.sshfl [vmem:[#allocation1 + $0x28] sm:$0xff pattern:$0x73625140] }
 0x18e   : > { %7384 = vmatpush.xpose.msk.msra.mxu2 %vm822_vm9, %v2173_v24  ;;  %v4254_v1 = vadd.f32 %v4253_v36, %v4234_v7  ;;  %v10287_v17 = vld.sshfl [vmem:[#allocation1 + $0x10] sm:$0xff pattern:$0x73625140]  ;;  %v437_v7 = vadd.s32 19840, %v7975_v2  ;;  %vm833_vm8 = vcmp.lt.s32.totalorder %v10283_v37, 199608 }
 0x18f   : > { %7378 = vmatpush.xpose.msk.msra.mxu0 %vm820_vm10, %v2171_v4  ;;  %7387 = vmatpush.xpose.msk.msra.mxu3 %vm823_vm11, %v2174_v14  ;;  %v4273_v28 = vpop.f32.mrf.mxu3  ;;  %v4293_v26 = vpop.f32.mrf.mxu0  ;;  %vm830_vm1 = vcmp.lt.s32.totalorder %v10197_v53, 199608  ;;  %v2179_v14 = vld [vmem:[%s7959_s22 + $0x480] sm:$0xff]  ;;  %v10294_v36 = vld.sshfl [vmem:[#allocation1] sm:$0xff pattern:$0x73625140] }
 0x190   : > { %7381 = vmatpush.xpose.msk.msra.mxu1 %vm821_vm12, %v2172_v3  ;;  %v4274_v29 = vadd.f32 %v4273_v28, %v4254_v1  ;;  %v10278_v3 = vadd.s32 %v7979_v5, %v433_v12  ;;  %v924_v1 = vld [vmem:[%s7953_s26 + $0x140] sm:$0xff]  ;;  %v2388_v53 = vld [vmem:[%s7959_s22 + $0xb08] sm:$0x3] }
 0x191   : > { %7385 = vmatmul.msk.f32.vlgmr.msra.gmra.mxu2 %vm822_vm9, %v10027_v6  ;;  %v10242_v6 = vadd.s32 %v7979_v5, %v432_v62  ;;  %v2185_v62 = vld [vmem:[%s7959_s22 + $0x4b0] sm:$0xff]  ;;  %v2387_v12 = vld [vmem:[%s7959_s22 + $0xb00] sm:$0x3] }
 0x192   : > { %7395 = vmatpush.xpose.msk.msrb.mxu2 %vm826_vm13, %v2377_v61  ;;  %v4313_v52 = vpop.f32.mrf.mxu1  ;;  %v4294_v32 = vadd.f32 %v4293_v26, %v4274_v29  ;;  %7379 = vmatmul.msk.f32.vlgmr.msra.gmra.mxu0 %vm820_vm10, %v10034_v58  ;;  %v430_v58 = vadd.s32 18944, %v7975_v2  ;;  %v10305_v26 = vld.sshfl [vmem:[#allocation1 + $0x8] sm:$0xff pattern:$0x73625140]  ;;  %vm835_vm7 = vcmp.lt.s32.totalorder %v10278_v3, 199608  ;;  %v10338_v29 = vadd.s32 %v7979_v5, %v437_v7 }
 0x193   : > { %7389 = vmatpush.xpose.msk.msrb.mxu0 %vm824_vm14, %v2375_v11  ;;  %7398 = vmatpush.xpose.msk.msrb.mxu3 %vm827_vm15, %v2378_v49  ;;  %vm834_vm5 = vcmp.lt.s32.totalorder %v10242_v6, 199608  ;;  %v2385_v11 = vld [vmem:[%s7959_s22 + $0xaf0] sm:$0x3]  ;;  %v2383_v49 = vld [vmem:[%s7959_s22 + $0xae0] sm:$0x3]  ;;  %vm836_vm10 = vcmp.lt.s32.totalorder %v10330_v27, 199608 }
 0x194   : > { %7392 = vmatpush.xpose.msk.msrb.mxu1 %vm825_vm0, %v2376_v60  ;;  %7388 = vmatmul.msk.f32.vlgmr.msra.gmra.mxu3 %vm823_vm11, %v10043_v43  ;;  %v4314_v41 = vadd.f32 %v4313_v52, %v4294_v32  ;;  %v10252_v43 = vld.sshfl [vmem:[#allocation1 + $0x30] sm:$0xff pattern:$0x73625140]  ;;  %v4333_v15 = vpop.f32.mrf.mxu2  ;;  %v10275_v31 = vadd.s32 %v7979_v5, %v430_v58  ;;  %v435_v60 = vadd.s32 19584, %v7975_v2  ;;  %vm839_vm11 = vcmp.lt.s32.totalorder %v10338_v29, 199608 }
 0x195   : > { %7382 = vmatmul.msk.f32.vlgmr.msra.gmra.mxu1 %vm821_vm12, %v10045_v35  ;;  %v10254_v35 = vld.sshfl [vmem:[#allocation1 + $0x20] sm:$0xff pattern:$0x73625140]  ;;  %v2183_v32 = vld [vmem:[%s7959_s22 + $0x4a0] sm:$0xff]  ;;  %v449_v27 = vadd.s32 21376, %v7975_v2 }
 0x196   : > { %7396 = vmatpush.xpose.msk.msrb.mxu2 %vm826_vm13, %v2177_v63  ;;  %v4334_v42 = vadd.f32 %v4333_v15, %v4314_v41  ;;  %1576 = vst [vmem:[#allocation1 + $0x20] ss:$4 sm:$0xff] %v923_v40  ;;  %v10303_v63 = vld.sshfl [vmem:[#allocation1 + $0x18] sm:$0xff pattern:$0x73625140]  ;;  %vm832_vm6 = vcmp.lt.s32.totalorder %v10275_v31, 199608  ;;  %v10341_v52 = vadd.s32 %v7979_v5, %v435_v60 }
 0x197   : > { %7390 = vmatpush.xpose.msk.msrb.mxu0 %vm824_vm14, %v2175_v30  ;;  %7399 = vmatpush.xpose.msk.msrb.mxu3 %vm827_vm15, %v2178_v51  ;;  %v4353_v24 = vpop.f32.mrf.mxu3  ;;  %v4373_v4 = vpop.f32.mrf.mxu0  ;;  %1585 = vst [vmem:[#allocation1] ss:$4 sm:$0xff] %v924_v1  ;;  %v440_v51 = vadd.s32 20224, %v7975_v2  ;;  %v439_v40 = vadd.s32 20096, %v7975_v2  ;;  %v925_v41 = vld [vmem:[%s7953_s26 + $0x148] sm:$0xff]  ;;  %v444_v60 = vadd.s32 20736, %v7975_v2 }
 0x198   : > { %7393 = vmatpush.xpose.msk.msrb.mxu1 %vm825_vm0, %v2176_v22  ;;  %v4354_v61 = vadd.f32 %v4353_v24, %v4334_v42  ;;  %vm837_vm12 = vcmp.lt.s32.totalorder %v10341_v52, 199608  ;;  %v442_v1 = vadd.s32 20480, %v7975_v2  ;;  %v2394_v6 = vld [vmem:[%s7959_s22 + $0xb38] sm:$0x3] }
 0x199   : > { %7397 = vmatmul.msk.f32.vlgmr.msrb.gmra.mxu2 %vm826_vm13, %v10122_v0  ;;  %v10413_v7 = vadd.s32 %v7979_v5, %v439_v40  ;;  %v2398_v40 = vld [vmem:[%s7959_s22 + $0xb58] sm:$0x3] }
 0x19a   : > { %7407 = vmatpush.xpose.msk.msra.mxu2 %vm830_vm1, %v2381_v54  ;;  %v4393_v23 = vpop.f32.mrf.mxu1  ;;  %v4374_v28 = vadd.f32 %v4373_v4, %v4354_v61  ;;  %7391 = vmatmul.msk.f32.vlgmr.msrb.gmra.mxu0 %vm824_vm14, %v10124_v57  ;;  %v2384_v57 = vld [vmem:[%s7959_s22 + $0xae8] sm:$0x3]  ;;  %v2189_v4 = vld [vmem:[%s7959_s22 + $0x4d0] sm:$0xff]  ;;  %v2190_v61 = vld [vmem:[%s7959_s22 + $0x4d8] sm:$0xff]  ;;  %v10460_v31 = vadd.s32 %v7979_v5, %v442_v1 }
 0x19b   : > { %7401 = vmatpush.xpose.msk.msra.mxu0 %vm828_vm2, %v2379_v38  ;;  %7410 = vmatpush.xpose.msk.msra.mxu3 %vm831_vm3, %v2382_v34  ;;  %v2186_v38 = vld [vmem:[%s7959_s22 + $0x4b8] sm:$0xff]  ;;  %v2184_v34 = vld [vmem:[%s7959_s22 + $0x4a8] sm:$0xff] }
 0x19c   : > { %7404 = vmatpush.xpose.msk.msra.mxu1 %vm829_vm4, %v2380_v59  ;;  %7400 = vmatmul.msk.f32.vlgmr.msrb.gmra.mxu3 %vm827_vm15, %v10130_v44  ;;  %v4394_v0 = vadd.f32 %v4393_v23, %v4374_v28  ;;  %v4413_v44 = vpop.f32.mrf.mxu2  ;;  %v2389_v59 = vld [vmem:[%s7959_s22 + $0xb10] sm:$0x3]  ;;  %v2196_v1 = vld [vmem:[%s7959_s22 + $0x508] sm:$0xff] }
 0x19d   : > { %7394 = vmatmul.msk.f32.vlgmr.msrb.gmra.mxu1 %vm825_vm0, %v10132_v55  ;;  %v10327_v55 = vadd.s32 %v7979_v5, %v436_v13  ;;  %v10390_v56 = vld.sshfl [vmem:[#allocation1 + $0x38] sm:$0xff pattern:$0x73625140]  ;;  %v10392_v42 = vld.sshfl [vmem:[#allocation1 + $0x28] sm:$0xff pattern:$0x73625140] }
 0x19e   : > { %7408 = vmatpush.xpose.msk.msra.mxu2 %vm830_vm1, %v2181_v8  ;;  %v4414_v18 = vadd.f32 %v4413_v44, %v4394_v0  ;;  %v10417_v28 = vld.sshfl [vmem:[#allocation1 + $0x10] sm:$0xff pattern:$0x73625140]  ;;  %v445_v0 = vadd.s32 20864, %v7975_v2  ;;  %vm841_vm0 = vcmp.lt.s32.totalorder %v10413_v7, 199608 }
 0x19f   : > { %7402 = vmatpush.xpose.msk.msra.mxu0 %vm828_vm2, %v2179_v14  ;;  %7411 = vmatpush.xpose.msk.msra.mxu3 %vm831_vm3, %v2182_v9  ;;  %v4433_v19 = vpop.f32.mrf.mxu3  ;;  %v4453_v30 = vpop.f32.mrf.mxu0  ;;  %vm838_vm9 = vcmp.lt.s32.totalorder %v10327_v55, 199608  ;;  %v2187_v9 = vld [vmem:[%s7959_s22 + $0x4c0] sm:$0xff]  ;;  %v10424_v44 = vld.sshfl [vmem:[#allocation1] sm:$0xff pattern:$0x73625140] }
 0x1a0   : > { %7405 = vmatpush.xpose.msk.msra.mxu1 %vm829_vm4, %v2180_v45  ;;  %v4434_v22 = vadd.f32 %v4433_v19, %v4414_v18  ;;  %v10408_v45 = vadd.s32 %v7979_v5, %v441_v21  ;;  %v926_v18 = vld [vmem:[%s7953_s26 + $0x150] sm:$0xff]  ;;  %v2396_v55 = vld [vmem:[%s7959_s22 + $0xb48] sm:$0x3] }
 0x1a1   : > { %7409 = vmatmul.msk.f32.vlgmr.msra.gmra.mxu2 %vm830_vm1, %v10157_v20  ;;  %v10372_v20 = vadd.s32 %v7979_v5, %v440_v51  ;;  %v2193_v51 = vld [vmem:[%s7959_s22 + $0x4f0] sm:$0xff]  ;;  %v2395_v21 = vld [vmem:[%s7959_s22 + $0xb40] sm:$0x3] }
 0x1a2   : > { %7419 = vmatpush.xpose.msk.msrb.mxu2 %vm834_vm5, %v2385_v11  ;;  %v4473_v54 = vpop.f32.mrf.mxu1  ;;  %v4454_v58 = vadd.f32 %v4453_v30, %v4434_v22  ;;  %7403 = vmatmul.msk.f32.vlgmr.msra.gmra.mxu0 %vm828_vm2, %v10164_v50  ;;  %v438_v50 = vadd.s32 19968, %v7975_v2  ;;  %v10435_v30 = vld.sshfl [vmem:[#allocation1 + $0x8] sm:$0xff pattern:$0x73625140]  ;;  %vm843_vm15 = vcmp.lt.s32.totalorder %v10408_v45, 199608  ;;  %v10468_v22 = vadd.s32 %v7979_v5, %v445_v0 }
 0x1a3   : > { %7413 = vmatpush.xpose.msk.msrb.mxu0 %vm832_vm6, %v2383_v49  ;;  %7422 = vmatpush.xpose.msk.msrb.mxu3 %vm835_vm7, %v2386_v33  ;;  %vm842_vm13 = vcmp.lt.s32.totalorder %v10372_v20, 199608  ;;  %v2393_v49 = vld [vmem:[%s7959_s22 + $0xb30] sm:$0x3]  ;;  %v2391_v33 = vld [vmem:[%s7959_s22 + $0xb20] sm:$0x3]  ;;  %vm844_vm2 = vcmp.lt.s32.totalorder %v10460_v31, 199608 }
 0x1a4   : > { %7416 = vmatpush.xpose.msk.msrb.mxu1 %vm833_vm8, %v2384_v57  ;;  %7412 = vmatmul.msk.f32.vlgmr.msra.gmra.mxu3 %vm831_vm3, %v10173_v46  ;;  %v4474_v15 = vadd.f32 %v4473_v54, %v4454_v58  ;;  %v10382_v46 = vld.sshfl [vmem:[#allocation1 + $0x30] sm:$0xff pattern:$0x73625140]  ;;  %v4493_v25 = vpop.f32.mrf.mxu2  ;;  %v10405_v23 = vadd.s32 %v7979_v5, %v438_v50  ;;  %v443_v57 = vadd.s32 20608, %v7975_v2  ;;  %vm847_vm3 = vcmp.lt.s32.totalorder %v10468_v22, 199608 }
 0x1a5   : > { %7406 = vmatmul.msk.f32.vlgmr.msra.gmra.mxu1 %vm829_vm4, %v10175_v16  ;;  %v10384_v16 = vld.sshfl [vmem:[#allocation1 + $0x20] sm:$0xff pattern:$0x73625140]  ;;  %v2191_v58 = vld [vmem:[%s7959_s22 + $0x4e0] sm:$0xff]  ;;  %v457_v31 = vadd.s32 22400, %v7975_v2 }
 0x1a6   : > { %7420 = vmatpush.xpose.msk.msrb.mxu2 %vm834_vm5, %v2185_v62  ;;  %v4494_v24 = vadd.f32 %v4493_v25, %v4474_v15  ;;  %1586 = vst [vmem:[#allocation1 + $0x20] ss:$4 sm:$0xff] %v925_v41  ;;  %v10433_v62 = vld.sshfl [vmem:[#allocation1 + $0x18] sm:$0xff pattern:$0x73625140]  ;;  %vm840_vm14 = vcmp.lt.s32.totalorder %v10405_v23, 199608  ;;  %v10471_v54 = vadd.s32 %v7979_v5, %v443_v57 }
 0x1a7   : > { %7414 = vmatpush.xpose.msk.msrb.mxu0 %vm832_vm6, %v2183_v32  ;;  %7423 = vmatpush.xpose.msk.msrb.mxu3 %vm835_vm7, %v2186_v38  ;;  %v4513_v8 = vpop.f32.mrf.mxu3  ;;  %v4533_v14 = vpop.f32.mrf.mxu0  ;;  %1595 = vst [vmem:[#allocation1] ss:$4 sm:$0xff] %v926_v18  ;;  %v448_v38 = vadd.s32 21248, %v7975_v2  ;;  %v447_v41 = vadd.s32 21120, %v7975_v2  ;;  %v927_v15 = vld [vmem:[%s7953_s26 + $0x158] sm:$0xff]  ;;  %v452_v57 = vadd.s32 21760, %v7975_v2 }
 0x1a8   : > { %7417 = vmatpush.xpose.msk.msrb.mxu1 %vm833_vm8, %v2184_v34  ;;  %v4514_v11 = vadd.f32 %v4513_v8, %v4494_v24  ;;  %vm845_vm4 = vcmp.lt.s32.totalorder %v10471_v54, 199608  ;;  %v450_v18 = vadd.s32 21504, %v7975_v2  ;;  %v2402_v20 = vld [vmem:[%s7959_s22 + $0xb78] sm:$0x3] }
 0x1a9   : > { %7421 = vmatmul.msk.f32.vlgmr.msrb.gmra.mxu2 %vm834_vm5, %v10252_v43  ;;  %v10543_v0 = vadd.s32 %v7979_v5, %v447_v41  ;;  %v2406_v41 = vld [vmem:[%s7959_s22 + $0xb98] sm:$0x3] }
 0x1aa   : > { %7431 = vmatpush.xpose.msk.msra.mxu2 %vm838_vm9, %v2389_v59  ;;  %v4553_v13 = vpop.f32.mrf.mxu1  ;;  %v4534_v19 = vadd.f32 %v4533_v14, %v4514_v11  ;;  %7415 = vmatmul.msk.f32.vlgmr.msrb.gmra.mxu0 %vm832_vm6, %v10254_v35  ;;  %v2392_v35 = vld [vmem:[%s7959_s22 + $0xb28] sm:$0x3]  ;;  %v2197_v14 = vld [vmem:[%s7959_s22 + $0x510] sm:$0xff]  ;;  %v2198_v11 = vld [vmem:[%s7959_s22 + $0x518] sm:$0xff]  ;;  %v10590_v23 = vadd.s32 %v7979_v5, %v450_v18 }
 0x1ab   : > { %7425 = vmatpush.xpose.msk.msra.mxu0 %vm836_vm10, %v2387_v12  ;;  %7434 = vmatpush.xpose.msk.msra.mxu3 %vm839_vm11, %v2390_v39  ;;  %v2194_v12 = vld [vmem:[%s7959_s22 + $0x4f8] sm:$0xff]  ;;  %v2192_v39 = vld [vmem:[%s7959_s22 + $0x4e8] sm:$0xff] }
 0x1ac   : > { %7428 = vmatpush.xpose.msk.msra.mxu1 %vm837_vm12, %v2388_v53  ;;  %7424 = vmatmul.msk.f32.vlgmr.msrb.gmra.mxu3 %vm835_vm7, %v10260_v47  ;;  %v4554_v43 = vadd.f32 %v4553_v13, %v4534_v19  ;;  %v4573_v47 = vpop.f32.mrf.mxu2  ;;  %v2397_v53 = vld [vmem:[%s7959_s22 + $0xb50] sm:$0x3]  ;;  %v2204_v18 = vld [vmem:[%s7959_s22 + $0x548] sm:$0xff] }
 0x1ad   : > { %7418 = vmatmul.msk.f32.vlgmr.msrb.gmra.mxu1 %vm833_vm8, %v10262_v10  ;;  %v10457_v10 = vadd.s32 %v7979_v5, %v444_v60  ;;  %v10520_v52 = vld.sshfl [vmem:[#allocation1 + $0x38] sm:$0xff pattern:$0x73625140]  ;;  %v10522_v24 = vld.sshfl [vmem:[#allocation1 + $0x28] sm:$0xff pattern:$0x73625140] }
 0x1ae   : > { %7432 = vmatpush.xpose.msk.msra.mxu2 %vm838_vm9, %v2189_v4  ;;  %v4574_v3 = vadd.f32 %v4573_v47, %v4554_v43  ;;  %v10547_v19 = vld.sshfl [vmem:[#allocation1 + $0x10] sm:$0xff pattern:$0x73625140]  ;;  %v453_v43 = vadd.s32 21888, %v7975_v2  ;;  %vm849_vm8 = vcmp.lt.s32.totalorder %v10543_v0, 199608 }
 0x1af   : > { %7426 = vmatpush.xpose.msk.msra.mxu0 %vm836_vm10, %v2187_v9  ;;  %7435 = vmatpush.xpose.msk.msra.mxu3 %vm839_vm11, %v2190_v61  ;;  %v4593_v37 = vpop.f32.mrf.mxu3  ;;  %v4613_v32 = vpop.f32.mrf.mxu0  ;;  %vm846_vm1 = vcmp.lt.s32.totalorder %v10457_v10, 199608  ;;  %v2195_v61 = vld [vmem:[%s7959_s22 + $0x500] sm:$0xff]  ;;  %v10554_v47 = vld.sshfl [vmem:[#allocation1] sm:$0xff pattern:$0x73625140] }
 0x1b0   : > { %7429 = vmatpush.xpose.msk.msra.mxu1 %vm837_vm12, %v2188_v48  ;;  %v4594_v34 = vadd.f32 %v4593_v37, %v4574_v3  ;;  %v10538_v48 = vadd.s32 %v7979_v5, %v449_v27  ;;  %v928_v3 = vld [vmem:[%s7953_s26 + $0x160] sm:$0xff]  ;;  %v2404_v10 = vld [vmem:[%s7959_s22 + $0xb88] sm:$0x3] }
 0x1b1   : > { %7433 = vmatmul.msk.f32.vlgmr.msra.gmra.mxu2 %vm838_vm9, %v10287_v17  ;;  %v10502_v17 = vadd.s32 %v7979_v5, %v448_v38  ;;  %v2201_v38 = vld [vmem:[%s7959_s22 + $0x530] sm:$0xff]  ;;  %v2403_v27 = vld [vmem:[%s7959_s22 + $0xb80] sm:$0x3] }
 0x1b2   : > { %7443 = vmatpush.xpose.msk.msrb.mxu2 %vm842_vm13, %v2393_v49  ;;  %v4633_v59 = vpop.f32.mrf.mxu1  ;;  %v4614_v50 = vadd.f32 %v4613_v32, %v4594_v34  ;;  %7427 = vmatmul.msk.f32.vlgmr.msra.gmra.mxu0 %vm836_vm10, %v10294_v36  ;;  %v446_v36 = vadd.s32 20992, %v7975_v2  ;;  %v10565_v32 = vld.sshfl [vmem:[#allocation1 + $0x8] sm:$0xff pattern:$0x73625140]  ;;  %vm851_vm7 = vcmp.lt.s32.totalorder %v10538_v48, 199608  ;;  %v10598_v34 = vadd.s32 %v7979_v5, %v453_v43 }
 0x1b3   : > { %7437 = vmatpush.xpose.msk.msrb.mxu0 %vm840_vm14, %v2391_v33  ;;  %7446 = vmatpush.xpose.msk.msrb.mxu3 %vm843_vm15, %v2394_v6  ;;  %vm850_vm5 = vcmp.lt.s32.totalorder %v10502_v17, 199608  ;;  %v2401_v33 = vld [vmem:[%s7959_s22 + $0xb70] sm:$0x3]  ;;  %v2399_v6 = vld [vmem:[%s7959_s22 + $0xb60] sm:$0x3]  ;;  %vm852_vm10 = vcmp.lt.s32.totalorder %v10590_v23, 199608 }
 0x1b4   : > { %7440 = vmatpush.xpose.msk.msrb.mxu1 %vm841_vm0, %v2392_v35  ;;  %7436 = vmatmul.msk.f32.vlgmr.msra.gmra.mxu3 %vm839_vm11, %v10303_v63  ;;  %v4634_v25 = vadd.f32 %v4633_v59, %v4614_v50  ;;  %v10512_v63 = vld.sshfl [vmem:[#allocation1 + $0x30] sm:$0xff pattern:$0x73625140]  ;;  %v4653_v29 = vpop.f32.mrf.mxu2  ;;  %v10535_v13 = vadd.s32 %v7979_v5, %v446_v36  ;;  %v451_v35 = vadd.s32 21632, %v7975_v2  ;;  %vm855_vm11 = vcmp.lt.s32.totalorder %v10598_v34, 199608 }
 0x1b5   : > { %7430 = vmatmul.msk.f32.vlgmr.msra.gmra.mxu1 %vm837_vm12, %v10305_v26  ;;  %v10514_v26 = vld.sshfl [vmem:[#allocation1 + $0x20] sm:$0xff pattern:$0x73625140]  ;;  %v2199_v50 = vld [vmem:[%s7959_s22 + $0x520] sm:$0xff]  ;;  %v465_v23 = vadd.s32 23424, %v7975_v2 }
 0x1b6   : > { %7444 = vmatpush.xpose.msk.msrb.mxu2 %vm842_vm13, %v2193_v51  ;;  %v4654_v8 = vadd.f32 %v4653_v29, %v4634_v25  ;;  %1596 = vst [vmem:[#allocation1 + $0x20] ss:$4 sm:$0xff] %v927_v15  ;;  %v10563_v51 = vld.sshfl [vmem:[#allocation1 + $0x18] sm:$0xff pattern:$0x73625140]  ;;  %vm848_vm6 = vcmp.lt.s32.totalorder %v10535_v13, 199608  ;;  %v10601_v59 = vadd.s32 %v7979_v5, %v451_v35 }
 0x1b7   : > { %7438 = vmatpush.xpose.msk.msrb.mxu0 %vm840_vm14, %v2191_v58  ;;  %7447 = vmatpush.xpose.msk.msrb.mxu3 %vm843_vm15, %v2194_v12  ;;  %v4673_v4 = vpop.f32.mrf.mxu3  ;;  %v4693_v9 = vpop.f32.mrf.mxu0  ;;  %1605 = vst [vmem:[#allocation1] ss:$4 sm:$0xff] %v928_v3  ;;  %v456_v12 = vadd.s32 22272, %v7975_v2  ;;  %v455_v15 = vadd.s32 22144, %v7975_v2  ;;  %v929_v25 = vld [vmem:[%s7953_s26 + $0x168] sm:$0xff]  ;;  %v460_v35 = vadd.s32 22784, %v7975_v2 }
 0x1b8   : > { %7441 = vmatpush.xpose.msk.msrb.mxu1 %vm841_vm0, %v2192_v39  ;;  %v4674_v49 = vadd.f32 %v4673_v4, %v4654_v8  ;;  %vm853_vm12 = vcmp.lt.s32.totalorder %v10601_v59, 199608  ;;  %v458_v3 = vadd.s32 22528, %v7975_v2  ;;  %v2410_v17 = vld [vmem:[%s7959_s22 + $0xbb8] sm:$0x3] }
 0x1b9   : > { %7445 = vmatmul.msk.f32.vlgmr.msrb.gmra.mxu2 %vm842_vm13, %v10382_v46  ;;  %v10673_v43 = vadd.s32 %v7979_v5, %v455_v15  ;;  %v2414_v15 = vld [vmem:[%s7959_s22 + $0xbd8] sm:$0x3] }
 0x1ba   : > { %7455 = vmatpush.xpose.msk.msra.mxu2 %vm846_vm1, %v2397_v53  ;;  %v4713_v60 = vpop.f32.mrf.mxu1  ;;  %v4694_v37 = vadd.f32 %v4693_v9, %v4674_v49  ;;  %7439 = vmatmul.msk.f32.vlgmr.msrb.gmra.mxu0 %vm840_vm14, %v10384_v16  ;;  %v2400_v16 = vld [vmem:[%s7959_s22 + $0xb68] sm:$0x3]  ;;  %v2205_v9 = vld [vmem:[%s7959_s22 + $0x550] sm:$0xff]  ;;  %v2206_v49 = vld [vmem:[%s7959_s22 + $0x558] sm:$0xff]  ;;  %v10720_v13 = vadd.s32 %v7979_v5, %v458_v3 }
 0x1bb   : > { %7449 = vmatpush.xpose.msk.msra.mxu0 %vm844_vm2, %v2395_v21  ;;  %7458 = vmatpush.xpose.msk.msra.mxu3 %vm847_vm3, %v2398_v40  ;;  %v2202_v21 = vld [vmem:[%s7959_s22 + $0x538] sm:$0xff]  ;;  %v2200_v40 = vld [vmem:[%s7959_s22 + $0x528] sm:$0xff] }
 0x1bc   : > { %7452 = vmatpush.xpose.msk.msra.mxu1 %vm845_vm4, %v2396_v55  ;;  %7448 = vmatmul.msk.f32.vlgmr.msrb.gmra.mxu3 %vm843_vm15, %v10390_v56  ;;  %v4714_v46 = vadd.f32 %v4713_v60, %v4694_v37  ;;  %v4733_v56 = vpop.f32.mrf.mxu2  ;;  %v2405_v55 = vld [vmem:[%s7959_s22 + $0xb90] sm:$0x3]  ;;  %v2212_v3 = vld [vmem:[%s7959_s22 + $0x588] sm:$0xff] }
 0x1bd   : > { %7442 = vmatmul.msk.f32.vlgmr.msrb.gmra.mxu1 %vm841_vm0, %v10392_v42  ;;  %v10587_v42 = vadd.s32 %v7979_v5, %v452_v57  ;;  %v10650_v54 = vld.sshfl [vmem:[#allocation1 + $0x38] sm:$0xff pattern:$0x73625140]  ;;  %v10652_v8 = vld.sshfl [vmem:[#allocation1 + $0x28] sm:$0xff pattern:$0x73625140] }
 0x1be   : > { %7456 = vmatpush.xpose.msk.msra.mxu2 %vm846_vm1, %v2197_v14  ;;  %v4734_v45 = vadd.f32 %v4733_v56, %v4714_v46  ;;  %v10677_v37 = vld.sshfl [vmem:[#allocation1 + $0x10] sm:$0xff pattern:$0x73625140]  ;;  %v461_v46 = vadd.s32 22912, %v7975_v2  ;;  %vm857_vm0 = vcmp.lt.s32.totalorder %v10673_v43, 199608 }
 0x1bf   : > { %7450 = vmatpush.xpose.msk.msra.mxu0 %vm844_vm2, %v2195_v61  ;;  %7459 = vmatpush.xpose.msk.msra.mxu3 %vm847_vm3, %v2198_v11  ;;  %v4753_v7 = vpop.f32.mrf.mxu3  ;;  %v4773_v58 = vpop.f32.mrf.mxu0  ;;  %vm854_vm9 = vcmp.lt.s32.totalorder %v10587_v42, 199608  ;;  %v2203_v11 = vld [vmem:[%s7959_s22 + $0x540] sm:$0xff]  ;;  %v10684_v56 = vld.sshfl [vmem:[#allocation1] sm:$0xff pattern:$0x73625140] }
 0x1c0   : > { %7453 = vmatpush.xpose.msk.msra.mxu1 %vm845_vm4, %v2196_v1  ;;  %v4754_v39 = vadd.f32 %v4753_v7, %v4734_v45  ;;  %v10668_v1 = vadd.s32 %v7979_v5, %v457_v31  ;;  %v930_v45 = vld [vmem:[%s7953_s26 + $0x170] sm:$0xff]  ;;  %v2412_v42 = vld [vmem:[%s7959_s22 + $0xbc8] sm:$0x3] }
 0x1c1   : > { %7457 = vmatmul.msk.f32.vlgmr.msra.gmra.mxu2 %vm846_vm1, %v10417_v28  ;;  %v10632_v28 = vadd.s32 %v7979_v5, %v456_v12  ;;  %v2209_v12 = vld [vmem:[%s7959_s22 + $0x570] sm:$0xff]  ;;  %v2411_v31 = vld [vmem:[%s7959_s22 + $0xbc0] sm:$0x3] }
 0x1c2   : > { %7467 = vmatpush.xpose.msk.msrb.mxu2 %vm850_vm5, %v2401_v33  ;;  %v4793_v53 = vpop.f32.mrf.mxu1  ;;  %v4774_v36 = vadd.f32 %v4773_v58, %v4754_v39  ;;  %7451 = vmatmul.msk.f32.vlgmr.msra.gmra.mxu0 %vm844_vm2, %v10424_v44  ;;  %v454_v44 = vadd.s32 22016, %v7975_v2  ;;  %v10695_v58 = vld.sshfl [vmem:[#allocation1 + $0x8] sm:$0xff pattern:$0x73625140]  ;;  %vm859_vm15 = vcmp.lt.s32.totalorder %v10668_v1, 199608  ;;  %v10728_v39 = vadd.s32 %v7979_v5, %v461_v46 }
 0x1c3   : > { %7461 = vmatpush.xpose.msk.msrb.mxu0 %vm848_vm6, %v2399_v6  ;;  %7470 = vmatpush.xpose.msk.msrb.mxu3 %vm851_vm7, %v2402_v20  ;;  %vm858_vm13 = vcmp.lt.s32.totalorder %v10632_v28, 199608  ;;  %v2409_v6 = vld [vmem:[%s7959_s22 + $0xbb0] sm:$0x3]  ;;  %v2407_v20 = vld [vmem:[%s7959_s22 + $0xba0] sm:$0x3]  ;;  %vm860_vm2 = vcmp.lt.s32.totalorder %v10720_v13, 199608 }
 0x1c4   : > { %7464 = vmatpush.xpose.msk.msrb.mxu1 %vm849_vm8, %v2400_v16  ;;  %7460 = vmatmul.msk.f32.vlgmr.msra.gmra.mxu3 %vm847_vm3, %v10433_v62  ;;  %v4794_v29 = vadd.f32 %v4793_v53, %v4774_v36  ;;  %v10642_v62 = vld.sshfl [vmem:[#allocation1 + $0x30] sm:$0xff pattern:$0x73625140]  ;;  %v4813_v22 = vpop.f32.mrf.mxu2  ;;  %v10665_v60 = vadd.s32 %v7979_v5, %v454_v44  ;;  %v459_v16 = vadd.s32 22656, %v7975_v2  ;;  %vm863_vm3 = vcmp.lt.s32.totalorder %v10728_v39, 199608 }
 0x1c5   : > { %7454 = vmatmul.msk.f32.vlgmr.msra.gmra.mxu1 %vm845_vm4, %v10435_v30  ;;  %v10644_v30 = vld.sshfl [vmem:[#allocation1 + $0x20] sm:$0xff pattern:$0x73625140]  ;;  %v2207_v36 = vld [vmem:[%s7959_s22 + $0x560] sm:$0xff]  ;;  %v471_v13 = vadd.s32 24192, %v7975_v2 }
 0x1c6   : > { %7468 = vmatpush.xpose.msk.msrb.mxu2 %vm850_vm5, %v2201_v38  ;;  %v4814_v4 = vadd.f32 %v4813_v22, %v4794_v29  ;;  %1606 = vst [vmem:[#allocation1 + $0x20] ss:$4 sm:$0xff] %v929_v25  ;;  %v10693_v38 = vld.sshfl [vmem:[#allocation1 + $0x18] sm:$0xff pattern:$0x73625140]  ;;  %vm856_vm14 = vcmp.lt.s32.totalorder %v10665_v60, 199608  ;;  %v10731_v53 = vadd.s32 %v7979_v5, %v459_v16 }
 0x1c7   : > { %7462 = vmatpush.xpose.msk.msrb.mxu0 %vm848_vm6, %v2199_v50  ;;  %7471 = vmatpush.xpose.msk.msrb.mxu3 %vm851_vm7, %v2202_v21  ;;  %v4833_v14 = vpop.f32.mrf.mxu3  ;;  %v4853_v61 = vpop.f32.mrf.mxu0  ;;  %1615 = vst [vmem:[#allocation1] ss:$4 sm:$0xff] %v930_v45  ;;  %v464_v21 = vadd.s32 23296, %v7975_v2  ;;  %v463_v25 = vadd.s32 23168, %v7975_v2  ;;  %v931_v29 = vld [vmem:[%s7953_s26 + $0x178] sm:$0xff]  ;;  %v468_v16 = vadd.s32 23808, %v7975_v2 }
 0x1c8   : > { %7465 = vmatpush.xpose.msk.msrb.mxu1 %vm849_vm8, %v2200_v40  ;;  %v4834_v33 = vadd.f32 %v4833_v14, %v4814_v4  ;;  %vm861_vm4 = vcmp.lt.s32.totalorder %v10731_v53, 199608  ;;  %v466_v45 = vadd.s32 23552, %v7975_v2  ;;  %v2418_v28 = vld [vmem:[%s7959_s22 + $0xbf8] sm:$0x3] }
 0x1c9   : > { %7469 = vmatmul.msk.f32.vlgmr.msrb.gmra.mxu2 %vm850_vm5, %v10512_v63  ;;  %v10803_v46 = vadd.s32 %v7979_v5, %v463_v25  ;;  %v472_v25 = vadd.s32 24320, %v7975_v2 }
 0x1ca   : > { %7479 = vmatpush.xpose.msk.msra.mxu2 %vm854_vm9, %v2405_v55  ;;  %v4873_v57 = vpop.f32.mrf.mxu1  ;;  %v4854_v7 = vadd.f32 %v4853_v61, %v4834_v33  ;;  %7463 = vmatmul.msk.f32.vlgmr.msrb.gmra.mxu0 %vm848_vm6, %v10514_v26  ;;  %v2408_v26 = vld [vmem:[%s7959_s22 + $0xba8] sm:$0x3]  ;;  %v2213_v61 = vld [vmem:[%s7959_s22 + $0x590] sm:$0xff]  ;;  %v2214_v33 = vld [vmem:[%s7959_s22 + $0x598] sm:$0xff]  ;;  %v10850_v60 = vadd.s32 %v7979_v5, %v466_v45 }
 0x1cb   : > { %7473 = vmatpush.xpose.msk.msra.mxu0 %vm852_vm10, %v2403_v27  ;;  %7482 = vmatpush.xpose.msk.msra.mxu3 %vm855_vm11, %v2406_v41  ;;  %v2210_v27 = vld [vmem:[%s7959_s22 + $0x578] sm:$0xff]  ;;  %v2208_v41 = vld [vmem:[%s7959_s22 + $0x568] sm:$0xff] }
 0x1cc   : > { %7476 = vmatpush.xpose.msk.msra.mxu1 %vm853_vm12, %v2404_v10  ;;  %7472 = vmatmul.msk.f32.vlgmr.msrb.gmra.mxu3 %vm851_vm7, %v10520_v52  ;;  %v4874_v63 = vadd.f32 %v4873_v57, %v4854_v7  ;;  %v4893_v52 = vpop.f32.mrf.mxu2  ;;  %v2413_v10 = vld [vmem:[%s7959_s22 + $0xbd0] sm:$0x3]  ;;  %v2222_v45 = vld [vmem:[%s7959_s22 + $0x5d8] sm:$0xff] }
 0x1cd   : > { %7466 = vmatmul.msk.f32.vlgmr.msrb.gmra.mxu1 %vm849_vm8, %v10522_v24  ;;  %v10717_v24 = vadd.s32 %v7979_v5, %v460_v35  ;;  %v10780_v59 = vld.sshfl [vmem:[#allocation1 + $0x38] sm:$0xff pattern:$0x73625140]  ;;  %v10782_v4 = vld.sshfl [vmem:[#allocation1 + $0x28] sm:$0xff pattern:$0x73625140] }
 0x1ce   : > { %7480 = vmatpush.xpose.msk.msra.mxu2 %vm854_vm9, %v2205_v9  ;;  %v4894_v48 = vadd.f32 %v4893_v52, %v4874_v63  ;;  %v10807_v7 = vld.sshfl [vmem:[#allocation1 + $0x10] sm:$0xff pattern:$0x73625140]  ;;  %v469_v63 = vadd.s32 23936, %v7975_v2  ;;  %vm865_vm8 = vcmp.lt.s32.totalorder %v10803_v46, 199608 }
 0x1cf   : > { %7474 = vmatpush.xpose.msk.msra.mxu0 %vm852_vm10, %v2203_v11  ;;  %7483 = vmatpush.xpose.msk.msra.mxu3 %vm855_vm11, %v2206_v49  ;;  %v4913_v0 = vpop.f32.mrf.mxu3  ;;  %v4933_v50 = vpop.f32.mrf.mxu0  ;;  %vm862_vm1 = vcmp.lt.s32.totalorder %v10717_v24, 199608  ;;  %v2211_v49 = vld [vmem:[%s7959_s22 + $0x580] sm:$0xff]  ;;  %v10814_v52 = vld.sshfl [vmem:[#allocation1] sm:$0xff pattern:$0x73625140]  ;;  %v470_v24 = vadd.s32 24064, %v7975_v2 }
 0x1d0   : > { %7477 = vmatpush.xpose.msk.msra.mxu1 %vm853_vm12, %v2204_v18  ;;  %v4914_v40 = vadd.f32 %v4913_v0, %v4894_v48  ;;  %v10798_v18 = vadd.s32 %v7979_v5, %v465_v23  ;;  %v932_v48 = vld [vmem:[%s7953_s26 + $0x180] sm:$0xff]  ;;  %v2422_v23 = vld [vmem:[%s7959_s22 + $0xc18] sm:$0x3] }
 0x1d1   : > { %7481 = vmatmul.msk.f32.vlgmr.msra.gmra.mxu2 %vm854_vm9, %v10547_v19  ;;  %v10762_v19 = vadd.s32 %v7979_v5, %v464_v21  ;;  %v2217_v21 = vld [vmem:[%s7959_s22 + $0x5b0] sm:$0xff] }
 0x1d2   : > { %7491 = vmatpush.xpose.msk.msrb.mxu2 %vm858_vm13, %v2409_v6  ;;  %v4953_v55 = vpop.f32.mrf.mxu1  ;;  %v4934_v44 = vadd.f32 %v4933_v50, %v4914_v40  ;;  %7475 = vmatmul.msk.f32.vlgmr.msra.gmra.mxu0 %vm852_vm10, %v10554_v47  ;;  %v462_v47 = vadd.s32 23040, %v7975_v2  ;;  %v10825_v50 = vld.sshfl [vmem:[#allocation1 + $0x8] sm:$0xff pattern:$0x73625140]  ;;  %vm867_vm7 = vcmp.lt.s32.totalorder %v10798_v18, 199608  ;;  %v10858_v40 = vadd.s32 %v7979_v5, %v469_v63 }
 0x1d3   : > { %7485 = vmatpush.xpose.msk.msrb.mxu0 %vm856_vm14, %v2407_v20  ;;  %7494 = vmatpush.xpose.msk.msrb.mxu3 %vm859_vm15, %v2410_v17  ;;  %vm866_vm5 = vcmp.lt.s32.totalorder %v10762_v19, 199608  ;;  %v2417_v20 = vld [vmem:[%s7959_s22 + $0xbf0] sm:$0x3]  ;;  %v2415_v17 = vld [vmem:[%s7959_s22 + $0xbe0] sm:$0x3]  ;;  %vm868_vm10 = vcmp.lt.s32.totalorder %v10850_v60, 199608 }
 0x1d4   : > { %7488 = vmatpush.xpose.msk.msrb.mxu1 %vm857_vm0, %v2408_v26  ;;  %7484 = vmatmul.msk.f32.vlgmr.msra.gmra.mxu3 %vm855_vm11, %v10563_v51  ;;  %v4954_v22 = vadd.f32 %v4953_v55, %v4934_v44  ;;  %v10772_v51 = vld.sshfl [vmem:[#allocation1 + $0x30] sm:$0xff pattern:$0x73625140]  ;;  %v4973_v34 = vpop.f32.mrf.mxu2  ;;  %v10795_v57 = vadd.s32 %v7979_v5, %v462_v47  ;;  %v467_v26 = vadd.s32 23680, %v7975_v2  ;;  %v2218_v44 = vld [vmem:[%s7959_s22 + $0x5b8] sm:$0xff]  ;;  %vm871_vm11 = vcmp.lt.s32.totalorder %v10858_v40, 199608 }
 0x1d5   : > { %7478 = vmatmul.msk.f32.vlgmr.msra.gmra.mxu1 %vm853_vm12, %v10565_v32  ;;  %v10774_v32 = vld.sshfl [vmem:[#allocation1 + $0x20] sm:$0xff pattern:$0x73625140]  ;;  %v2216_v47 = vld [vmem:[%s7959_s22 + $0x5a8] sm:$0xff] }
 0x1d6   : > { %7492 = vmatpush.xpose.msk.msrb.mxu2 %vm858_vm13, %v2209_v12  ;;  %v4974_v14 = vadd.f32 %v4973_v34, %v4954_v22  ;;  %1616 = vst [vmem:[#allocation1 + $0x20] ss:$4 sm:$0xff] %v931_v29  ;;  %v10823_v12 = vld.sshfl [vmem:[#allocation1 + $0x18] sm:$0xff pattern:$0x73625140]  ;;  %vm864_vm6 = vcmp.lt.s32.totalorder %v10795_v57, 199608  ;;  %v10861_v55 = vadd.s32 %v7979_v5, %v467_v26 }
 0x1d7   : > { %7486 = vmatpush.xpose.msk.msrb.mxu0 %vm856_vm14, %v2207_v36  ;;  %7495 = vmatpush.xpose.msk.msrb.mxu3 %vm859_vm15, %v2210_v27  ;;  %v4993_v9 = vpop.f32.mrf.mxu3  ;;  %v5013_v11 = vpop.f32.mrf.mxu0  ;;  %1625 = vst [vmem:[#allocation1] ss:$4 sm:$0xff] %v932_v48  ;;  %v933_v29 = vld [vmem:[%s7953_s26 + $0x188] sm:$0xff]  ;;  %v2425_v26 = vld [vmem:[%s7959_s22 + $0xc30] sm:$0x3] }
 0x1d8   : > { %7489 = vmatpush.xpose.msk.msrb.mxu1 %vm857_vm0, %v2208_v41  ;;  %v4994_v6 = vadd.f32 %v4993_v9, %v4974_v14  ;;  %vm869_vm12 = vcmp.lt.s32.totalorder %v10861_v55, 199608  ;;  %v2423_v48 = vld [vmem:[%s7959_s22 + $0xc20] sm:$0x3]  ;;  %v2426_v19 = vld [vmem:[%s7959_s22 + $0xc38] sm:$0x3] }
 0x1d9   : > { %7493 = vmatmul.msk.f32.vlgmr.msrb.gmra.mxu2 %vm858_vm13, %v10642_v62 }
 0x1da   : > { %7503 = vmatpush.xpose.msk.msra.mxu2 %vm862_vm1, %v2413_v10  ;;  %v5033_v35 = vpop.f32.mrf.mxu1  ;;  %v5014_v0 = vadd.f32 %v5013_v11, %v4994_v6  ;;  %7487 = vmatmul.msk.f32.vlgmr.msrb.gmra.mxu0 %vm856_vm14, %v10644_v30  ;;  %v2416_v30 = vld [vmem:[%s7959_s22 + $0xbe8] sm:$0x3]  ;;  %v2215_v10 = vld [vmem:[%s7959_s22 + $0x5a0] sm:$0xff]  ;;  %v10917_v11 = vadd.s32 %v7979_v5, %v472_v25  ;;  %v2229_v25 = vld [vmem:[%s7959_s22 + $0x610] sm:$0xff] }
 0x1db   : > { %7497 = vmatpush.xpose.msk.msra.mxu0 %vm860_vm2, %v2411_v31  ;;  %7506 = vmatpush.xpose.msk.msra.mxu3 %vm863_vm3, %v2414_v15  ;;  %v2421_v31 = vld [vmem:[%s7959_s22 + $0xc10] sm:$0x3]  ;;  %v2419_v15 = vld [vmem:[%s7959_s22 + $0xc00] sm:$0x3] }
 0x1dc   : > { %7500 = vmatpush.xpose.msk.msra.mxu1 %vm861_vm4, %v2412_v42  ;;  %7496 = vmatmul.msk.f32.vlgmr.msrb.gmra.mxu3 %vm859_vm15, %v10650_v54  ;;  %v5034_v62 = vadd.f32 %v5033_v35, %v5014_v0  ;;  %v5053_v54 = vpop.f32.mrf.mxu2  ;;  %vm874_vm13 = vcmp.lt.s32.totalorder %v10917_v11, 199608  ;;  %v476_v0 = vadd.s32 24832, %v7975_v2  ;;  %v2434_v11 = vld [vmem:[%s7959_s22 + $0xc78] sm:$0x3] }
 0x1dd   : > { %7490 = vmatmul.msk.f32.vlgmr.msrb.gmra.mxu1 %vm857_vm0, %v10652_v8  ;;  %v10847_v8 = vadd.s32 %v7979_v5, %v468_v16  ;;  %v10901_v39 = vld.sshfl [vmem:[#allocation1 + $0x20] sm:$0xff pattern:$0x73625140]  ;;  %v10907_v53 = vld.sshfl [vmem:[#allocation1 + $0x38] sm:$0xff pattern:$0x73625140] }
 0x1de   : > { %7504 = vmatpush.xpose.msk.msra.mxu2 %vm862_vm1, %v2213_v61  ;;  %v5054_v1 = vadd.f32 %v5053_v54, %v5034_v62  ;;  %v10909_v34 = vld.sshfl [vmem:[#allocation1 + $0x28] sm:$0xff pattern:$0x73625140]  ;;  %v2221_v61 = vld [vmem:[%s7959_s22 + $0x5d0] sm:$0xff] }
 0x1df   : > { %7498 = vmatpush.xpose.msk.msra.mxu0 %vm860_vm2, %v2211_v49  ;;  %7507 = vmatpush.xpose.msk.msra.mxu3 %vm863_vm3, %v2214_v33  ;;  %v5073_v43 = vpop.f32.mrf.mxu3  ;;  %v5093_v36 = vpop.f32.mrf.mxu0  ;;  %vm870_vm9 = vcmp.lt.s32.totalorder %v10847_v8, 199608  ;;  %v10922_v33 = vadd.s32 %v7979_v5, %v470_v24  ;;  %v2219_v16 = vld [vmem:[%s7959_s22 + $0x5c0] sm:$0xff]  ;;  %v2225_v62 = vld [vmem:[%s7959_s22 + $0x5f0] sm:$0xff]  ;;  %v481_v8 = vadd.s32 25472, %v7975_v2 }
 0x1e0   : > { %7501 = vmatpush.xpose.msk.msra.mxu1 %vm861_vm4, %v2212_v3  ;;  %v5074_v27 = vadd.f32 %v5073_v43, %v5054_v1 }
 0x1e1   : > { %7505 = vmatmul.msk.f32.vlgmr.msra.gmra.mxu2 %vm862_vm1, %v10677_v37  ;;  %v2420_v37 = vld [vmem:[%s7959_s22 + $0xc08] sm:$0x3]  ;;  %vm872_vm14 = vcmp.lt.s32.totalorder %v10922_v33, 199608 }
 0x1e2   : > { %7515 = vmatpush.xpose.msk.msrb.mxu2 %vm866_vm5, %v2417_v20  ;;  %v5113_v41 = vpop.f32.mrf.mxu1  ;;  %v5094_v42 = vadd.f32 %v5093_v36, %v5074_v27  ;;  %7499 = vmatmul.msk.f32.vlgmr.msra.gmra.mxu0 %vm860_vm2, %v10684_v56  ;;  %v473_v56 = vadd.s32 24448, %v7975_v2  ;;  %v10928_v20 = vadd.s32 %v7979_v5, %v471_v13 }
 0x1e3   : > { %7509 = vmatpush.xpose.msk.msrb.mxu0 %vm864_vm6, %v2415_v17  ;;  %7518 = vmatpush.xpose.msk.msrb.mxu3 %vm867_vm7, %v2418_v28  ;;  %v2220_v17 = vld [vmem:[%s7959_s22 + $0x5c8] sm:$0xff] }
 0x1e4   : > { %7512 = vmatpush.xpose.msk.msrb.mxu1 %vm865_vm8, %v2416_v30  ;;  %7508 = vmatmul.msk.f32.vlgmr.msra.gmra.mxu3 %vm863_vm3, %v10693_v38  ;;  %v5114_v22 = vadd.f32 %v5113_v41, %v5094_v42  ;;  %v10899_v38 = vld.sshfl [vmem:[#allocation1 + $0x30] sm:$0xff pattern:$0x73625140]  ;;  %v10925_v6 = vadd.s32 %v7979_v5, %v473_v56  ;;  %vm873_vm0 = vcmp.lt.s32.totalorder %v10928_v20, 199608  ;;  %v10973_v30 = vadd.s32 %v7979_v5, %v476_v0  ;;  %v2427_v42 = vld [vmem:[%s7959_s22 + $0xc40] sm:$0x3] }
 0x1e5   : > { %7502 = vmatmul.msk.f32.vlgmr.msra.gmra.mxu1 %vm861_vm4, %v10695_v58  ;;  %v5133_v58 = vpop.f32.mrf.mxu2  ;;  %1626 = vst [vmem:[#allocation1 + $0x20] ss:$4 sm:$0xff] %v933_v29  ;;  %v2223_v41 = vld [vmem:[%s7959_s22 + $0x5e0] sm:$0xff]  ;;  %v11037_v56 = vadd.s32 %v7979_v5, %v481_v8  ;;  %v1627_v20 = vld.sshfl [vmem:[#allocation1] sm:$0xff pattern:$0x73625140] }
 0x1e6   : > { %7516 = vmatpush.xpose.msk.msrb.mxu2 %vm866_vm5, %v2217_v21  ;;  %v5134_v14 = vadd.f32 %v5133_v58, %v5114_v22  ;;  %vm875_vm15 = vcmp.lt.s32.totalorder %v10925_v6, 199608  ;;  %vm878_vm1 = vcmp.lt.s32.totalorder %v10973_v30, 199608  ;;  %v2227_v58 = vld [vmem:[%s7959_s22 + $0x600] sm:$0xff]  ;;  %v2233_v6 = vld [vmem:[%s7959_s22 + $0x630] sm:$0xff] }
 0x1e7   : > { %7510 = vmatpush.xpose.msk.msrb.mxu0 %vm864_vm6, %v2215_v10  ;;  %7519 = vmatpush.xpose.msk.msrb.mxu3 %vm867_vm7, %v2218_v44  ;;  %v5153_v9 = vpop.f32.mrf.mxu3  ;;  %v5173_v49 = vpop.f32.mrf.mxu0  ;;  %v2226_v10 = vld [vmem:[%s7959_s22 + $0x5f8] sm:$0xff]  ;;  %v2224_v44 = vld [vmem:[%s7959_s22 + $0x5e8] sm:$0xff] }
 0x1e8   : > { %7513 = vmatpush.xpose.msk.msrb.mxu1 %vm865_vm8, %v2216_v47  ;;  %v5154_v35 = vadd.f32 %v5153_v9, %v5134_v14  ;;  %v480_v47 = vadd.s32 25344, %v7975_v2  ;;  %v2230_v14 = vld [vmem:[%s7959_s22 + $0x618] sm:$0xff] }
 0x1e9   : > { %7517 = vmatmul.msk.f32.vlgmr.msrb.gmra.mxu2 %vm866_vm5, %v10772_v51  ;;  %v474_v51 = vadd.s32 24576, %v7975_v2 }
 0x1ea   : > { %7527 = vmatpush.xpose.msk.msra.mxu2 %vm870_vm9, %v2421_v31  ;;  %v5193_v3 = vpop.f32.mrf.mxu1  ;;  %v5174_v63 = vadd.f32 %v5173_v49, %v5154_v35  ;;  %7511 = vmatmul.msk.f32.vlgmr.msrb.gmra.mxu0 %vm864_vm6, %v10774_v32  ;;  %v477_v32 = vadd.s32 24960, %v7975_v2 }
 0x1eb   : > { %7521 = vmatpush.xpose.msk.msra.mxu0 %vm868_vm10, %v2419_v15  ;;  %7530 = vmatpush.xpose.msk.msra.mxu3 %vm871_vm11, %v2422_v23  ;;  %v10978_v1 = vadd.s32 %v7979_v5, %v474_v51  ;;  %v2429_v15 = vld [vmem:[%s7959_s22 + $0xc50] sm:$0x3] }
 0x1ec   : > { %7524 = vmatpush.xpose.msk.msra.mxu1 %vm869_vm12, %v2420_v37  ;;  %7520 = vmatmul.msk.f32.vlgmr.msrb.gmra.mxu3 %vm867_vm7, %v10780_v59  ;;  %v5194_v57 = vadd.f32 %v5193_v3, %v5174_v63  ;;  %v2424_v59 = vld [vmem:[%s7959_s22 + $0xc28] sm:$0x3]  ;;  %v10981_v43 = vadd.s32 %v7979_v5, %v477_v32  ;;  %vm883_vm7 = vcmp.lt.s32.totalorder %v11037_v56, 199608  ;;  %v1628_v63 = vld.sshfl [vmem:[#allocation1 + $0x8] sm:$0xff pattern:$0x73625140] }
 0x1ed   : > { %7514 = vmatmul.msk.f32.vlgmr.msrb.gmra.mxu1 %vm865_vm8, %v10782_v4  ;;  %v475_v4 = vadd.s32 24704, %v7975_v2  ;;  %v5213_v18 = vpop.f32.mrf.mxu2  ;;  %vm876_vm2 = vcmp.lt.s32.totalorder %v10978_v1, 199608  ;;  %v1629_v3 = vld.sshfl [vmem:[#allocation1 + $0x10] sm:$0xff pattern:$0x73625140] }
 0x1ee   : > { %7528 = vmatpush.xpose.msk.msra.mxu2 %vm870_vm9, %v2221_v61  ;;  %v5214_v46 = vadd.f32 %v5213_v18, %v5194_v57  ;;  %vm879_vm3 = vcmp.lt.s32.totalorder %v10981_v43, 199608  ;;  %v2228_v61 = vld [vmem:[%s7959_s22 + $0x608] sm:$0xff] }
 0x1ef   : > { %7522 = vmatpush.xpose.msk.msra.mxu0 %vm868_vm10, %v2219_v16  ;;  %7531 = vmatpush.xpose.msk.msra.mxu3 %vm871_vm11, %v2222_v45  ;;  %v5233_v28 = vpop.f32.mrf.mxu3  ;;  %v5253_v54 = vpop.f32.mrf.mxu0  ;;  %v10984_v27 = vadd.s32 %v7979_v5, %v475_v4  ;;  %v1633_v18 = vld.sshfl [vmem:[#allocation1 + $0x30] sm:$0xff pattern:$0x73625140]  ;;  %v1634_v30 = vld.sshfl [vmem:[#allocation1 + $0x38] sm:$0xff pattern:$0x73625140] }
 0x1f0   : > { %7525 = vmatpush.xpose.msk.msra.mxu1 %vm869_vm12, %v2220_v17  ;;  %v5234_v21 = vadd.f32 %v5233_v28, %v5214_v46  ;;  %v1630_v17 = vld.sshfl [vmem:[#allocation1 + $0x18] sm:$0xff pattern:$0x73625140]  ;;  %v1631_v46 = vld.sshfl [vmem:[#allocation1 + $0x20] sm:$0xff pattern:$0x73625140] }
 0x1f1   : > { %7529 = vmatmul.msk.f32.vlgmr.msra.gmra.mxu2 %vm870_vm9, %v10807_v7  ;;  %v2430_v7 = vld [vmem:[%s7959_s22 + $0xc58] sm:$0x3]  ;;  %vm877_vm4 = vcmp.lt.s32.totalorder %v10984_v27, 199608  ;;  %vm6837_vm9 = vcmask 74752  }
 0x1f2   : > { %7539 = vmatpush.xpose.msk.msrb.mxu2 %vm874_vm13, %v2425_v26  ;;  %v5273_v36 = vpop.f32.mrf.mxu1  ;;  %v5254_v31 = vadd.f32 %v5253_v54, %v5234_v21  ;;  %7523 = vmatmul.msk.f32.vlgmr.msra.gmra.mxu0 %vm868_vm10, %v10814_v52  ;;  %v478_v52 = vadd.s32 25088, %v7975_v2  ;;  %v2231_v26 = vld [vmem:[%s7959_s22 + $0x620] sm:$0xff] }
 0x1f3   : > { %7533 = vmatpush.xpose.msk.msrb.mxu0 %vm872_vm14, %v2423_v48  ;;  %7542 = vmatpush.xpose.msk.msrb.mxu3 %vm875_vm15, %v2426_v19  ;;  %v2234_v48 = vld [vmem:[%s7959_s22 + $0x638] sm:$0xff]  ;;  %v2232_v19 = vld [vmem:[%s7959_s22 + $0x628] sm:$0xff] }
 0x1f4   : > { %7536 = vmatpush.xpose.msk.msrb.mxu1 %vm873_vm0, %v2424_v59  ;;  %7532 = vmatmul.msk.f32.vlgmr.msra.gmra.mxu3 %vm871_vm11, %v10823_v12  ;;  %v5274_v60 = vadd.f32 %v5273_v36, %v5254_v31  ;;  %v2428_v12 = vld [vmem:[%s7959_s22 + $0xc48] sm:$0x3]  ;;  %v11034_v24 = vadd.s32 %v7979_v5, %v478_v52  ;;  %v1632_v54 = vld.sshfl [vmem:[#allocation1 + $0x28] sm:$0xff pattern:$0x73625140] }
 0x1f5   : > { %7526 = vmatmul.msk.f32.vlgmr.msra.gmra.mxu1 %vm869_vm12, %v10825_v50  ;;  %v479_v50 = vadd.s32 25216, %v7975_v2  ;;  %v5293_v40 = vpop.f32.mrf.mxu2  ;;  %v11029_v2 = vadd.s32 %v7979_v5, %v480_v47 }
 0x1f6   : > { %7540 = vmatpush.xpose.msk.msrb.mxu2 %vm874_vm13, %v2225_v62  ;;  %v5294_v55 = vadd.f32 %v5293_v40, %v5274_v60  ;;  %vm880_vm6 = vcmp.lt.s32.totalorder %v11034_v24, 199608 }
 0x1f7   : > { %7534 = vmatpush.xpose.msk.msrb.mxu0 %vm872_vm14, %v2223_v41  ;;  %7543 = vmatpush.xpose.msk.msrb.mxu3 %vm875_vm15, %v2226_v10  ;;  %v5313_v23 = vpop.f32.mrf.mxu3  ;;  %v5333_v37 = vpop.f32.mrf.mxu0  ;;  %v11040_v22 = vadd.s32 %v7979_v5, %v479_v50  ;;  %vm882_vm5 = vcmp.lt.s32.totalorder %v11029_v2, 199608  ;;  %v2433_v5 = vld [vmem:[%s7959_s22 + $0xc70] sm:$0x3] }
 0x1f8   : > { %7537 = vmatpush.xpose.msk.msrb.mxu1 %vm873_vm0, %v2224_v44  ;;  %v5314_v13 = vadd.f32 %v5313_v23, %v5294_v55 }
 0x1f9   : > { %7541 = vmatmul.msk.f32.vlgmr.msrb.gmra.mxu2 %vm874_vm13, %v10899_v38  ;;  %v2431_v38 = vld [vmem:[%s7959_s22 + $0xc60] sm:$0x3]  ;;  %vm881_vm8 = vcmp.lt.s32.totalorder %v11040_v22, 199608 }
 0x1fa   : > { %7551 = vmatpush.xpose.msk.msra.mxu2 %vm878_vm1, %v2429_v15  ;;  %v5353_v29 = vpop.f32.mrf.mxu1  ;;  %v5334_v9 = vadd.f32 %v5333_v37, %v5314_v13  ;;  %7535 = vmatmul.msk.f32.vlgmr.msrb.gmra.mxu0 %vm872_vm14, %v10901_v39 }
 0x1fb   : > { %7545 = vmatpush.xpose.msk.msra.mxu0 %vm876_vm2, %v2427_v42  ;;  %7554 = vmatpush.xpose.msk.msra.mxu3 %vm879_vm3, %v2430_v7 }
 0x1fc   : > { %7548 = vmatpush.xpose.msk.msra.mxu1 %vm877_vm4, %v2428_v12  ;;  %7544 = vmatmul.msk.f32.vlgmr.msrb.gmra.mxu3 %vm875_vm15, %v10907_v53  ;;  %v5354_v39 = vadd.f32 %v5353_v29, %v5334_v9  ;;  %v2432_v53 = vld [vmem:[%s7959_s22 + $0xc68] sm:$0x3] }
 0x1fd   : > { %7538 = vmatmul.msk.f32.vlgmr.msrb.gmra.mxu1 %vm873_vm0, %v10909_v34  ;;  %v5373_v49 = vpop.f32.mrf.mxu2 }
 0x1fe   : > { %7552 = vmatpush.xpose.msk.msra.mxu2 %vm878_vm1, %v2229_v25  ;;  %v5374_v34 = vadd.f32 %v5373_v49, %v5354_v39 }
 0x1ff   : > { %7546 = vmatpush.xpose.msk.msra.mxu0 %vm876_vm2, %v2227_v58  ;;  %7555 = vmatpush.xpose.msk.msra.mxu3 %vm879_vm3, %v2230_v14  ;;  %v5393_v33 = vpop.f32.mrf.mxu3  ;;  %v5413_v35 = vpop.f32.mrf.mxu0 }
 0x200   : > { %7549 = vmatpush.xpose.msk.msra.mxu1 %vm877_vm4, %v2228_v61  ;;  %v5394_v16 = vadd.f32 %v5393_v33, %v5374_v34 }
 0x201   : > { %7553 = vmatmul.msk.f32.vlgmr.msra.gmra.mxu2 %vm878_vm1, %v1629_v3 }
 0x202   : > { %7563 = vmatpush.xpose.msk.msrb.mxu2 %vm882_vm5, %v2433_v5  ;;  %v5433_v45 = vpop.f32.mrf.mxu1  ;;  %v5414_v0 = vadd.f32 %v5413_v35, %v5394_v16  ;;  %7547 = vmatmul.msk.f32.vlgmr.msra.gmra.mxu0 %vm876_vm2, %v1627_v20 }
 0x203   : > { %7557 = vmatpush.xpose.msk.msrb.mxu0 %vm880_vm6, %v2431_v38  ;;  %7566 = vmatpush.xpose.msk.msrb.mxu3 %vm883_vm7, %v2434_v11 }
 0x204   : > { %7560 = vmatpush.xpose.msk.msrb.mxu1 %vm881_vm8, %v2432_v53  ;;  %7556 = vmatmul.msk.f32.vlgmr.msra.gmra.mxu3 %vm879_vm3, %v1630_v17  ;;  %v5434_v51 = vadd.f32 %v5433_v45, %v5414_v0 }
 0x205   : > { %7550 = vmatmul.msk.f32.vlgmr.msra.gmra.mxu1 %vm877_vm4, %v1628_v63  ;;  %v5453_v32 = vpop.f32.mrf.mxu2 }
 0x206   : > { %7564 = vmatpush.xpose.msk.msrb.mxu2 %vm882_vm5, %v2233_v6  ;;  %v5454_v57 = vadd.f32 %v5453_v32, %v5434_v51 }
 0x207   : > { %7558 = vmatpush.xpose.msk.msrb.mxu0 %vm880_vm6, %v2231_v26  ;;  %7567 = vmatpush.xpose.msk.msrb.mxu3 %vm883_vm7, %v2234_v48  ;;  %v5473_v59 = vpop.f32.mrf.mxu3  ;;  %v5493_v4 = vpop.f32.mrf.mxu0 }
 0x208   : > { %7561 = vmatpush.xpose.msk.msrb.mxu1 %vm881_vm8, %v2232_v19  ;;  %v5474_v28 = vadd.f32 %v5473_v59, %v5454_v57 }
 0x209   : > { %7565 = vmatmul.msk.f32.vlgmr.msrb.gmra.mxu2 %vm882_vm5, %v1633_v18 }
 0x20a   : > { %v5513_v62 = vpop.f32.mrf.mxu1  ;;  %v5494_v1 = vadd.f32 %v5493_v4, %v5474_v28  ;;  %7559 = vmatmul.msk.f32.vlgmr.msrb.gmra.mxu0 %vm880_vm6, %v1631_v46 }
 0x20c   : > { %7568 = vmatmul.msk.f32.vlgmr.msrb.gmra.mxu3 %vm883_vm7, %v1634_v30  ;;  %v5514_v43 = vadd.f32 %v5513_v62, %v5494_v1 }
 0x20d   : > { %7562 = vmatmul.msk.f32.vlgmr.msrb.gmra.mxu1 %vm881_vm8, %v1632_v54  ;;  %v5533_v21 = vpop.f32.mrf.mxu2 }
 0x20e   : > { %v5534_v36 = vadd.f32 %v5533_v21, %v5514_v43 }
 0x20f   : > { %v5553_v27 = vpop.f32.mrf.mxu3  ;;  %v5573_v41 = vpop.f32.mrf.mxu0 }
 0x210   : > { %v5554_v10 = vadd.f32 %v5553_v27, %v5534_v36 }
 0x212   : > { %v5593_v44 = vpop.f32.mrf.mxu1  ;;  %v5574_v31 = vadd.f32 %v5573_v41, %v5554_v10 }
 0x214   : > { %v5594_v15 = vadd.f32 %v5593_v44, %v5574_v31 }
 0x215   : > { %v5613_v42 = vpop.f32.mrf.mxu2 }
 0x216   : > { %v5614_v47 = vadd.f32 %v5613_v42, %v5594_v15 }
 0x217   : > { %v5633_v7 = vpop.f32.mrf.mxu3  ;;  %v5653_v52 = vpop.f32.mrf.mxu0 }
 0x218   : > { %v5634_v8 = vadd.f32 %v5633_v7, %v5614_v47 }
 0x21a   : > { %v5673_v60 = vpop.f32.mrf.mxu1  ;;  %v5654_v12 = vadd.f32 %v5653_v52, %v5634_v8 }
 0x21c   : > { %v5674_v50 = vadd.f32 %v5673_v60, %v5654_v12 }
 0x21d   : > { %v5693_v40 = vpop.f32.mrf.mxu2 }
 0x21e   : > { %v5694_v55 = vadd.f32 %v5693_v40, %v5674_v50 }
 0x21f   : > { %v5713_v23 = vpop.f32.mrf.mxu3  ;;  %v5733_v25 = vpop.f32.mrf.mxu0 }
 0x220   : > { %v5714_v2 = vadd.f32 %v5713_v23, %v5694_v55 }
 0x222   : > { %v5753_v37 = vpop.f32.mrf.mxu1  ;;  %v5734_v24 = vadd.f32 %v5733_v25, %v5714_v2 }
 0x224   : > { %v5754_v56 = vadd.f32 %v5753_v37, %v5734_v24 }
 0x225   : > { %v5773_v13 = vpop.f32.mrf.mxu2 }
 0x226   : > { %v5774_v29 = vadd.f32 %v5773_v13, %v5754_v56 }
 0x227   : > { %v5793_v22 = vpop.f32.mrf.mxu3  ;;  %v5813_v58 = vpop.f32.mrf.mxu0 }
 0x228   : > { %v5794_v14 = vadd.f32 %v5793_v22, %v5774_v29 }
 0x22a   : > { %v5833_v9 = vpop.f32.mrf.mxu1  ;;  %v5814_v61 = vadd.f32 %v5813_v58, %v5794_v14 }
 0x22c   : > { %v5834_v5 = vadd.f32 %v5833_v9, %v5814_v61 }
 0x22d   : > { %v5853_v38 = vpop.f32.mrf.mxu2 }
 0x22e   : > { %v5854_v11 = vadd.f32 %v5853_v38, %v5834_v5 }
 0x22f   : > { %v5873_v39 = vpop.f32.mrf.mxu3  ;;  %v5893_v53 = vpop.f32.mrf.mxu0 }
 0x230   : > { %v5874_v49 = vadd.f32 %v5873_v39, %v5854_v11 }
 0x232   : > { %v5913_v34 = vpop.f32.mrf.mxu1  ;;  %v5894_v33 = vadd.f32 %v5893_v53, %v5874_v49 }
 0x234   : > { %v5914_v6 = vadd.f32 %v5913_v34, %v5894_v33 }
 0x235   : > { %v5933_v35 = vpop.f32.mrf.mxu2 }
 0x236   : > { %v5934_v3 = vadd.f32 %v5933_v35, %v5914_v6 }
 0x237   : > { %v5953_v20 = vpop.f32.mrf.mxu3  ;;  %v5973_v16 = vpop.f32.mrf.mxu0 }
 0x238   : > { %v5954_v45 = vadd.f32 %v5953_v20, %v5934_v3 }
 0x23a   : > { %v5993_v17 = vpop.f32.mrf.mxu1  ;;  %v5974_v63 = vadd.f32 %v5973_v16, %v5954_v45 }
 0x23c   : > { %v5994_v26 = vadd.f32 %v5993_v17, %v5974_v63 }
 0x23d   : > { %v6013_v48 = vpop.f32.mrf.mxu2 }
 0x23e   : > { %v6014_v0 = vadd.f32 %v6013_v48, %v5994_v26 }
 0x23f   : > { %v6033_v19 = vpop.f32.mrf.mxu3  ;;  %v6053_v51 = vpop.f32.mrf.mxu0 }
 0x240   : > { %v6034_v32 = vadd.f32 %v6033_v19, %v6014_v0 }
 0x242   : > { %v6073_v57 = vpop.f32.mrf.mxu1  ;;  %v6054_v59 = vadd.f32 %v6053_v51, %v6034_v32 }
 0x244   : > { %v6074_v4 = vadd.f32 %v6073_v57, %v6054_v59 }
 0x245   : > { %v6093_v18 = vpop.f32.mrf.mxu2 }
 0x246   : > { %v6094_v46 = vadd.f32 %v6093_v18, %v6074_v4 }
 0x247   : > { %v6113_v28 = vpop.f32.mrf.mxu3  ;;  %v6133_v62 = vpop.f32.mrf.mxu0 }
 0x248   : > { %v6114_v30 = vadd.f32 %v6113_v28, %v6094_v46 }
 0x24a   : > { %v6153_v54 = vpop.f32.mrf.mxu1  ;;  %v6134_v1 = vadd.f32 %v6133_v62, %v6114_v30 }
 0x24c   : > { %v6154_v43 = vadd.f32 %v6153_v54, %v6134_v1 }
 0x24d   : > { %v6173_v21 = vpop.f32.mrf.mxu2 }
 0x24e   : > { %v6174_v36 = vadd.f32 %v6173_v21, %v6154_v43 }
 0x24f   : > { %v6193_v27 = vpop.f32.mrf.mxu3  ;;  %v6213_v41 = vpop.f32.mrf.mxu0 }
 0x250   : > { %v6194_v10 = vadd.f32 %v6193_v27, %v6174_v36 }
 0x252   : > { %v6233_v44 = vpop.f32.mrf.mxu1  ;;  %v6214_v31 = vadd.f32 %v6213_v41, %v6194_v10  ;;  %v2835_v41 = vld [vmem:[#allocation2] sm:$0x3] }
 0x254   : > { %v6234_v15 = vadd.f32 %v6233_v44, %v6214_v31 }
 0x255   : > { %v6253_v42 = vpop.f32.mrf.mxu2 }
 0x256   : > { %v6254_v47 = vadd.f32 %v6253_v42, %v6234_v15 }
 0x257   : > { %v6273_v7 = vpop.f32.mrf.mxu3  ;;  %v6293_v52 = vpop.f32.mrf.mxu0 }
 0x258   : > { %v6274_v8 = vadd.f32 %v6273_v7, %v6254_v47 }
 0x25a   : > { %v6313_v60 = vpop.f32.mrf.mxu1  ;;  %v6294_v12 = vadd.f32 %v6293_v52, %v6274_v8 }
 0x25c   : > { %v6314_v50 = vadd.f32 %v6313_v60, %v6294_v12 }
 0x25d   : > { %v6333_v40 = vpop.f32.mrf.mxu2 }
 0x25e   : > { %v6334_v55 = vadd.f32 %v6333_v40, %v6314_v50 }
 0x25f   : > { %v6353_v23 = vpop.f32.mrf.mxu3  ;;  %v6373_v25 = vpop.f32.mrf.mxu0 }
 0x260   : > { %v6354_v2 = vadd.f32 %v6353_v23, %v6334_v55 }
 0x262   : > { %v6393_v37 = vpop.f32.mrf.mxu1  ;;  %v6374_v24 = vadd.f32 %v6373_v25, %v6354_v2 }
 0x264   : > { %v6394_v56 = vadd.f32 %v6393_v37, %v6374_v24 }
 0x265   : > { %v6413_v13 = vpop.f32.mrf.mxu2 }
 0x266   : > { %v6414_v29 = vadd.f32 %v6413_v13, %v6394_v56 }
 0x267   : > { %v6433_v22 = vpop.f32.mrf.mxu3  ;;  %v6453_v58 = vpop.f32.mrf.mxu0 }
 0x268   : > { %v6434_v14 = vadd.f32 %v6433_v22, %v6414_v29 }
 0x26a   : > { %v6473_v9 = vpop.f32.mrf.mxu1  ;;  %v6454_v61 = vadd.f32 %v6453_v58, %v6434_v14 }
 0x26c   : > { %v6474_v5 = vadd.f32 %v6473_v9, %v6454_v61 }
 0x26d   : > { %v6493_v38 = vpop.f32.mrf.mxu2 }
 0x26e   : > { %v6494_v11 = vadd.f32 %v6493_v38, %v6474_v5 }
 0x26f   : > { %v6513_v39 = vpop.f32.mrf.mxu3  ;;  %v6533_v53 = vpop.f32.mrf.mxu0 }
 0x270   : > { %v6514_v49 = vadd.f32 %v6513_v39, %v6494_v11 }
 0x272   : > { %v6553_v34 = vpop.f32.mrf.mxu1  ;;  %v6534_v33 = vadd.f32 %v6533_v53, %v6514_v49 }
 0x274   : > { %v6554_v6 = vadd.f32 %v6553_v34, %v6534_v33 }
 0x275   : > { %v6573_v35 = vpop.f32.mrf.mxu2 }
 0x276   : > { %v6574_v3 = vadd.f32 %v6573_v35, %v6554_v6 }
 0x277   : > { %v6593_v20 = vpop.f32.mrf.mxu3  ;;  %v6613_v16 = vpop.f32.mrf.mxu0 }
 0x278   : > { %v6594_v45 = vadd.f32 %v6593_v20, %v6574_v3 }
 0x27a   : > { %v6633_v17 = vpop.f32.mrf.mxu1  ;;  %v6614_v63 = vadd.f32 %v6613_v16, %v6594_v45 }
 0x27c   : > { %v6634_v26 = vadd.f32 %v6633_v17, %v6614_v63 }
 0x27d   : > { %v6653_v48 = vpop.f32.mrf.mxu2 }
 0x27e   : > { %v6654_v0 = vadd.f32 %v6653_v48, %v6634_v26 }
 0x27f   : > { %v6673_v19 = vpop.f32.mrf.mxu3  ;;  %v6693_v51 = vpop.f32.mrf.mxu0 }
 0x280   : > { %v6674_v32 = vadd.f32 %v6673_v19, %v6654_v0 }
 0x282   : > { %v6713_v57 = vpop.f32.mrf.mxu1  ;;  %v6694_v59 = vadd.f32 %v6693_v51, %v6674_v32 }
 0x284   : > { %v6714_v4 = vadd.f32 %v6713_v57, %v6694_v59 }
 0x285   : > { %v6733_v18 = vpop.f32.mrf.mxu2 }
 0x286   : > { %v6734_v46 = vadd.f32 %v6733_v18, %v6714_v4 }
 0x287   : > { %v6753_v28 = vpop.f32.mrf.mxu3  ;;  %v6773_v62 = vpop.f32.mrf.mxu0 }
 0x288   : > { %v6754_v30 = vadd.f32 %v6753_v28, %v6734_v46 }
 0x28a   : > { %v6793_v54 = vpop.f32.mrf.mxu1  ;;  %v6774_v1 = vadd.f32 %v6773_v62, %v6754_v30 }
 0x28c   : > { %v6794_v43 = vadd.f32 %v6793_v54, %v6774_v1 }
 0x28d   : > { %v6813_v21 = vpop.f32.mrf.mxu2 }
 0x28e   : > { %v6814_v36 = vadd.f32 %v6813_v21, %v6794_v43 }
 0x28f   : > { %v6833_v27 = vpop.f32.mrf.mxu3 }
 0x290   : > { %v6834_v10 = vadd.f32 %v6833_v27, %v6814_v36  ;;  %6842 = sbr.rel (%p7569_p9) target bundleno = 669 (0x29d), region = 44 }
 0x292   : > { %v6836_v44 = vadd.f32 %v6834_v10, %v2835_v41 }
 0x294   : > { %6838 = vst.msk [vmem:[#allocation2] sm:$0x3] %vm6837_vm9, %v6836_v44 }
 0x29b   : > { %v6843_v31 = vld [vmem:[#allocation2] sm:$0x3] }
 0x29c   : > { %6844 = vst.msk [vmem:[%s7970_s3] sm:$0x3] %vm6837_vm9, %v6843_v31 }
 0x29d PF: > { %s18_s16 = sadd.s32 1, %s7797_s16   ;;  %s11144_s7 = sld [smem:[#allocation9_spill]] }
 0x29e   : > { %p15_p11 = scmp.ge.s32.totalorder %s18_s16, 10   ;;  %s11145_s9 = smov %s7773_s10 }
 0x29f   : > { %s11146_s10 = smov %s7777_s11  ;;  %s11147_s11 = smov %s7886_s28 }
 0x2a0   : > { %s11148_s12 = smov %s7789_s14  ;;  %s11149_s13 = smov %s7793_s15 }
 0x2a1   : > { %s11150_s14 = smov %s11153_s17  ;;  %17 = sbr.rel (!%p15_p11) target bundleno = 7 (0x7), region = 90 }
 0x2a3   : > { %s11151_s15 = smov %s11144_s7 }
 0x2a6   :  { %6864 = vsyncpa [#allocation4], 1 }
 0x2a7   :  { %6866 = vsyncpa [#allocation4 + $0x1], 1 }
 0x2a8   :  { %6867 = vsyncpa [#allocation6], 1 }
 0x2a9   :  { %6869 = vsyncpa [#allocation6 + $0x1], 1 }

</bundles_post_ra>
